<compile_context>
chip_gen: v7x
topology: tpu7x:2x2x1
jax: 0.10.0
libtpu: 0.0.40
codegen_flags: <defaults>
</compile_context>

<pallas_src>
import numpy as np
import jax
import jax.numpy as jnp
from jax.experimental import pallas as pl
from jax.experimental.pallas import tpu as pltpu

TB = 128            # default batch tile (tunable; review: 64-128)
C1, C2 = 16, 32
WP1, WP2 = 12, 4    # pooled widths after conv1 / conv2
N1 = WP1 * C1       # 192  conv1 pooled (width, channel) lanes
N2 = WP2 * C2       # 128  conv2 pooled (width, channel) lanes
K1 = 5 * 28         # 140  conv1 fused contraction (row-tap x width)
K2 = 5 * N1         # 960  conv2 fused contraction (row-tap x (width, ci))


# ---------------------------------------------------------------------------
# Fused kernel: conv1+pool+relu -> conv2+pool+relu -> fc1+relu -> fc2
# ---------------------------------------------------------------------------
def cnn_fused_kernel(x_ref, m1_ref, b1_ref, m2_ref, b2_ref,
                     wfc1_ref, bfc1_ref, wfc2_ref, bfc2_ref,
                     o_ref, lhs1_ref, lhs2_ref):
    f32, bf16 = jnp.float32, jnp.bfloat16
    tb = x_ref.shape[2]                       # batch tile

    # ---- conv1 (5x5, 1->16) + 2x2 max-pool + bias + ReLU --------------------
    # x_ref: (4, 7, tb, 28) bf16 with x_ref[q, t, n, w] = image[n, 4*t+q, w].
    # Assemble one deep-K LHS in scratch: rows ordered (di1, par, iph, n),
    # lanes ordered (row-tap r, width w).
    for r in range(5):                        # kernel-row tap
        for di1 in range(2):                  # vertical pooling offset
            for par in range(2):              # parity of pooled row index
                s = di1 + 2 * par + r         # input row for iph = 0
                g = di1 * 2 + par
                lhs1_ref[g * 6:(g + 1) * 6, :, r * 28:(r + 1) * 28] = (
                    x_ref[s % 4, s // 4: s // 4 + 6])          # (6, tb, 28)
    lhs1 = lhs1_ref[...].reshape(4 * 6 * tb, K1)               # (24*tb, 140)
    # one K=140 matmul per horizontal pooling offset dj1 (N=192 each)
    a0 = jnp.dot(lhs1, m1_ref[0], preferred_element_type=f32)
    a1 = jnp.dot(lhs1, m1_ref[1], preferred_element_type=f32)
    p1 = jnp.maximum(a0, a1)                  # max over dj1
    half1 = 2 * 6 * tb
    p1 = jnp.maximum(p1[:half1], p1[half1:])  # max over di1 -> rows (par, iph, n)
    p1 = jnp.maximum(p1 + b1_ref[...], 0.0)   # bias + ReLU (f32)
    p1v = p1.astype(bf16).reshape(2, 6, tb, N1)                # (par, iph, n, jp*16+ci)

    # ---- conv2 (5x5, 16->32) + 2x2 max-pool + bias + ReLU -------------------
    # Single K=960 matmul: rows (di2, ip2, n), lanes (r, jp*16+ci).
    for r in range(5):
        for di2 in range(2):
            s = di2 + r
            lhs2_ref[di2 * 4:(di2 + 1) * 4, :, r * N1:(r + 1) * N1] = (
                p1v[s % 2, s // 2: s // 2 + 4])                # (4, tb, 192)
    lhs2 = lhs2_ref[...].reshape(2 * 4 * tb, K2)               # (8*tb, 960)
    acc2 = jnp.dot(lhs2, m2_ref[...], preferred_element_type=f32)  # (8*tb, 256)
    p2 = jnp.maximum(acc2[:, :N2], acc2[:, N2:])   # max over dj2 (lane-aligned)
    half2 = 4 * tb
    p2 = jnp.maximum(p2[:half2], p2[half2:])       # max over di2 -> rows (ip2, n)
    p2 = jnp.maximum(p2 + b2_ref[...], 0.0)        # (4*tb, 128), cols (jp2, co)
    p2v = p2.astype(bf16).reshape(4, tb, N2)

    # ---- fc1 (512 -> 64) + ReLU: single K=512 matmul ------------------------
    # Lane-aligned concat of the 4 pooled-row slabs; wfc1 rows pre-permuted.
    lhs3 = jnp.concatenate([p2v[0], p2v[1], p2v[2], p2v[3]], axis=-1)  # (tb, 512)
    h = jnp.maximum(jnp.dot(lhs3, wfc1_ref[...], preferred_element_type=f32)
                    + bfc1_ref[...], 0.0)                               # (tb, 64)

    # ---- fc2 (64 -> 10), zero-padded to 128 lanes (unmasked store) ----------
    o_ref[...] = (jnp.dot(h.astype(bf16), wfc2_ref[...],
                          preferred_element_type=f32) + bfc2_ref[...])


# ---------------------------------------------------------------------------
# Parameter init (raw, PyTorch-like) and packing into kernel operands
# ---------------------------------------------------------------------------
def init_raw_params(key):
    ks = jax.random.split(key, 8)

    def scaled(k, shape, fan_in):
        return jax.random.normal(k, shape, jnp.float32) / jnp.sqrt(float(fan_in))

    return {
        "W1": scaled(ks[0], (5, 5, 1, C1), 25),      # HWIO
        "b1": scaled(ks[1], (C1,), 25),
        "W2": scaled(ks[2], (5, 5, C1, C2), 400),    # HWIO
        "b2": scaled(ks[3], (C2,), 400),
        "Wfc1": scaled(ks[4], (512, 64), 512),       # (in, out)
        "bfc1": scaled(ks[5], (64,), 512),
        "Wfc2": scaled(ks[6], (64, 10), 64),
        "bfc2": scaled(ks[7], (10,), 64),
    }


def prepare_kernel_params(raw):
    """Toeplitz-expanded, tap-fused conv weights; permuted fc1; padded fc2."""
    W1 = np.asarray(raw["W1"], np.float32)
    W2 = np.asarray(raw["W2"], np.float32)
    Wfc1 = np.asarray(raw["Wfc1"], np.float32)
    Wfc2 = np.asarray(raw["Wfc2"], np.float32)

    # conv1: M1[dj, r*28 + w, jp*16 + co] = W1[r, c, 0, co]  where w = 2*jp+dj+c
    M1 = np.zeros((2, 5, 28, N1), np.float32)
    for dj in range(2):
        for r in range(5):
            for jp in range(WP1):
                for c in range(5):
                    M1[dj, r, 2 * jp + dj + c, jp * C1:(jp + 1) * C1] = W1[r, c, 0, :]
    M1 = M1.reshape(2, K1, N1)                                        # (2, 140, 192)
    b1t = np.tile(np.asarray(raw["b1"], np.float32), WP1)[None, :]    # (1, 192)

    # conv2: M2[r*192 + jp*16 + ci, dj*128 + jp2*32 + co] = W2[r, c, ci, co],
    #        with jp = 2*jp2 + dj + c   (dj-major column layout -> kernel slices)
    M2 = np.zeros((5, N1, 2, N2), np.float32)
    for r in range(5):
        for dj in range(2):
            for jp2 in range(WP2):
                for c in range(5):
                    jp = 2 * jp2 + dj + c
                    M2[r, jp * C1:(jp + 1) * C1, dj, jp2 * C2:(jp2 + 1) * C2] = W2[r, c, :, :]
    M2 = M2.reshape(K2, 2 * N2)                                       # (960, 256)
    b2t = np.tile(np.asarray(raw["b2"], np.float32), WP2)[None, :]    # (1, 128)

    # fc1: rows permuted from PyTorch NCHW flatten (co*16 + ip2*4 + jp2) to the
    # kernel-native lane order (ip2*128 + jp2*32 + co), then flattened (512, 64).
    P = np.zeros((4, N2, 64), np.float32)
    for ip2 in range(4):
        for jp2 in range(WP2):
            for co in range(C2):
                P[ip2, jp2 * C2 + co, :] = Wfc1[co * 16 + ip2 * 4 + jp2, :]
    P = P.reshape(4 * N2, 64)                                         # (512, 64)

    Wfc2p = np.zeros((64, 128), np.float32)
    Wfc2p[:, :10] = Wfc2
    bfc2p = np.zeros((1, 128), np.float32)
    bfc2p[0, :10] = np.asarray(raw["bfc2"], np.float32)

    bf = jnp.bfloat16
    return {
        "m1": jnp.asarray(M1, bf), "b1t": jnp.asarray(b1t, jnp.float32),
        "m2": jnp.asarray(M2, bf), "b2t": jnp.asarray(b2t, jnp.float32),
        "wfc1": jnp.asarray(P, bf),
        "bfc1": jnp.asarray(raw["bfc1"], jnp.float32).reshape(1, 64),
        "wfc2": jnp.asarray(Wfc2p, bf), "bfc2": jnp.asarray(bfc2p, jnp.float32),
    }


# ---------------------------------------------------------------------------
# Forward pass (matches CNN.forward semantics)
# ---------------------------------------------------------------------------
def cnn_forward(x, kparams, batch_tile=TB):
    B = x.shape[0]
    # effective tile: multiple of 8, capped by batch_tile, no useless padding
    tb = max(8, min(batch_tile, ((B + 7) // 8) * 8))
    nb = pl.cdiv(B, tb)
    Bp = nb * tb

    img = x.reshape(B, 28, 28)
    if Bp != B:
        img = jnp.pad(img, ((0, Bp - B), (0, 0), (0, 0)))
    # Pure reordering (no duplication), shipped bf16: (B,28,28) -> (4,7,Bp,28)
    # with xq[q, t, n, w] = image[n, 4*t + q, w].
    xq = jnp.transpose(img.reshape(Bp, 7, 4, 28), (2, 1, 0, 3)).astype(jnp.bfloat16)

    out = pl.pallas_call(
        cnn_fused_kernel,
        out_shape=jax.ShapeDtypeStruct((Bp, 128), jnp.float32),
        grid=(nb,),
        in_specs=[
            pl.BlockSpec((4, 7, tb, 28), lambda b: (0, 0, b, 0)),
            pl.BlockSpec((2, K1, N1), lambda b: (0, 0, 0)),
            pl.BlockSpec((1, N1), lambda b: (0, 0)),
            pl.BlockSpec((K2, 2 * N2), lambda b: (0, 0)),
            pl.BlockSpec((1, N2), lambda b: (0, 0)),
            pl.BlockSpec((4 * N2, 64), lambda b: (0, 0)),
            pl.BlockSpec((1, 64), lambda b: (0, 0)),
            pl.BlockSpec((64, 128), lambda b: (0, 0)),
            pl.BlockSpec((1, 128), lambda b: (0, 0)),
        ],
        out_specs=pl.BlockSpec((tb, 128), lambda b: (b, 0)),
        scratch_shapes=[
            pltpu.VMEM((24, tb, K1), jnp.bfloat16),   # conv1 deep-K LHS assembly
            pltpu.VMEM((8, tb, K2), jnp.bfloat16),    # conv2 deep-K LHS assembly
        ],
        compiler_params=pltpu.CompilerParams(
            dimension_semantics=("parallel",),
            vmem_limit_bytes=48 * 1024 * 1024,
        ),
    )(xq, kparams["m1"], kparams["b1t"], kparams["m2"], kparams["b2t"],
      kparams["wfc1"], kparams["bfc1"], kparams["wfc2"], kparams["bfc2"])
    return out[:B, :10]


# ---------------------------------------------------------------------------
# Pure-JAX reference (same bf16 rounding points), used only for self-check
# ---------------------------------------------------------------------------
def reference_forward(x, raw):
    f32 = jnp.float32
    hi = jax.lax.Precision.HIGHEST
    rb = lambda t: t.astype(jnp.bfloat16).astype(f32)
    B = x.shape[0]
    dn = ("NHWC", "HWIO", "NHWC")

    h = x.reshape(B, 28, 28, 1)
    h = jax.lax.conv_general_dilated(rb(h), rb(raw["W1"]), (1, 1), "VALID",
                                     dimension_numbers=dn, precision=hi)
    h = jnp.maximum(h + raw["b1"], 0.0)
    h = h.reshape(B, 12, 2, 12, 2, C1).max(axis=(2, 4))
    h = jax.lax.conv_general_dilated(rb(h), rb(raw["W2"]), (1, 1), "VALID",
                                     dimension_numbers=dn, precision=hi)
    h = jnp.maximum(h + raw["b2"], 0.0)
    h = h.reshape(B, 4, 2, 4, 2, C2).max(axis=(2, 4))
    flat = jnp.transpose(h, (0, 3, 1, 2)).reshape(B, 512)   # NCHW flatten order
    z = jnp.dot(rb(flat), rb(raw["Wfc1"]), precision=hi) + raw["bfc1"]
    z = jnp.maximum(z, 0.0)
    return jnp.dot(rb(z), rb(raw["Wfc2"]), precision=hi) + raw["bfc2"]


if __name__ == "__main__":
    key = jax.random.PRNGKey(0)
    k_param, k_x = jax.random.split(key)
    raw = init_raw_params(k_param)
    kparams = prepare_kernel_params(raw)

    fwd = jax.jit(cnn_forward)

    # Small batch (B < tile): exercises the padded-tile path.
    x_small = jax.random.normal(k_x, (2, 784), jnp.float32)   # viewed as (B,1,28,28)
    out_small = jax.block_until_ready(fwd(x_small, kparams))
    assert out_small.shape == (2, 10) and out_small.dtype == jnp.float32
    err_small = float(jnp.max(jnp.abs(out_small - reference_forward(x_small, raw))))
    assert err_small < 5e-3, f"mismatch vs reference (B=2): {err_small}"

    # Multi-tile batch (B > tile and not a multiple of it).
    x_big = jax.random.normal(jax.random.PRNGKey(1), (200, 784), jnp.float32)
    out_big = jax.block_until_ready(fwd(x_big, kparams))
    assert out_big.shape == (200, 10)
    err_big = float(jnp.max(jnp.abs(out_big - reference_forward(x_big, raw))))
    assert err_big < 5e-3, f"mismatch vs reference (B=200): {err_big}"

    print("KERNEL_OK")
</pallas_src>

<mosaic_0001>
module attributes {stable_mosaic.version = 11 : i64} {
  func.func @cnn_fused_kernel(%arg0: i32, %arg1: memref<4x7x8x28xbf16, #tpu.memory_space<vmem>>, %arg2: memref<2x140x192xbf16, #tpu.memory_space<vmem>>, %arg3: memref<1x192xf32, #tpu.memory_space<vmem>>, %arg4: memref<960x256xbf16, #tpu.memory_space<vmem>>, %arg5: memref<1x128xf32, #tpu.memory_space<vmem>>, %arg6: memref<512x64xbf16, #tpu.memory_space<vmem>>, %arg7: memref<1x64xf32, #tpu.memory_space<vmem>>, %arg8: memref<64x128xbf16, #tpu.memory_space<vmem>>, %arg9: memref<1x128xf32, #tpu.memory_space<vmem>>, %arg10: memref<8x128xf32, #tpu.memory_space<vmem>>, %arg11: memref<24x8x140xbf16, #tpu.memory_space<vmem>>, %arg12: memref<8x8x960xbf16, #tpu.memory_space<vmem>>) attributes {dimension_semantics = [#tpu.dimension_semantics<parallel>], iteration_bounds = array<i64: 1>, scalar_prefetch = 0 : i64, scratch_operands = 2 : i64, tpu.core_type = #tpu.core_type<tc>, window_params = [{transform_indices = @transform_0, window_bounds = array<i64: 4, 7, 8, 28>}, {pipeline_mode = #tpu.pipeline_mode<synchronous>, transform_indices = @transform_1, window_bounds = array<i64: 2, 140, 192>}, {pipeline_mode = #tpu.pipeline_mode<synchronous>, transform_indices = @transform_2, window_bounds = array<i64: 1, 192>}, {pipeline_mode = #tpu.pipeline_mode<synchronous>, transform_indices = @transform_3, window_bounds = array<i64: 960, 256>}, {pipeline_mode = #tpu.pipeline_mode<synchronous>, transform_indices = @transform_4, window_bounds = array<i64: 1, 128>}, {pipeline_mode = #tpu.pipeline_mode<synchronous>, transform_indices = @transform_5, window_bounds = array<i64: 512, 64>}, {pipeline_mode = #tpu.pipeline_mode<synchronous>, transform_indices = @transform_6, window_bounds = array<i64: 1, 64>}, {pipeline_mode = #tpu.pipeline_mode<synchronous>, transform_indices = @transform_7, window_bounds = array<i64: 64, 128>}, {pipeline_mode = #tpu.pipeline_mode<synchronous>, transform_indices = @transform_8, window_bounds = array<i64: 1, 128>}, {transform_indices = @transform_9, window_bounds = array<i64: 8, 128>}]} {
    %c0 = arith.constant 0 : index
    %c0_0 = arith.constant 0 : index
    %c0_1 = arith.constant 0 : index
    %c0_2 = arith.constant 0 : index
    %0 = vector.load %arg1[%c0, %c0_0, %c0_1, %c0_2] : memref<4x7x8x28xbf16, #tpu.memory_space<vmem>>, vector<1x6x8x28xbf16>
    %1 = vector.shape_cast %0 : vector<1x6x8x28xbf16> to vector<6x8x28xbf16>
    %c0_3 = arith.constant 0 : index
    %c0_4 = arith.constant 0 : index
    %c0_5 = arith.constant 0 : index
    %2 = vector.load %arg11[%c0_3, %c0_4, %c0_5] : memref<24x8x140xbf16, #tpu.memory_space<vmem>>, vector<6x8x28xbf16>
    tpu.vector_store %arg11[%c0_3, %c0_4, %c0_5], %1 {strides = array<i32>} : memref<24x8x140xbf16, #tpu.memory_space<vmem>>, vector<6x8x28xbf16>,
    %c2 = arith.constant 2 : index
    %c0_6 = arith.constant 0 : index
    %c0_7 = arith.constant 0 : index
    %c0_8 = arith.constant 0 : index
    %3 = vector.load %arg1[%c2, %c0_6, %c0_7, %c0_8] : memref<4x7x8x28xbf16, #tpu.memory_space<vmem>>, vector<1x6x8x28xbf16>
    %4 = vector.shape_cast %3 : vector<1x6x8x28xbf16> to vector<6x8x28xbf16>
    %c6 = arith.constant 6 : index
    %c0_9 = arith.constant 0 : index
    %c0_10 = arith.constant 0 : index
    %5 = vector.load %arg11[%c6, %c0_9, %c0_10] : memref<24x8x140xbf16, #tpu.memory_space<vmem>>, vector<6x8x28xbf16>
    tpu.vector_store %arg11[%c6, %c0_9, %c0_10], %4 {strides = array<i32>} : memref<24x8x140xbf16, #tpu.memory_space<vmem>>, vector<6x8x28xbf16>,
    %c1 = arith.constant 1 : index
    %c0_11 = arith.constant 0 : index
    %c0_12 = arith.constant 0 : index
    %c0_13 = arith.constant 0 : index
    %6 = vector.load %arg1[%c1, %c0_11, %c0_12, %c0_13] : memref<4x7x8x28xbf16, #tpu.memory_space<vmem>>, vector<1x6x8x28xbf16>
    %7 = vector.shape_cast %6 : vector<1x6x8x28xbf16> to vector<6x8x28xbf16>
    %c12 = arith.constant 12 : index
    %c0_14 = arith.constant 0 : index
    %c0_15 = arith.constant 0 : index
    %8 = vector.load %arg11[%c12, %c0_14, %c0_15] : memref<24x8x140xbf16, #tpu.memory_space<vmem>>, vector<6x8x28xbf16>
    tpu.vector_store %arg11[%c12, %c0_14, %c0_15], %7 {strides = array<i32>} : memref<24x8x140xbf16, #tpu.memory_space<vmem>>, vector<6x8x28xbf16>,
    %c3 = arith.constant 3 : index
    %c0_16 = arith.constant 0 : index
    %c0_17 = arith.constant 0 : index
    %c0_18 = arith.constant 0 : index
    %9 = vector.load %arg1[%c3, %c0_16, %c0_17, %c0_18] : memref<4x7x8x28xbf16, #tpu.memory_space<vmem>>, vector<1x6x8x28xbf16>
    %10 = vector.shape_cast %9 : vector<1x6x8x28xbf16> to vector<6x8x28xbf16>
    %c18 = arith.constant 18 : index
    %c0_19 = arith.constant 0 : index
    %c0_20 = arith.constant 0 : index
    %11 = vector.load %arg11[%c18, %c0_19, %c0_20] : memref<24x8x140xbf16, #tpu.memory_space<vmem>>, vector<6x8x28xbf16>
    tpu.vector_store %arg11[%c18, %c0_19, %c0_20], %10 {strides = array<i32>} : memref<24x8x140xbf16, #tpu.memory_space<vmem>>, vector<6x8x28xbf16>,
    %c1_21 = arith.constant 1 : index
    %c0_22 = arith.constant 0 : index
    %c0_23 = arith.constant 0 : index
    %c0_24 = arith.constant 0 : index
    %12 = vector.load %arg1[%c1_21, %c0_22, %c0_23, %c0_24] : memref<4x7x8x28xbf16, #tpu.memory_space<vmem>>, vector<1x6x8x28xbf16>
    %13 = vector.shape_cast %12 : vector<1x6x8x28xbf16> to vector<6x8x28xbf16>
    %c0_25 = arith.constant 0 : index
    %c0_26 = arith.constant 0 : index
    %c28 = arith.constant 28 : index
    %14 = vector.load %arg11[%c0_25, %c0_26, %c28] : memref<24x8x140xbf16, #tpu.memory_space<vmem>>, vector<6x8x28xbf16>
    tpu.vector_store %arg11[%c0_25, %c0_26, %c28], %13 {strides = array<i32>} : memref<24x8x140xbf16, #tpu.memory_space<vmem>>, vector<6x8x28xbf16>,
    %c3_27 = arith.constant 3 : index
    %c0_28 = arith.constant 0 : index
    %c0_29 = arith.constant 0 : index
    %c0_30 = arith.constant 0 : index
    %15 = vector.load %arg1[%c3_27, %c0_28, %c0_29, %c0_30] : memref<4x7x8x28xbf16, #tpu.memory_space<vmem>>, vector<1x6x8x28xbf16>
    %16 = vector.shape_cast %15 : vector<1x6x8x28xbf16> to vector<6x8x28xbf16>
    %c6_31 = arith.constant 6 : index
    %c0_32 = arith.constant 0 : index
    %c28_33 = arith.constant 28 : index
    %17 = vector.load %arg11[%c6_31, %c0_32, %c28_33] : memref<24x8x140xbf16, #tpu.memory_space<vmem>>, vector<6x8x28xbf16>
    tpu.vector_store %arg11[%c6_31, %c0_32, %c28_33], %16 {strides = array<i32>} : memref<24x8x140xbf16, #tpu.memory_space<vmem>>, vector<6x8x28xbf16>,
    %c2_34 = arith.constant 2 : index
    %c0_35 = arith.constant 0 : index
    %c0_36 = arith.constant 0 : index
    %c0_37 = arith.constant 0 : index
    %18 = vector.load %arg1[%c2_34, %c0_35, %c0_36, %c0_37] : memref<4x7x8x28xbf16, #tpu.memory_space<vmem>>, vector<1x6x8x28xbf16>
    %19 = vector.shape_cast %18 : vector<1x6x8x28xbf16> to vector<6x8x28xbf16>
    %c12_38 = arith.constant 12 : index
    %c0_39 = arith.constant 0 : index
    %c28_40 = arith.constant 28 : index
    %20 = vector.load %arg11[%c12_38, %c0_39, %c28_40] : memref<24x8x140xbf16, #tpu.memory_space<vmem>>, vector<6x8x28xbf16>
    tpu.vector_store %arg11[%c12_38, %c0_39, %c28_40], %19 {strides = array<i32>} : memref<24x8x140xbf16, #tpu.memory_space<vmem>>, vector<6x8x28xbf16>,
    %c0_41 = arith.constant 0 : index
    %c1_42 = arith.constant 1 : index
    %c0_43 = arith.constant 0 : index
    %c0_44 = arith.constant 0 : index
    %21 = vector.load %arg1[%c0_41, %c1_42, %c0_43, %c0_44] : memref<4x7x8x28xbf16, #tpu.memory_space<vmem>>, vector<1x6x8x28xbf16>
    %22 = vector.shape_cast %21 : vector<1x6x8x28xbf16> to vector<6x8x28xbf16>
    %c18_45 = arith.constant 18 : index
    %c0_46 = arith.constant 0 : index
    %c28_47 = arith.constant 28 : index
    %23 = vector.load %arg11[%c18_45, %c0_46, %c28_47] : memref<24x8x140xbf16, #tpu.memory_space<vmem>>, vector<6x8x28xbf16>
    tpu.vector_store %arg11[%c18_45, %c0_46, %c28_47], %22 {strides = array<i32>} : memref<24x8x140xbf16, #tpu.memory_space<vmem>>, vector<6x8x28xbf16>,
    %c2_48 = arith.constant 2 : index
    %c0_49 = arith.constant 0 : index
    %c0_50 = arith.constant 0 : index
    %c0_51 = arith.constant 0 : index
    %24 = vector.load %arg1[%c2_48, %c0_49, %c0_50, %c0_51] : memref<4x7x8x28xbf16, #tpu.memory_space<vmem>>, vector<1x6x8x28xbf16>
    %25 = vector.shape_cast %24 : vector<1x6x8x28xbf16> to vector<6x8x28xbf16>
    %c0_52 = arith.constant 0 : index
    %c0_53 = arith.constant 0 : index
    %c56 = arith.constant 56 : index
    %26 = vector.load %arg11[%c0_52, %c0_53, %c56] : memref<24x8x140xbf16, #tpu.memory_space<vmem>>, vector<6x8x28xbf16>
    tpu.vector_store %arg11[%c0_52, %c0_53, %c56], %25 {strides = array<i32>} : memref<24x8x140xbf16, #tpu.memory_space<vmem>>, vector<6x8x28xbf16>,
    %c0_54 = arith.constant 0 : index
    %c1_55 = arith.constant 1 : index
    %c0_56 = arith.constant 0 : index
    %c0_57 = arith.constant 0 : index
    %27 = vector.load %arg1[%c0_54, %c1_55, %c0_56, %c0_57] : memref<4x7x8x28xbf16, #tpu.memory_space<vmem>>, vector<1x6x8x28xbf16>
    %28 = vector.shape_cast %27 : vector<1x6x8x28xbf16> to vector<6x8x28xbf16>
    %c6_58 = arith.constant 6 : index
    %c0_59 = arith.constant 0 : index
    %c56_60 = arith.constant 56 : index
    %29 = vector.load %arg11[%c6_58, %c0_59, %c56_60] : memref<24x8x140xbf16, #tpu.memory_space<vmem>>, vector<6x8x28xbf16>
    tpu.vector_store %arg11[%c6_58, %c0_59, %c56_60], %28 {strides = array<i32>} : memref<24x8x140xbf16, #tpu.memory_space<vmem>>, vector<6x8x28xbf16>,
    %c3_61 = arith.constant 3 : index
    %c0_62 = arith.constant 0 : index
    %c0_63 = arith.constant 0 : index
    %c0_64 = arith.constant 0 : index
    %30 = vector.load %arg1[%c3_61, %c0_62, %c0_63, %c0_64] : memref<4x7x8x28xbf16, #tpu.memory_space<vmem>>, vector<1x6x8x28xbf16>
    %31 = vector.shape_cast %30 : vector<1x6x8x28xbf16> to vector<6x8x28xbf16>
    %c12_65 = arith.constant 12 : index
    %c0_66 = arith.constant 0 : index
    %c56_67 = arith.constant 56 : index
    %32 = vector.load %arg11[%c12_65, %c0_66, %c56_67] : memref<24x8x140xbf16, #tpu.memory_space<vmem>>, vector<6x8x28xbf16>
    tpu.vector_store %arg11[%c12_65, %c0_66, %c56_67], %31 {strides = array<i32>} : memref<24x8x140xbf16, #tpu.memory_space<vmem>>, vector<6x8x28xbf16>,
    %c1_68 = arith.constant 1 : index
    %c1_69 = arith.constant 1 : index
    %c0_70 = arith.constant 0 : index
    %c0_71 = arith.constant 0 : index
    %33 = vector.load %arg1[%c1_68, %c1_69, %c0_70, %c0_71] : memref<4x7x8x28xbf16, #tpu.memory_space<vmem>>, vector<1x6x8x28xbf16>
    %34 = vector.shape_cast %33 : vector<1x6x8x28xbf16> to vector<6x8x28xbf16>
    %c18_72 = arith.constant 18 : index
    %c0_73 = arith.constant 0 : index
    %c56_74 = arith.constant 56 : index
    %35 = vector.load %arg11[%c18_72, %c0_73, %c56_74] : memref<24x8x140xbf16, #tpu.memory_space<vmem>>, vector<6x8x28xbf16>
    tpu.vector_store %arg11[%c18_72, %c0_73, %c56_74], %34 {strides = array<i32>} : memref<24x8x140xbf16, #tpu.memory_space<vmem>>, vector<6x8x28xbf16>,
    %c3_75 = arith.constant 3 : index
    %c0_76 = arith.constant 0 : index
    %c0_77 = arith.constant 0 : index
    %c0_78 = arith.constant 0 : index
    %36 = vector.load %arg1[%c3_75, %c0_76, %c0_77, %c0_78] : memref<4x7x8x28xbf16, #tpu.memory_space<vmem>>, vector<1x6x8x28xbf16>
    %37 = vector.shape_cast %36 : vector<1x6x8x28xbf16> to vector<6x8x28xbf16>
    %c0_79 = arith.constant 0 : index
    %c0_80 = arith.constant 0 : index
    %c84 = arith.constant 84 : index
    %38 = vector.load %arg11[%c0_79, %c0_80, %c84] : memref<24x8x140xbf16, #tpu.memory_space<vmem>>, vector<6x8x28xbf16>
    tpu.vector_store %arg11[%c0_79, %c0_80, %c84], %37 {strides = array<i32>} : memref<24x8x140xbf16, #tpu.memory_space<vmem>>, vector<6x8x28xbf16>,
    %c1_81 = arith.constant 1 : index
    %c1_82 = arith.constant 1 : index
    %c0_83 = arith.constant 0 : index
    %c0_84 = arith.constant 0 : index
    %39 = vector.load %arg1[%c1_81, %c1_82, %c0_83, %c0_84] : memref<4x7x8x28xbf16, #tpu.memory_space<vmem>>, vector<1x6x8x28xbf16>
    %40 = vector.shape_cast %39 : vector<1x6x8x28xbf16> to vector<6x8x28xbf16>
    %c6_85 = arith.constant 6 : index
    %c0_86 = arith.constant 0 : index
    %c84_87 = arith.constant 84 : index
    %41 = vector.load %arg11[%c6_85, %c0_86, %c84_87] : memref<24x8x140xbf16, #tpu.memory_space<vmem>>, vector<6x8x28xbf16>
    tpu.vector_store %arg11[%c6_85, %c0_86, %c84_87], %40 {strides = array<i32>} : memref<24x8x140xbf16, #tpu.memory_space<vmem>>, vector<6x8x28xbf16>,
    %c0_88 = arith.constant 0 : index
    %c1_89 = arith.constant 1 : index
    %c0_90 = arith.constant 0 : index
    %c0_91 = arith.constant 0 : index
    %42 = vector.load %arg1[%c0_88, %c1_89, %c0_90, %c0_91] : memref<4x7x8x28xbf16, #tpu.memory_space<vmem>>, vector<1x6x8x28xbf16>
    %43 = vector.shape_cast %42 : vector<1x6x8x28xbf16> to vector<6x8x28xbf16>
    %c12_92 = arith.constant 12 : index
    %c0_93 = arith.constant 0 : index
    %c84_94 = arith.constant 84 : index
    %44 = vector.load %arg11[%c12_92, %c0_93, %c84_94] : memref<24x8x140xbf16, #tpu.memory_space<vmem>>, vector<6x8x28xbf16>
    tpu.vector_store %arg11[%c12_92, %c0_93, %c84_94], %43 {strides = array<i32>} : memref<24x8x140xbf16, #tpu.memory_space<vmem>>, vector<6x8x28xbf16>,
    %c2_95 = arith.constant 2 : index
    %c1_96 = arith.constant 1 : index
    %c0_97 = arith.constant 0 : index
    %c0_98 = arith.constant 0 : index
    %45 = vector.load %arg1[%c2_95, %c1_96, %c0_97, %c0_98] : memref<4x7x8x28xbf16, #tpu.memory_space<vmem>>, vector<1x6x8x28xbf16>
    %46 = vector.shape_cast %45 : vector<1x6x8x28xbf16> to vector<6x8x28xbf16>
    %c18_99 = arith.constant 18 : index
    %c0_100 = arith.constant 0 : index
    %c84_101 = arith.constant 84 : index
    %47 = vector.load %arg11[%c18_99, %c0_100, %c84_101] : memref<24x8x140xbf16, #tpu.memory_space<vmem>>, vector<6x8x28xbf16>
    tpu.vector_store %arg11[%c18_99, %c0_100, %c84_101], %46 {strides = array<i32>} : memref<24x8x140xbf16, #tpu.memory_space<vmem>>, vector<6x8x28xbf16>,
    %c0_102 = arith.constant 0 : index
    %c1_103 = arith.constant 1 : index
    %c0_104 = arith.constant 0 : index
    %c0_105 = arith.constant 0 : index
    %48 = vector.load %arg1[%c0_102, %c1_103, %c0_104, %c0_105] : memref<4x7x8x28xbf16, #tpu.memory_space<vmem>>, vector<1x6x8x28xbf16>
    %49 = vector.shape_cast %48 : vector<1x6x8x28xbf16> to vector<6x8x28xbf16>
    %c0_106 = arith.constant 0 : index
    %c0_107 = arith.constant 0 : index
    %c112 = arith.constant 112 : index
    %50 = vector.load %arg11[%c0_106, %c0_107, %c112] : memref<24x8x140xbf16, #tpu.memory_space<vmem>>, vector<6x8x28xbf16>
    tpu.vector_store %arg11[%c0_106, %c0_107, %c112], %49 {strides = array<i32>} : memref<24x8x140xbf16, #tpu.memory_space<vmem>>, vector<6x8x28xbf16>,
    %c2_108 = arith.constant 2 : index
    %c1_109 = arith.constant 1 : index
    %c0_110 = arith.constant 0 : index
    %c0_111 = arith.constant 0 : index
    %51 = vector.load %arg1[%c2_108, %c1_109, %c0_110, %c0_111] : memref<4x7x8x28xbf16, #tpu.memory_space<vmem>>, vector<1x6x8x28xbf16>
    %52 = vector.shape_cast %51 : vector<1x6x8x28xbf16> to vector<6x8x28xbf16>
    %c6_112 = arith.constant 6 : index
    %c0_113 = arith.constant 0 : index
    %c112_114 = arith.constant 112 : index
    %53 = vector.load %arg11[%c6_112, %c0_113, %c112_114] : memref<24x8x140xbf16, #tpu.memory_space<vmem>>, vector<6x8x28xbf16>
    tpu.vector_store %arg11[%c6_112, %c0_113, %c112_114], %52 {strides = array<i32>} : memref<24x8x140xbf16, #tpu.memory_space<vmem>>, vector<6x8x28xbf16>,
    %c1_115 = arith.constant 1 : index
    %c1_116 = arith.constant 1 : index
    %c0_117 = arith.constant 0 : index
    %c0_118 = arith.constant 0 : index
    %54 = vector.load %arg1[%c1_115, %c1_116, %c0_117, %c0_118] : memref<4x7x8x28xbf16, #tpu.memory_space<vmem>>, vector<1x6x8x28xbf16>
    %55 = vector.shape_cast %54 : vector<1x6x8x28xbf16> to vector<6x8x28xbf16>
    %c12_119 = arith.constant 12 : index
    %c0_120 = arith.constant 0 : index
    %c112_121 = arith.constant 112 : index
    %56 = vector.load %arg11[%c12_119, %c0_120, %c112_121] : memref<24x8x140xbf16, #tpu.memory_space<vmem>>, vector<6x8x28xbf16>
    tpu.vector_store %arg11[%c12_119, %c0_120, %c112_121], %55 {strides = array<i32>} : memref<24x8x140xbf16, #tpu.memory_space<vmem>>, vector<6x8x28xbf16>,
    %c3_122 = arith.constant 3 : index
    %c1_123 = arith.constant 1 : index
    %c0_124 = arith.constant 0 : index
    %c0_125 = arith.constant 0 : index
    %57 = vector.load %arg1[%c3_122, %c1_123, %c0_124, %c0_125] : memref<4x7x8x28xbf16, #tpu.memory_space<vmem>>, vector<1x6x8x28xbf16>
    %58 = vector.shape_cast %57 : vector<1x6x8x28xbf16> to vector<6x8x28xbf16>
    %c18_126 = arith.constant 18 : index
    %c0_127 = arith.constant 0 : index
    %c112_128 = arith.constant 112 : index
    %59 = vector.load %arg11[%c18_126, %c0_127, %c112_128] : memref<24x8x140xbf16, #tpu.memory_space<vmem>>, vector<6x8x28xbf16>
    tpu.vector_store %arg11[%c18_126, %c0_127, %c112_128], %58 {strides = array<i32>} : memref<24x8x140xbf16, #tpu.memory_space<vmem>>, vector<6x8x28xbf16>,
    %c0_129 = arith.constant 0 : index
    %c0_130 = arith.constant 0 : index
    %c0_131 = arith.constant 0 : index
    %60 = vector.load %arg11[%c0_129, %c0_130, %c0_131] : memref<24x8x140xbf16, #tpu.memory_space<vmem>>, vector<24x8x140xbf16>
    %61 = vector.shape_cast %60 : vector<24x8x140xbf16> to vector<192x140xbf16>
    %c0_132 = arith.constant 0 : index
    %c0_133 = arith.constant 0 : index
    %c0_134 = arith.constant 0 : index
    %62 = vector.load %arg2[%c0_132, %c0_133, %c0_134] : memref<2x140x192xbf16, #tpu.memory_space<vmem>>, vector<1x140x192xbf16>
    %63 = vector.shape_cast %62 : vector<1x140x192xbf16> to vector<140x192xbf16>
    %cst = arith.constant dense<0.000000e+00> : vector<192x192xf32>
    %64 = tpu.matmul %61, %63, %cst {dimension_numbers = #tpu.dot_dimension_numbers<[1], [0], [0], [1], [0, 0, 1, 1], [], []>} : vector<192x140xbf16>, vector<140x192xbf16>, vector<192x192xf32> -> vector<192x192xf32>
    %c1_135 = arith.constant 1 : index
    %c0_136 = arith.constant 0 : index
    %c0_137 = arith.constant 0 : index
    %65 = vector.load %arg2[%c1_135, %c0_136, %c0_137] : memref<2x140x192xbf16, #tpu.memory_space<vmem>>, vector<1x140x192xbf16>
    %66 = vector.shape_cast %65 : vector<1x140x192xbf16> to vector<140x192xbf16>
    %cst_138 = arith.constant dense<0.000000e+00> : vector<192x192xf32>
    %67 = tpu.matmul %61, %66, %cst_138 {dimension_numbers = #tpu.dot_dimension_numbers<[1], [0], [0], [1], [0, 0, 1, 1], [], []>} : vector<192x140xbf16>, vector<140x192xbf16>, vector<192x192xf32> -> vector<192x192xf32>
    %68 = arith.maximumf %64, %67 : vector<192x192xf32>
    %69 = vector.extract_strided_slice %68 {offsets = [0, 0], sizes = [96, 192], strides = [1, 1]} : vector<192x192xf32> to vector<96x192xf32>
    %70 = vector.extract_strided_slice %68 {offsets = [96, 0], sizes = [96, 192], strides = [1, 1]} : vector<192x192xf32> to vector<96x192xf32>
    %71 = arith.maximumf %69, %70 : vector<96x192xf32>
    %c0_139 = arith.constant 0 : index
    %c0_140 = arith.constant 0 : index
    %72 = vector.load %arg3[%c0_139, %c0_140] : memref<1x192xf32, #tpu.memory_space<vmem>>, vector<1x192xf32>
    %73 = vector.broadcast %72 : vector<1x192xf32> to vector<96x192xf32>
    %74 = arith.addf %71, %73 : vector<96x192xf32>
    %cst_141 = arith.constant 0.000000e+00 : f32
    %75 = vector.broadcast %cst_141 : f32 to vector<96x192xf32>
    %76 = arith.maximumf %74, %75 : vector<96x192xf32>
    %77 = arith.truncf %76 : vector<96x192xf32> to vector<96x192xbf16>
    %78 = vector.shape_cast %77 : vector<96x192xbf16> to vector<2x6x8x192xbf16>
    %79 = vector.extract_strided_slice %78 {offsets = [0, 0, 0, 0], sizes = [1, 4, 8, 192], strides = [1, 1, 1, 1]} : vector<2x6x8x192xbf16> to vector<1x4x8x192xbf16>
    %80 = vector.shape_cast %79 : vector<1x4x8x192xbf16> to vector<4x8x192xbf16>
    %c0_142 = arith.constant 0 : index
    %c0_143 = arith.constant 0 : index
    %c0_144 = arith.constant 0 : index
    %81 = vector.load %arg12[%c0_142, %c0_143, %c0_144] : memref<8x8x960xbf16, #tpu.memory_space<vmem>>, vector<4x8x192xbf16>
    tpu.vector_store %arg12[%c0_142, %c0_143, %c0_144], %80 {strides = array<i32>} : memref<8x8x960xbf16, #tpu.memory_space<vmem>>, vector<4x8x192xbf16>,
    %82 = vector.extract_strided_slice %78 {offsets = [1, 0, 0, 0], sizes = [1, 4, 8, 192], strides = [1, 1, 1, 1]} : vector<2x6x8x192xbf16> to vector<1x4x8x192xbf16>
    %83 = vector.shape_cast %82 : vector<1x4x8x192xbf16> to vector<4x8x192xbf16>
    %c4 = arith.constant 4 : index
    %c0_145 = arith.constant 0 : index
    %c0_146 = arith.constant 0 : index
    %84 = vector.load %arg12[%c4, %c0_145, %c0_146] : memref<8x8x960xbf16, #tpu.memory_space<vmem>>, vector<4x8x192xbf16>
    tpu.vector_store %arg12[%c4, %c0_145, %c0_146], %83 {strides = array<i32>} : memref<8x8x960xbf16, #tpu.memory_space<vmem>>, vector<4x8x192xbf16>,
    %85 = vector.extract_strided_slice %78 {offsets = [1, 0, 0, 0], sizes = [1, 4, 8, 192], strides = [1, 1, 1, 1]} : vector<2x6x8x192xbf16> to vector<1x4x8x192xbf16>
    %86 = vector.shape_cast %85 : vector<1x4x8x192xbf16> to vector<4x8x192xbf16>
    %c0_147 = arith.constant 0 : index
    %c0_148 = arith.constant 0 : index
    %c192 = arith.constant 192 : index
    %87 = vector.load %arg12[%c0_147, %c0_148, %c192] : memref<8x8x960xbf16, #tpu.memory_space<vmem>>, vector<4x8x192xbf16>
    tpu.vector_store %arg12[%c0_147, %c0_148, %c192], %86 {strides = array<i32>} : memref<8x8x960xbf16, #tpu.memory_space<vmem>>, vector<4x8x192xbf16>,
    %88 = vector.extract_strided_slice %78 {offsets = [0, 1, 0, 0], sizes = [1, 4, 8, 192], strides = [1, 1, 1, 1]} : vector<2x6x8x192xbf16> to vector<1x4x8x192xbf16>
    %89 = vector.shape_cast %88 : vector<1x4x8x192xbf16> to vector<4x8x192xbf16>
    %c4_149 = arith.constant 4 : index
    %c0_150 = arith.constant 0 : index
    %c192_151 = arith.constant 192 : index
    %90 = vector.load %arg12[%c4_149, %c0_150, %c192_151] : memref<8x8x960xbf16, #tpu.memory_space<vmem>>, vector<4x8x192xbf16>
    tpu.vector_store %arg12[%c4_149, %c0_150, %c192_151], %89 {strides = array<i32>} : memref<8x8x960xbf16, #tpu.memory_space<vmem>>, vector<4x8x192xbf16>,
    %91 = vector.extract_strided_slice %78 {offsets = [0, 1, 0, 0], sizes = [1, 4, 8, 192], strides = [1, 1, 1, 1]} : vector<2x6x8x192xbf16> to vector<1x4x8x192xbf16>
    %92 = vector.shape_cast %91 : vector<1x4x8x192xbf16> to vector<4x8x192xbf16>
    %c0_152 = arith.constant 0 : index
    %c0_153 = arith.constant 0 : index
    %c384 = arith.constant 384 : index
    %93 = vector.load %arg12[%c0_152, %c0_153, %c384] : memref<8x8x960xbf16, #tpu.memory_space<vmem>>, vector<4x8x192xbf16>
    tpu.vector_store %arg12[%c0_152, %c0_153, %c384], %92 {strides = array<i32>} : memref<8x8x960xbf16, #tpu.memory_space<vmem>>, vector<4x8x192xbf16>,
    %94 = vector.extract_strided_slice %78 {offsets = [1, 1, 0, 0], sizes = [1, 4, 8, 192], strides = [1, 1, 1, 1]} : vector<2x6x8x192xbf16> to vector<1x4x8x192xbf16>
    %95 = vector.shape_cast %94 : vector<1x4x8x192xbf16> to vector<4x8x192xbf16>
    %c4_154 = arith.constant 4 : index
    %c0_155 = arith.constant 0 : index
    %c384_156 = arith.constant 384 : index
    %96 = vector.load %arg12[%c4_154, %c0_155, %c384_156] : memref<8x8x960xbf16, #tpu.memory_space<vmem>>, vector<4x8x192xbf16>
    tpu.vector_store %arg12[%c4_154, %c0_155, %c384_156], %95 {strides = array<i32>} : memref<8x8x960xbf16, #tpu.memory_space<vmem>>, vector<4x8x192xbf16>,
    %97 = vector.extract_strided_slice %78 {offsets = [1, 1, 0, 0], sizes = [1, 4, 8, 192], strides = [1, 1, 1, 1]} : vector<2x6x8x192xbf16> to vector<1x4x8x192xbf16>
    %98 = vector.shape_cast %97 : vector<1x4x8x192xbf16> to vector<4x8x192xbf16>
    %c0_157 = arith.constant 0 : index
    %c0_158 = arith.constant 0 : index
    %c576 = arith.constant 576 : index
    %99 = vector.load %arg12[%c0_157, %c0_158, %c576] : memref<8x8x960xbf16, #tpu.memory_space<vmem>>, vector<4x8x192xbf16>
    tpu.vector_store %arg12[%c0_157, %c0_158, %c576], %98 {strides = array<i32>} : memref<8x8x960xbf16, #tpu.memory_space<vmem>>, vector<4x8x192xbf16>,
    %100 = vector.extract_strided_slice %78 {offsets = [0, 2, 0, 0], sizes = [1, 4, 8, 192], strides = [1, 1, 1, 1]} : vector<2x6x8x192xbf16> to vector<1x4x8x192xbf16>
    %101 = vector.shape_cast %100 : vector<1x4x8x192xbf16> to vector<4x8x192xbf16>
    %c4_159 = arith.constant 4 : index
    %c0_160 = arith.constant 0 : index
    %c576_161 = arith.constant 576 : index
    %102 = vector.load %arg12[%c4_159, %c0_160, %c576_161] : memref<8x8x960xbf16, #tpu.memory_space<vmem>>, vector<4x8x192xbf16>
    tpu.vector_store %arg12[%c4_159, %c0_160, %c576_161], %101 {strides = array<i32>} : memref<8x8x960xbf16, #tpu.memory_space<vmem>>, vector<4x8x192xbf16>,
    %103 = vector.extract_strided_slice %78 {offsets = [0, 2, 0, 0], sizes = [1, 4, 8, 192], strides = [1, 1, 1, 1]} : vector<2x6x8x192xbf16> to vector<1x4x8x192xbf16>
    %104 = vector.shape_cast %103 : vector<1x4x8x192xbf16> to vector<4x8x192xbf16>
    %c0_162 = arith.constant 0 : index
    %c0_163 = arith.constant 0 : index
    %c768 = arith.constant 768 : index
    %105 = vector.load %arg12[%c0_162, %c0_163, %c768] : memref<8x8x960xbf16, #tpu.memory_space<vmem>>, vector<4x8x192xbf16>
    tpu.vector_store %arg12[%c0_162, %c0_163, %c768], %104 {strides = array<i32>} : memref<8x8x960xbf16, #tpu.memory_space<vmem>>, vector<4x8x192xbf16>,
    %106 = vector.extract_strided_slice %78 {offsets = [1, 2, 0, 0], sizes = [1, 4, 8, 192], strides = [1, 1, 1, 1]} : vector<2x6x8x192xbf16> to vector<1x4x8x192xbf16>
    %107 = vector.shape_cast %106 : vector<1x4x8x192xbf16> to vector<4x8x192xbf16>
    %c4_164 = arith.constant 4 : index
    %c0_165 = arith.constant 0 : index
    %c768_166 = arith.constant 768 : index
    %108 = vector.load %arg12[%c4_164, %c0_165, %c768_166] : memref<8x8x960xbf16, #tpu.memory_space<vmem>>, vector<4x8x192xbf16>
    tpu.vector_store %arg12[%c4_164, %c0_165, %c768_166], %107 {strides = array<i32>} : memref<8x8x960xbf16, #tpu.memory_space<vmem>>, vector<4x8x192xbf16>,
    %c0_167 = arith.constant 0 : index
    %c0_168 = arith.constant 0 : index
    %c0_169 = arith.constant 0 : index
    %109 = vector.load %arg12[%c0_167, %c0_168, %c0_169] : memref<8x8x960xbf16, #tpu.memory_space<vmem>>, vector<8x8x960xbf16>
    %110 = vector.shape_cast %109 : vector<8x8x960xbf16> to vector<64x960xbf16>
    %c0_170 = arith.constant 0 : index
    %c0_171 = arith.constant 0 : index
    %111 = vector.load %arg4[%c0_170, %c0_171] : memref<960x256xbf16, #tpu.memory_space<vmem>>, vector<960x256xbf16>
    %cst_172 = arith.constant dense<0.000000e+00> : vector<64x256xf32>
    %112 = tpu.matmul %110, %111, %cst_172 {dimension_numbers = #tpu.dot_dimension_numbers<[1], [0], [0], [1], [0, 0, 1, 1], [], []>} : vector<64x960xbf16>, vector<960x256xbf16>, vector<64x256xf32> -> vector<64x256xf32>
    %113 = vector.extract_strided_slice %112 {offsets = [0, 0], sizes = [64, 128], strides = [1, 1]} : vector<64x256xf32> to vector<64x128xf32>
    %114 = vector.extract_strided_slice %112 {offsets = [0, 128], sizes = [64, 128], strides = [1, 1]} : vector<64x256xf32> to vector<64x128xf32>
    %115 = arith.maximumf %113, %114 : vector<64x128xf32>
    %116 = vector.extract_strided_slice %115 {offsets = [0, 0], sizes = [32, 128], strides = [1, 1]} : vector<64x128xf32> to vector<32x128xf32>
    %117 = vector.extract_strided_slice %115 {offsets = [32, 0], sizes = [32, 128], strides = [1, 1]} : vector<64x128xf32> to vector<32x128xf32>
    %118 = arith.maximumf %116, %117 : vector<32x128xf32>
    %c0_173 = arith.constant 0 : index
    %c0_174 = arith.constant 0 : index
    %119 = vector.load %arg5[%c0_173, %c0_174] : memref<1x128xf32, #tpu.memory_space<vmem>>, vector<1x128xf32>
    %120 = vector.broadcast %119 : vector<1x128xf32> to vector<32x128xf32>
    %121 = arith.addf %118, %120 : vector<32x128xf32>
    %cst_175 = arith.constant 0.000000e+00 : f32
    %122 = vector.broadcast %cst_175 : f32 to vector<32x128xf32>
    %123 = arith.maximumf %121, %122 : vector<32x128xf32>
    %124 = arith.truncf %123 : vector<32x128xf32> to vector<32x128xbf16>
    %125 = vector.shape_cast %124 : vector<32x128xbf16> to vector<4x8x128xbf16>
    %126 = vector.extract_strided_slice %125 {offsets = [0, 0, 0], sizes = [1, 8, 128], strides = [1, 1, 1]} : vector<4x8x128xbf16> to vector<1x8x128xbf16>
    %127 = vector.shape_cast %126 : vector<1x8x128xbf16> to vector<8x128xbf16>
    %128 = vector.extract_strided_slice %125 {offsets = [1, 0, 0], sizes = [1, 8, 128], strides = [1, 1, 1]} : vector<4x8x128xbf16> to vector<1x8x128xbf16>
    %129 = vector.shape_cast %128 : vector<1x8x128xbf16> to vector<8x128xbf16>
    %130 = vector.extract_strided_slice %125 {offsets = [2, 0, 0], sizes = [1, 8, 128], strides = [1, 1, 1]} : vector<4x8x128xbf16> to vector<1x8x128xbf16>
    %131 = vector.shape_cast %130 : vector<1x8x128xbf16> to vector<8x128xbf16>
    %132 = vector.extract_strided_slice %125 {offsets = [3, 0, 0], sizes = [1, 8, 128], strides = [1, 1, 1]} : vector<4x8x128xbf16> to vector<1x8x128xbf16>
    %133 = vector.shape_cast %132 : vector<1x8x128xbf16> to vector<8x128xbf16>
    %134 = tpu.concatenate %127, %129, %131, %133 in 1 : vector<8x128xbf16>, vector<8x128xbf16>, vector<8x128xbf16>, vector<8x128xbf16> -> vector<8x512xbf16>
    %c0_176 = arith.constant 0 : index
    %c0_177 = arith.constant 0 : index
    %135 = vector.load %arg6[%c0_176, %c0_177] : memref<512x64xbf16, #tpu.memory_space<vmem>>, vector<512x64xbf16>
    %cst_178 = arith.constant dense<0.000000e+00> : vector<8x64xf32>
    %136 = tpu.matmul %134, %135, %cst_178 {dimension_numbers = #tpu.dot_dimension_numbers<[1], [0], [0], [1], [0, 0, 1, 1], [], []>} : vector<8x512xbf16>, vector<512x64xbf16>, vector<8x64xf32> -> vector<8x64xf32>
    %c0_179 = arith.constant 0 : index
    %c0_180 = arith.constant 0 : index
    %137 = vector.load %arg7[%c0_179, %c0_180] : memref<1x64xf32, #tpu.memory_space<vmem>>, vector<1x64xf32>
    %138 = vector.broadcast %137 : vector<1x64xf32> to vector<8x64xf32>
    %139 = arith.addf %136, %138 : vector<8x64xf32>
    %cst_181 = arith.constant 0.000000e+00 : f32
    %140 = vector.broadcast %cst_181 : f32 to vector<8x64xf32>
    %141 = arith.maximumf %139, %140 : vector<8x64xf32>
    %142 = arith.truncf %141 : vector<8x64xf32> to vector<8x64xbf16>
    %c0_182 = arith.constant 0 : index
    %c0_183 = arith.constant 0 : index
    %143 = vector.load %arg8[%c0_182, %c0_183] : memref<64x128xbf16, #tpu.memory_space<vmem>>, vector<64x128xbf16>
    %cst_184 = arith.constant dense<0.000000e+00> : vector<8x128xf32>
    %144 = tpu.matmul %142, %143, %cst_184 {dimension_numbers = #tpu.dot_dimension_numbers<[1], [0], [0], [1], [0, 0, 1, 1], [], []>} : vector<8x64xbf16>, vector<64x128xbf16>, vector<8x128xf32> -> vector<8x128xf32>
    %c0_185 = arith.constant 0 : index
    %c0_186 = arith.constant 0 : index
    %145 = vector.load %arg9[%c0_185, %c0_186] : memref<1x128xf32, #tpu.memory_space<vmem>>, vector<1x128xf32>
    %146 = vector.broadcast %145 : vector<1x128xf32> to vector<8x128xf32>
    %147 = arith.addf %144, %146 : vector<8x128xf32>
    %c0_187 = arith.constant 0 : index
    %c0_188 = arith.constant 0 : index
    %148 = vector.load %arg10[%c0_187, %c0_188] : memref<8x128xf32, #tpu.memory_space<vmem>>, vector<8x128xf32>
    tpu.vector_store %arg10[%c0_187, %c0_188], %147 {strides = array<i32>} : memref<8x128xf32, #tpu.memory_space<vmem>>, vector<8x128xf32>,
    return
  }
  func.func @transform_0(%arg0: i32) -> (i32, i32, i32, i32) {
    %c0_i32 = arith.constant 0 : i32
    %c0_i32_0 = arith.constant 0 : i32
    %c0_i32_1 = arith.constant 0 : i32
    %c0_i32_2 = arith.constant 0 : i32
    return %c0_i32, %c0_i32_0, %arg0, %c0_i32_1 : i32, i32, i32, i32
  }
  func.func @transform_1(%arg0: i32) -> (i32, i32, i32) {
    %c0_i32 = arith.constant 0 : i32
    %c0_i32_0 = arith.constant 0 : i32
    %c0_i32_1 = arith.constant 0 : i32
    %c0_i32_2 = arith.constant 0 : i32
    return %c0_i32, %c0_i32_0, %c0_i32_1 : i32, i32, i32
  }
  func.func @transform_2(%arg0: i32) -> (i32, i32) {
    %c0_i32 = arith.constant 0 : i32
    %c0_i32_0 = arith.constant 0 : i32
    %c0_i32_1 = arith.constant 0 : i32
    return %c0_i32, %c0_i32_0 : i32, i32
  }
  func.func @transform_3(%arg0: i32) -> (i32, i32) {
    %c0_i32 = arith.constant 0 : i32
    %c0_i32_0 = arith.constant 0 : i32
    %c0_i32_1 = arith.constant 0 : i32
    return %c0_i32, %c0_i32_0 : i32, i32
  }
  func.func @transform_4(%arg0: i32) -> (i32, i32) {
    %c0_i32 = arith.constant 0 : i32
    %c0_i32_0 = arith.constant 0 : i32
    %c0_i32_1 = arith.constant 0 : i32
    return %c0_i32, %c0_i32_0 : i32, i32
  }
  func.func @transform_5(%arg0: i32) -> (i32, i32) {
    %c0_i32 = arith.constant 0 : i32
    %c0_i32_0 = arith.constant 0 : i32
    %c0_i32_1 = arith.constant 0 : i32
    return %c0_i32, %c0_i32_0 : i32, i32
  }
  func.func @transform_6(%arg0: i32) -> (i32, i32) {
    %c0_i32 = arith.constant 0 : i32
    %c0_i32_0 = arith.constant 0 : i32
    %c0_i32_1 = arith.constant 0 : i32
    return %c0_i32, %c0_i32_0 : i32, i32
  }
  func.func @transform_7(%arg0: i32) -> (i32, i32) {
    %c0_i32 = arith.constant 0 : i32
    %c0_i32_0 = arith.constant 0 : i32
    %c0_i32_1 = arith.constant 0 : i32
    return %c0_i32, %c0_i32_0 : i32, i32
  }
  func.func @transform_8(%arg0: i32) -> (i32, i32) {
    %c0_i32 = arith.constant 0 : i32
    %c0_i32_0 = arith.constant 0 : i32
    %c0_i32_1 = arith.constant 0 : i32
    return %c0_i32, %c0_i32_0 : i32, i32
  }
  func.func @transform_9(%arg0: i32) -> (i32, i32) {
    %c0_i32 = arith.constant 0 : i32
    %c0_i32_0 = arith.constant 0 : i32
    return %arg0, %c0_i32 : i32, i32
  }
}

</mosaic_0001>

<bundles_post_ra>
// kernel: cnn_forward.1
= control target key start
LH: loop header
LB: loop body
LE: loop exit
PB: predicated region body
PF: predicated region fallthrough
CT: control target
= control target key end

     0   :  { %s4300_s13 = smov 112   ;;  %s4301_s14 = smov 28   ;;  %vm39_vm0 = vcmask 224256   ;;  %vm998_vm1 = vcmask 1045504   ;;  %vm118_vm2 = vcmask 453856   ;;  %vm264_vm3 = vcmask 683456   ;;  %s6068_s0 = inlined_call_operand.vmem [shape: bf16[4,7,8,28], index: 0, kind: input, shape index: {}]   ;;  %s6069_s1 = inlined_call_operand.vmem [shape: bf16[2,140,192], index: 1, kind: input, shape index: {}]   ;;  %s6070_s3 = inlined_call_operand.vmem [shape: bf16[960,256], index: 3, kind: input, shape index: {}]   ;;  %s6071_s2 = inlined_call_operand.vmem [shape: f32[1,192], index: 2, kind: input, shape index: {}]   ;;  %s6072_s5 = inlined_call_operand.vmem [shape: bf16[512,64], index: 5, kind: input, shape index: {}]   ;;  %s6073_s4 = inlined_call_operand.vmem [shape: f32[1,128], index: 4, kind: input, shape index: {}]   ;;  %s6074_s7 = inlined_call_operand.vmem [shape: bf16[64,128], index: 7, kind: input, shape index: {}]   ;;  %s6075_s6 = inlined_call_operand.vmem [shape: f32[1,64], index: 6, kind: input, shape index: {}]   ;;  %s6076_s8 = inlined_call_operand.vmem [shape: f32[1,128], index: 8, kind: input, shape index: {}]   ;;  %s6077_s9 = inlined_call_operand.vmem [shape: f32[8,128], index: 9, kind: output, shape index: {}]  }
   0x1   :  { %v3520_v0 = vld [vmem:[%s6068_s0 + $0x30] sm:$0xf]  ;;  %v3448_v1 = vld [vmem:[%s6068_s0 + $0x48] sm:$0xf]  ;;  %v3521_v2 = vld [vmem:[%s6068_s0 + $0x34] sm:$0xf] }
   0x2   :  { %646 = vrot.lane.b32.xlu1 %v3520_v0, %s4300_s13  ;;  %181 = vrot.lane.b32.xlu0 %v3448_v1, %s4301_s14  ;;  %v3449_v3 = vld [vmem:[%s6068_s0 + $0x4c] sm:$0xf]  ;;  %v3473_v4 = vld [vmem:[%s6068_s0 + $0x68] sm:$0xf]  ;;  %s4302_s23 = smov 56   ;;  %s4303_s28 = smov 84  }
   0x3   :  { %v3472_v5 = vld [vmem:[%s6068_s0 + $0x64] sm:$0xf]  ;;  %v3497_v6 = vld [vmem:[%s6068_s0 + $0x18] sm:$0xf]  ;;  %v3496_v7 = vld [vmem:[%s6068_s0 + $0x14] sm:$0xf] }
   0x4   :  { %v3451_v8 = vld [vmem:[%s6068_s0 + $0x8] sm:$0xf]  ;;  %v3450_v9 = vld [vmem:[%s6068_s0 + $0x4] sm:$0xf]  ;;  %v3523_v10 = vld [vmem:[%s6068_s0 + $0x5c] sm:$0xf] }
   0x5   :  { %v3522_v11 = vld [vmem:[%s6068_s0 + $0x58] sm:$0xf]  ;;  %v3994_v12 = vld [vmem:[%s6069_s1 + $0x4] ss:$8 sps:$4 sm:$0xff]   ;;  %v3996_v13 = vld [vmem:[%s6069_s1] ss:$8 sps:$4 sm:$0xff]  }
   0x6   :  { %648 = vrot.lane.b32.xlu1 %v3521_v2, %s4300_s13  ;;  %183 = vrot.lane.b32.xlu0 %v3449_v3, %s4301_s14  ;;  %v3475_v14 = vld [vmem:[%s6068_s0 + $0x24] sm:$0xf]  ;;  %v3474_v15 = vld [vmem:[%s6068_s0 + $0x20] sm:$0xf]  ;;  %vm569_vm4 = vcmask 1044352   ;;  %vm570_vm5 = vcmask 97284  }
   0x7   :  { %3921 = vmatprep.subr.bf16.mxu1 %v3994_v12  ;;  %v3997_v16 = vld [vmem:[%s6069_s1 + $0x14] ss:$8 sps:$4 sm:$0xff]   ;;  %1005 = vmatprep.subr.bf16.mxu0 %v3994_v12  ;;  %v3999_v17 = vld [vmem:[%s6069_s1 + $0x10] ss:$8 sps:$4 sm:$0xff]   ;;  %v4000_v18 = vld [vmem:[%s6069_s1 + $0x24] ss:$8 sps:$4 sm:$0xff]  }
   0x8   :  { %3930 = vmatpush1.bf16.msra.mxu1 %v3996_v13  ;;  %1006 = vmatpush1.bf16.msra.mxu0 %v3996_v13  ;;  %v3499_v19 = vld [vmem:[%s6068_s0 + $0x40] sm:$0xf]  ;;  %v3424_v20 = vld [vmem:[%s6068_s0 + $0x2c] sm:$0xf]  ;;  %v3498_v21 = vld [vmem:[%s6068_s0 + $0x3c] sm:$0xf] }
   0x9   :  { %3922 = vmatprep.subr.bf16.mxu1 %v3997_v16  ;;  %1007 = vmatprep.subr.bf16.mxu0 %v3997_v16  ;;  %72 = vst.msk [vmem:[#allocation2 + $0x80] sm:$0xf] %vm39_vm0, %v3424_v20  ;;  %v4002_v22 = vld [vmem:[%s6069_s1 + $0x20] ss:$8 sps:$4 sm:$0xff]   ;;  %v4003_v23 = vld [vmem:[%s6069_s1 + $0x34] ss:$8 sps:$4 sm:$0xff]   ;;  %vm4749_vm8 = vmor %vm570_vm5, %vm569_vm4 }
   0xa   :  { %329 = vrot.lane.b32.xlu1 %v3473_v4, %s4302_s23  ;;  %327 = vrot.lane.b32.xlu0 %v3472_v5, %s4302_s23  ;;  %v3425_v24 = vld [vmem:[%s6068_s0 + $0x30] sm:$0xf]  ;;  %v3452_v26 = vld [vmem:[%s6068_s0 + $0xc] sm:$0xf]  ;;  %vm556_vm6 = vcmask 916480   ;;  %vm410_vm7 = vcmask 913056  }
   0xb   :  { %73 = vst.msk [vmem:[#allocation2 + $0x88] sm:$0xf] %vm39_vm0, %v3425_v24  ;;  %v3453_v25 = vld [vmem:[%s6068_s0 + $0x10] sm:$0xf]  ;;  %v4006_v28 = vld [vmem:[%s6069_s1 + $0x44] ss:$8 sps:$4 sm:$0xff]  }
   0xc   :  { %3931 = vmatpush1.bf16.msra.mxu1 %v3999_v17  ;;  %1008 = vmatpush1.bf16.msra.mxu0 %v3999_v17  ;;  %v4005_v27 = vld [vmem:[%s6069_s1 + $0x30] ss:$8 sps:$4 sm:$0xff]   ;;  %v3525_v29 = vld [vmem:[%s6068_s0 + $0x64] sm:$0xf]  ;;  %v3524_v30 = vld [vmem:[%s6068_s0 + $0x60] sm:$0xf] }
   0xd   :  { %3923 = vmatprep.subr.bf16.mxu1 %v4000_v18  ;;  %1009 = vmatprep.subr.bf16.mxu0 %v4000_v18  ;;  %v4008_v31 = vld [vmem:[%s6069_s1 + $0x40] ss:$8 sps:$4 sm:$0xff]   ;;  %v3427_v32 = vld [vmem:[%s6068_s0 + $0x58] sm:$0xf]  ;;  %v3426_v33 = vld [vmem:[%s6068_s0 + $0x54] sm:$0xf] }
   0xe   :  { %475 = vrot.lane.b32.xlu1 %v3497_v6, %s4303_s28  ;;  %473 = vrot.lane.b32.xlu0 %v3496_v7, %s4303_s28  ;;  %v4009_v34 = vld [vmem:[%s6069_s1 + $0x54] ss:$8 sps:$4 sm:$0xff]   ;;  %83 = vst.msk [vmem:[#allocation2 + $0x98] sm:$0xf] %vm39_vm0, %v3427_v32  ;;  %82 = vst.msk [vmem:[#allocation2 + $0x90] sm:$0xf] %vm39_vm0, %v3426_v33 }
   0xf   :  { %v3477_v35 = vld [vmem:[%s6068_s0 + $0x2c] sm:$0xf]  ;;  %v3476_v36 = vld [vmem:[%s6068_s0 + $0x28] sm:$0xf]  ;;  %v4011_v37 = vld [vmem:[%s6069_s1 + $0x50] ss:$8 sps:$4 sm:$0xff]  }
  0x10   :  { %3932 = vmatpush1.bf16.msra.mxu1 %v4002_v22  ;;  %1010 = vmatpush1.bf16.msra.mxu0 %v4002_v22  ;;  %v4012_v38 = vld [vmem:[%s6069_s1 + $0x64] ss:$8 sps:$4 sm:$0xff]   ;;  %v3501_v39 = vld [vmem:[%s6068_s0 + $0x48] sm:$0xf]  ;;  %v3429_v41 = vld [vmem:[%s6068_s0 + $0x60] sm:$0xf] }
  0x11   :  { %3924 = vmatprep.subr.bf16.mxu1 %v4003_v23  ;;  %1011 = vmatprep.subr.bf16.mxu0 %v4003_v23  ;;  %v3500_v40 = vld [vmem:[%s6068_s0 + $0x44] sm:$0xf]  ;;  %v3428_v42 = vld [vmem:[%s6068_s0 + $0x5c] sm:$0xf]  ;;  %v4014_v43 = vld [vmem:[%s6069_s1 + $0x60] ss:$8 sps:$4 sm:$0xff]  }
  0x12   :  { %212 = vrot.lane.b32.xlu1 %v3451_v8, %s4301_s14  ;;  %210 = vrot.lane.b32.xlu0 %v3450_v9, %s4301_s14  ;;  %85 = vst.msk [vmem:[#allocation2 + $0xa8] sm:$0xf] %vm39_vm0, %v3429_v41  ;;  %84 = vst.msk [vmem:[#allocation2 + $0xa0] sm:$0xf] %vm39_vm0, %v3428_v42  ;;  %v4015_v44 = vld [vmem:[%s6069_s1 + $0x74] ss:$8 sps:$4 sm:$0xff]  }
  0x13   :  { %v3431_v45 = vld [vmem:[%s6068_s0 + $0x68] sm:$0xf]  ;;  %v3455_v46 = vld [vmem:[%s6068_s0 + $0x18] sm:$0xf]  ;;  %v3454_v47 = vld [vmem:[%s6068_s0 + $0x14] sm:$0xf] }
  0x14   :  { %3933 = vmatpush1.bf16.msra.mxu1 %v4005_v27  ;;  %1012 = vmatpush1.bf16.msra.mxu0 %v4005_v27  ;;  %87 = vst.msk [vmem:[#allocation2 + $0xb8] sm:$0xf] %vm39_vm0, %v3431_v45  ;;  %v3430_v48 = vld [vmem:[%s6068_s0 + $0x64] sm:$0xf]  ;;  %v4017_v49 = vld [vmem:[%s6069_s1 + $0x70] ss:$8 sps:$4 sm:$0xff]  }
  0x15   :  { %3925 = vmatprep.subr.bf16.mxu1 %v4006_v28  ;;  %1013 = vmatprep.subr.bf16.mxu0 %v4006_v28  ;;  %v4018_v50 = vld [vmem:[%s6069_s1 + $0x84] ss:$8 sps:$4 sm:$0x3f]   ;;  %86 = vst.msk [vmem:[#allocation2 + $0xb0] sm:$0xf] %vm39_vm0, %v3430_v48  ;;  %vm961_vm9 = vcmask 97280  }
  0x16   :  { %689 = vrot.lane.b32.xlu1 %v3523_v10, %s4300_s13  ;;  %687 = vrot.lane.b32.xlu0 %v3522_v11, %s4300_s13  ;;  %v4020_v51 = vld [vmem:[%s6069_s1 + $0x80] ss:$8 sps:$4 sm:$0x3f]   ;;  %v3527_v52 = vld [vmem:[%s6068_s0 + $0x6c] sm:$0xf]  ;;  %vm1628_vm10 = vcmask 1043456  }
  0x17   :  { %v3526_v53 = vld [vmem:[%s6068_s0 + $0x68] sm:$0xf]  ;;  %v3479_v54 = vld [vmem:[%s6068_s0 + $0x34] sm:$0xf]  ;;  %v1000_v55 = vsel %vm998_vm1, %v4020_v51, 0  ;;  %vm1629_vm11 = vcmask 523268  }
  0x18   :  { %3934 = vmatpush1.bf16.msra.mxu1 %v4008_v31  ;;  %1014 = vmatpush1.bf16.msra.mxu0 %v4008_v31  ;;  %v4029_v56 = vld [vmem:[%s6069_s1 + $0x94] ss:$8 sps:$4 sm:$0xff]   ;;  %v34_v57 = vld [vmem:[%s6068_s0 + $0x4] sm:$0xf]  ;;  %v33_v58 = vld [vmem:[%s6068_s0] sm:$0xf] }
  0x19   :  { %3926 = vmatprep.subr.bf16.mxu1 %v4009_v34  ;;  %1015 = vmatprep.subr.bf16.mxu0 %v4009_v34  ;;  %v3478_v59 = vld [vmem:[%s6068_s0 + $0x30] sm:$0xf]  ;;  %41 = vst.msk [vmem:[#allocation2 + $0x8] sm:$0xf] %vm39_vm0, %v34_v57  ;;  %40 = vst.msk [vmem:[#allocation2] sm:$0xf] %vm39_vm0, %v33_v58 }
  0x1a   :  { %358 = vrot.lane.b32.xlu1 %v3475_v14, %s4302_s23  ;;  %356 = vrot.lane.b32.xlu0 %v3474_v15, %s4302_s23  ;;  %v3503_v60 = vld [vmem:[%s6068_s0 + $0x50] sm:$0xf]  ;;  %v3502_v61 = vld [vmem:[%s6068_s0 + $0x4c] sm:$0xf]  ;;  %vm5503_vm12 = vmor %vm1629_vm11, %vm1628_vm10  ;;  %s4304_s24 = smov 64   ;;  %vm1661_vm13 = vcmask 1043968  }
  0x1b   :  { %v3433_v62 = vld [vmem:[%s6068_s0 + $0x20] sm:$0xf]  ;;  %v3432_v63 = vld [vmem:[%s6068_s0 + $0x1c] sm:$0xf]  ;;  %v3505_v0 = vld [vmem:[%s6068_s0 + $0x8] sm:$0xf] }
  0x1c   :  { %3935 = vmatpush1.bf16.msra.mxu1 %v4011_v37  ;;  %1016 = vmatpush1.bf16.msra.mxu0 %v4011_v37  ;;  %v3504_v1 = vld [vmem:[%s6068_s0 + $0x4] sm:$0xf]  ;;  %v36_v2 = vld [vmem:[%s6068_s0 + $0xc] sm:$0xf]  ;;  %v35_v3 = vld [vmem:[%s6068_s0 + $0x8] sm:$0xf] }
  0x1d   :  { %3927 = vmatprep.subr.bf16.mxu1 %v4012_v38  ;;  %1017 = vmatprep.subr.bf16.mxu0 %v4012_v38  ;;  %43 = vst.msk [vmem:[#allocation2 + $0x18] sm:$0xf] %vm39_vm0, %v36_v2  ;;  %42 = vst.msk [vmem:[#allocation2 + $0x10] sm:$0xf] %vm39_vm0, %v35_v3  ;;  %v3457_v4 = vld [vmem:[%s6068_s0 + $0x3c] sm:$0xf] }
  0x1e   :  { %504 = vrot.lane.b32.xlu1 %v3499_v19, %s4303_s28  ;;  %502 = vrot.lane.b32.xlu0 %v3498_v21, %s4303_s28  ;;  %v3456_v5 = vld [vmem:[%s6068_s0 + $0x38] sm:$0xf]  ;;  %v3480_v7 = vld [vmem:[%s6068_s0 + $0x54] sm:$0xf]  ;;  %vm1662_vm14 = vcmask 1047556   ;;  %vm1652_vm15 = vcmask 523264  }
  0x1f   :  { %v3481_v6 = vld [vmem:[%s6068_s0 + $0x58] sm:$0xf]  ;;  %v3435_v8 = vld [vmem:[%s6068_s0 + $0x28] sm:$0xf]  ;;  %v3434_v9 = vld [vmem:[%s6068_s0 + $0x24] sm:$0xf] }
  0x20   :  { %3936 = vmatpush1.bf16.msra.mxu1 %v4014_v43  ;;  %1018 = vmatpush1.bf16.msra.mxu0 %v4014_v43  ;;  %v3507_v10 = vld [vmem:[%s6068_s0 + $0x10] sm:$0xf]  ;;  %v3506_v11 = vld [vmem:[%s6068_s0 + $0xc] sm:$0xf]  ;;  %v38_v12 = vld [vmem:[%s6068_s0 + $0x14] sm:$0xf] }
  0x21   :  { %3928 = vmatprep.subr.bf16.mxu1 %v4015_v44  ;;  %1019 = vmatprep.subr.bf16.mxu0 %v4015_v44  ;;  %v37_v13 = vld [vmem:[%s6068_s0 + $0x10] sm:$0xf]  ;;  %45 = vst.msk [vmem:[#allocation2 + $0x28] sm:$0xf] %vm39_vm0, %v38_v12  ;;  %v3459_v14 = vld [vmem:[%s6068_s0 + $0x44] sm:$0xf] }
  0x22   :  { %216 = vrot.lane.b32.xlu1 %v3453_v25, %s4301_s14  ;;  %214 = vrot.lane.b32.xlu0 %v3452_v26, %s4301_s14  ;;  %44 = vst.msk [vmem:[#allocation2 + $0x20] sm:$0xf] %vm39_vm0, %v37_v13  ;;  %v3458_v15 = vld [vmem:[%s6068_s0 + $0x40] sm:$0xf]  ;;  %v3482_v17 = vld [vmem:[%s6068_s0 + $0x5c] sm:$0xf] }
  0x23   :  { %v3483_v16 = vld [vmem:[%s6068_s0 + $0x60] sm:$0xf]  ;;  %v3437_v18 = vld [vmem:[%s6068_s0 + $0x30] sm:$0xf]  ;;  %v3436_v19 = vld [vmem:[%s6068_s0 + $0x2c] sm:$0xf] }
  0x24   :  { %3937 = vmatpush1.bf16.msra.mxu1 %v4017_v49  ;;  %1020 = vmatpush1.bf16.msra.mxu0 %v4017_v49  ;;  %v3509_v20 = vld [vmem:[%s6068_s0 + $0x18] sm:$0xf]  ;;  %v3508_v21 = vld [vmem:[%s6068_s0 + $0x14] sm:$0xf]  ;;  %v3415_v22 = vld [vmem:[%s6068_s0 + $0x3c] sm:$0xf] }
  0x25   :  { %3929 = vmatprep.subr.msk.bf16.mxu1 %vm998_vm1, %v4018_v50  ;;  %3570 = vmatprep.subr.msk.bf16.mxu0 %vm998_vm1, %v4018_v50  ;;  %v3414_v23 = vld [vmem:[%s6068_s0 + $0x38] sm:$0xf]  ;;  %55 = vst.msk [vmem:[#allocation2 + $0x38] sm:$0xf] %vm39_vm0, %v3415_v22  ;;  %v3461_v24 = vld [vmem:[%s6068_s0 + $0x4c] sm:$0xf] }
  0x26   :  { %693 = vrot.lane.b32.xlu1 %v3525_v29, %s4300_s13  ;;  %691 = vrot.lane.b32.xlu0 %v3524_v30, %s4300_s13  ;;  %54 = vst.msk [vmem:[#allocation2 + $0x30] sm:$0xf] %vm39_vm0, %v3414_v23  ;;  %v3460_v25 = vld [vmem:[%s6068_s0 + $0x48] sm:$0xf]  ;;  %v3484_v27 = vld [vmem:[%s6068_s0 + $0x64] sm:$0xf] }
  0x27   :  { %v3485_v26 = vld [vmem:[%s6068_s0 + $0x68] sm:$0xf]  ;;  %v3439_v28 = vld [vmem:[%s6068_s0 + $0x58] sm:$0xf]  ;;  %v3438_v29 = vld [vmem:[%s6068_s0 + $0x54] sm:$0xf] }
  0x28   :  { %3938 = vmatpush1.bf16.msra.mxu1 %v1000_v55  ;;  %1022 = vmatpush1.bf16.msra.mxu0 %v1000_v55  ;;  %v3511_v30 = vld [vmem:[%s6068_s0 + $0x40] sm:$0xf]  ;;  %v3510_v31 = vld [vmem:[%s6068_s0 + $0x3c] sm:$0xf]  ;;  %v3417_v34 = vld [vmem:[%s6068_s0 + $0x44] sm:$0xf] }
  0x29   :  { %1271 = vmatprep.subr.bf16.mxu1 %v4029_v56  ;;  %57 = vst.msk [vmem:[#allocation2 + $0x48] sm:$0xf] %vm39_vm0, %v3417_v34  ;;  %v3462_v37 = vld [vmem:[%s6068_s0 + $0x4] sm:$0xf]  ;;  %v3486_v41 = vld [vmem:[%s6068_s0 + $0x20] sm:$0xf] }
  0x2a   :  { %362 = vrot.lane.b32.xlu1 %v3477_v35, %s4302_s23  ;;  %360 = vrot.lane.b32.xlu0 %v3476_v36, %s4302_s23  ;;  %v3416_v35 = vld [vmem:[%s6068_s0 + $0x40] sm:$0xf]  ;;  %v3463_v36 = vld [vmem:[%s6068_s0 + $0x8] sm:$0xf] }
  0x2b   :  { %56 = vst.msk [vmem:[#allocation2 + $0x40] sm:$0xf] %vm39_vm0, %v3416_v35  ;;  %v3440_v48 = vld [vmem:[%s6068_s0 + $0x5c] sm:$0xf]  ;;  %v3419_v57 = vld [vmem:[%s6068_s0 + $0x4c] sm:$0xf] }
  0x2c   :  { %v3418_v58 = vld [vmem:[%s6068_s0 + $0x48] sm:$0xf]  ;;  %59 = vst.msk [vmem:[#allocation2 + $0x58] sm:$0xf] %vm39_vm0, %v3419_v57  ;;  %v4027_v3 = vld [vmem:[%s6069_s1 + $0x90] ss:$8 sps:$4 sm:$0xff]  }
  0x2d   :  { %58 = vst.msk [vmem:[#allocation2 + $0x50] sm:$0xf] %vm39_vm0, %v3418_v58  ;;  %v3488_v2 = vld [vmem:[%s6068_s0 + $0x28] sm:$0xf]  ;;  %v4041_v22 = vld [vmem:[%s6069_s1 + $0xc4] ss:$8 sps:$4 sm:$0xff]  }
  0x2e   :  { %508 = vrot.lane.b32.xlu1 %v3501_v39, %s4303_s28  ;;  %506 = vrot.lane.b32.xlu0 %v3500_v40, %s4303_s28  ;;  %v3487_v40 = vld [vmem:[%s6068_s0 + $0x24] sm:$0xf]  ;;  %v3421_v23 = vld [vmem:[%s6068_s0 + $0x20] sm:$0xf] }
  0x2f   :  { %69 = vst.msk [vmem:[#allocation2 + $0x68] sm:$0xf] %vm39_vm0, %v3421_v23  ;;  %v3490_v34 = vld [vmem:[%s6068_s0 + $0x30] sm:$0xf]  ;;  %v3422_v57 = vld [vmem:[%s6068_s0 + $0x24] sm:$0xf] }
  0x30   :  { %v4042_v35 = vld [vmem:[%s6069_s1 + $0xd0] ss:$8 sps:$4 sm:$0xff]   ;;  %70 = vst.msk [vmem:[#allocation2 + $0x70] sm:$0xf] %vm39_vm0, %v3422_v57  ;;  %v3470_v23 = vld [vmem:[%s6068_s0 + $0x5c] sm:$0xf] }
  0x31   :  { %v3469_v58 = vld [vmem:[%s6068_s0 + $0x58] sm:$0xf] }
  0x32   :  { %220 = vrot.lane.b32.xlu1 %v3455_v46, %s4301_s14  ;;  %218 = vrot.lane.b32.xlu0 %v3454_v47, %s4301_s14  ;;  %v3441_v47 = vld [vmem:[%s6068_s0 + $0x60] sm:$0xf] }
  0x36   :  { %697 = vrot.lane.b32.xlu1 %v3527_v52, %s4300_s13  ;;  %695 = vrot.lane.b32.xlu0 %v3526_v53, %s4300_s13  ;;  %v3513_v53 = vld [vmem:[%s6068_s0 + $0x48] sm:$0xf] }
  0x3a   :  { %366 = vrot.lane.b32.xlu1 %v3479_v54, %s4302_s23  ;;  %364 = vrot.lane.b32.xlu0 %v3478_v59, %s4302_s23  ;;  %v3512_v54 = vld [vmem:[%s6068_s0 + $0x44] sm:$0xf]  ;;  %v3465_v59 = vld [vmem:[%s6068_s0 + $0x10] sm:$0xf] }
  0x3e   :  { %512 = vrot.lane.b32.xlu1 %v3503_v60, %s4303_s28  ;;  %510 = vrot.lane.b32.xlu0 %v3502_v61, %s4303_s28  ;;  %v3464_v60 = vld [vmem:[%s6068_s0 + $0xc] sm:$0xf] }
  0x42   :  { %102 = vrot.lane.b32.xlu1 %v3433_v62, %s4301_s14  ;;  %100 = vrot.lane.b32.xlu0 %v3432_v63, %s4301_s14 }
  0x46   :  { %540 = vrot.lane.b32.xlu1 %v3505_v0, %s4300_s13  ;;  %538 = vrot.lane.b32.xlu0 %v3504_v1, %s4300_s13  ;;  %v3489_v1 = vld [vmem:[%s6068_s0 + $0x2c] sm:$0xf] }
  0x4a   :  { %248 = vrot.lane.b32.xlu1 %v3457_v4, %s4302_s23  ;;  %246 = vrot.lane.b32.xlu0 %v3456_v5, %s4302_s23 }
  0x4e   :  { %394 = vrot.lane.b32.xlu1 %v3481_v6, %s4303_s28  ;;  %392 = vrot.lane.b32.xlu0 %v3480_v7, %s4303_s28  ;;  %v4035_v6 = vld [vmem:[%s6069_s1 + $0xa4] ss:$8 sps:$4 sm:$0xff]  }
  0x52   :  { %106 = vrot.lane.b32.xlu1 %v3435_v8, %s4301_s14  ;;  %104 = vrot.lane.b32.xlu0 %v3434_v9, %s4301_s14  ;;  %v3443_v9 = vld [vmem:[%s6068_s0 + $0x68] sm:$0xf] }
  0x56   :  { %544 = vrot.lane.b32.xlu1 %v3507_v10, %s4300_s13  ;;  %542 = vrot.lane.b32.xlu0 %v3506_v11, %s4300_s13  ;;  %v3442_v10 = vld [vmem:[%s6068_s0 + $0x64] sm:$0xf]  ;;  %v4033_v11 = vld [vmem:[%s6069_s1 + $0xa0] ss:$8 sps:$4 sm:$0xff]  }
  0x5a   :  { %252 = vrot.lane.b32.xlu1 %v3459_v14, %s4302_s23  ;;  %250 = vrot.lane.b32.xlu0 %v3458_v15, %s4302_s23  ;;  %v4038_v14 = vld [vmem:[%s6069_s1 + $0xb4] ss:$8 sps:$4 sm:$0xff]  }
  0x5e   :  { %398 = vrot.lane.b32.xlu1 %v3483_v16, %s4303_s28  ;;  %396 = vrot.lane.b32.xlu0 %v3482_v17, %s4303_s28  ;;  %v3515_v17 = vld [vmem:[%s6068_s0 + $0x50] sm:$0xf] }
  0x62   :  { %110 = vrot.lane.b32.xlu1 %v3437_v18, %s4301_s14  ;;  %108 = vrot.lane.b32.xlu0 %v3436_v19, %s4301_s14  ;;  %v3514_v18 = vld [vmem:[%s6068_s0 + $0x4c] sm:$0xf]  ;;  %v4036_v19 = vld [vmem:[%s6069_s1 + $0xb0] ss:$8 sps:$4 sm:$0xff]  }
  0x66   :  { %548 = vrot.lane.b32.xlu1 %v3509_v20, %s4300_s13  ;;  %546 = vrot.lane.b32.xlu0 %v3508_v21, %s4300_s13 }
  0x6a   :  { %256 = vrot.lane.b32.xlu1 %v3461_v24, %s4302_s23  ;;  %254 = vrot.lane.b32.xlu0 %v3460_v25, %s4302_s23  ;;  %v3420_v24 = vld [vmem:[%s6068_s0 + $0x1c] sm:$0xf]  ;;  %v3467_v25 = vld [vmem:[%s6068_s0 + $0x18] sm:$0xf] }
  0x6b   :  { %68 = vst.msk [vmem:[#allocation2 + $0x60] sm:$0xf] %vm39_vm0, %v3420_v24 }
  0x6e   :  { %402 = vrot.lane.b32.xlu1 %v3485_v26, %s4303_s28  ;;  %400 = vrot.lane.b32.xlu0 %v3484_v27, %s4303_s28  ;;  %v3466_v26 = vld [vmem:[%s6068_s0 + $0x14] sm:$0xf]  ;;  %v4039_v27 = vld [vmem:[%s6069_s1 + $0xc0] ss:$8 sps:$4 sm:$0xff]  }
  0x72   :  { %139 = vrot.lane.b32.xlu1 %v3439_v28, %s4301_s14  ;;  %137 = vrot.lane.b32.xlu0 %v3438_v29, %s4301_s14 }
  0x74   :  { %v647_v32 = vpop.permute.xlu1 %646  ;;  %v182_v33 = vpop.permute.xlu0 %181 }
  0x75   :  { %195 = vst.msk [vmem:[#allocation2 + $0x80] sm:$0xf] %vm118_vm2, %v182_v33  ;;  %v654_v44 = vrot.slane %v647_v32, 4  ;;  %v3491_v33 = vld [vmem:[%s6068_s0 + $0x34] sm:$0xf] }
  0x76   :  { %592 = vrot.lane.b32.xlu1 %v3511_v30, %s4300_s13  ;;  %590 = vrot.lane.b32.xlu0 %v3510_v31, %s4300_s13  ;;  %v4044_v30 = vld [vmem:[%s6069_s1 + $0xd4] ss:$8 sps:$4 sm:$0xff]  }
  0x77   :  { %v660_v51 = vsel %vm556_vm6, %v654_v44, %v647_v32 }
  0x78   :  { %v649_v38 = vpop.permute.xlu1 %648  ;;  %v184_v39 = vpop.permute.xlu0 %183 }
  0x79   :  { %196 = vst.msk [vmem:[#allocation2 + $0x88] sm:$0xf] %vm118_vm2, %v184_v39  ;;  %v655_v45 = vrot.slane %v649_v38, 4 }
  0x7a   :  { %285 = vrot.lane.b32.xlu1 %v3463_v36, %s4302_s23  ;;  %283 = vrot.lane.b32.xlu0 %v3462_v37, %s4302_s23 }
  0x7b   :  { %v661_v52 = vsel %vm556_vm6, %v655_v45, %v649_v38  ;;  %v4050_v38 = vld [vmem:[%s6069_s1 + $0xe4] ss:$8 sps:$4 sm:$0xff]  }
  0x7c   :  { %v330_v42 = vpop.permute.xlu1 %329  ;;  %v328_v43 = vpop.permute.xlu0 %327 }
  0x7d   :  { %342 = vst.msk [vmem:[#allocation2 + $0x88] sm:$0xf] %vm264_vm3, %v330_v42  ;;  %341 = vst.msk [vmem:[#allocation2 + $0x80] sm:$0xf] %vm264_vm3, %v328_v43  ;;  %v3444_v42 = vld [vmem:[%s6068_s0 + $0x38] sm:$0xf] }
  0x7e   :  { %431 = vrot.lane.b32.xlu1 %v3487_v40, %s4303_s28  ;;  %429 = vrot.lane.b32.xlu0 %v3486_v41, %s4303_s28  ;;  %v3445_v41 = vld [vmem:[%s6068_s0 + $0x3c] sm:$0xf]  ;;  %v4048_v43 = vld [vmem:[%s6069_s1 + $0xe0] ss:$8 sps:$4 sm:$0xff]  }
  0x80   :  { %v476_v49 = vpop.permute.xlu1 %475  ;;  %v474_v50 = vpop.permute.xlu0 %473 }
  0x81   :  { %488 = vst.msk [vmem:[#allocation2 + $0x88] sm:$0xf] %vm410_vm7, %v476_v49  ;;  %487 = vst.msk [vmem:[#allocation2 + $0x80] sm:$0xf] %vm410_vm7, %v474_v50  ;;  %v3517_v50 = vld [vmem:[%s6068_s0 + $0x24] sm:$0xf] }
  0x82   :  { %673 = vst.msk [vmem:[#allocation2 + $0x88] sm:$0xff] %vm4749_vm8, %v661_v52  ;;  %672 = vst.msk [vmem:[#allocation2 + $0x80] sm:$0xff] %vm4749_vm8, %v660_v51  ;;  %143 = vrot.lane.b32.xlu1 %v3441_v47, %s4301_s14  ;;  %141 = vrot.lane.b32.xlu0 %v3440_v48, %s4301_s14  ;;  %v4053_v47 = vld [vmem:[%s6069_s1 + $0xf4] ss:$8 sps:$4 sm:$0xff]   ;;  %v3516_v51 = vld [vmem:[%s6068_s0 + $0x20] sm:$0xf] }
  0x83   :  { %v4051_v52 = vld [vmem:[%s6069_s1 + $0xf0] ss:$8 sps:$4 sm:$0xff]  }
  0x84   :  { %v213_v55 = vpop.permute.xlu1 %212  ;;  %v211_v56 = vpop.permute.xlu0 %210 }
  0x85   :  { %229 = vst.msk [vmem:[#allocation2 + $0x98] sm:$0xf] %vm118_vm2, %v213_v55  ;;  %228 = vst.msk [vmem:[#allocation2 + $0x90] sm:$0xf] %vm118_vm2, %v211_v56  ;;  %v4056_v55 = vld [vmem:[%s6069_s1 + $0x104] ss:$8 sps:$4 sm:$0xff]  }
  0x86   :  { %596 = vrot.lane.b32.xlu1 %v3513_v53, %s4300_s13  ;;  %594 = vrot.lane.b32.xlu0 %v3512_v54, %s4300_s13  ;;  %v3423_v56 = vld [vmem:[%s6068_s0 + $0x28] sm:$0xf] }
  0x87   :  { %71 = vst.msk [vmem:[#allocation2 + $0x78] sm:$0xf] %vm39_vm0, %v3423_v56  ;;  %vm5732_vm0 = vmor %vm1662_vm14, %vm1661_vm13 }
  0x88   :  { %v690_v61 = vpop.permute.xlu1 %689  ;;  %v688_v62 = vpop.permute.xlu0 %687 }
  0x89   :  { %v4793_v63 = vld [vmem:[#allocation2 + $0x80] ss:$8 sps:$4 sm:$0xff]   ;;  %v4797_v0 = vld [vmem:[#allocation2 + $0x84] ss:$8 sps:$4 sm:$0xff]   ;;  %v700_v7 = vrot.slane %v690_v61, 4  ;;  %v699_v8 = vrot.slane %v688_v62, 4 }
  0x8a   :  { %289 = vrot.lane.b32.xlu1 %v3465_v59, %s4302_s23  ;;  %287 = vrot.lane.b32.xlu0 %v3464_v60, %s4302_s23  ;;  %v3468_v59 = vld [vmem:[%s6068_s0 + $0x54] sm:$0xf]  ;;  %v4054_v60 = vld [vmem:[%s6069_s1 + $0x100] ss:$8 sps:$4 sm:$0xff]  }
  0x8b   :  { %3579 = vmatprep.mubr.msk.bf16.mxu1 %vm961_vm9, %v4797_v0  ;;  %v706_v15 = vsel %vm556_vm6, %v700_v7, %v690_v61  ;;  %v705_v16 = vsel %vm556_vm6, %v699_v8, %v688_v62 }
  0x8c   :  { %v359_v4 = vpop.permute.xlu1 %358  ;;  %v357_v5 = vpop.permute.xlu0 %356  ;;  %1118 = vmatmul.mubr.bf16.vlgmr.msra.gmra.mrb[0].mxu1 %v4793_v63 }
  0x8d   :  { %375 = vst.msk [vmem:[#allocation2 + $0x98] sm:$0xf] %vm264_vm3, %v359_v4  ;;  %374 = vst.msk [vmem:[#allocation2 + $0x90] sm:$0xf] %vm264_vm3, %v357_v5  ;;  %1272 = vmatpush1.bf16.msra.mxu1 %v4027_v3  ;;  %v3493_v5 = vld [vmem:[%s6068_s0 + $0x8] sm:$0xf] }
  0x8e   :  { %435 = vrot.lane.b32.xlu1 %v3489_v1, %s4303_s28  ;;  %433 = vrot.lane.b32.xlu0 %v3488_v2, %s4303_s28  ;;  %v4057_v1 = vld [vmem:[%s6069_s1 + $0x114] ss:$8 sps:$4 sm:$0x3f]   ;;  %v4059_v2 = vld [vmem:[%s6069_s1 + $0x110] ss:$8 sps:$4 sm:$0x3f]  }
  0x8f   :  { %1273 = vmatprep.subr.bf16.mxu1 %v4035_v6  ;;  %v3492_v6 = vld [vmem:[%s6068_s0 + $0x4] sm:$0xf] }
  0x90   :  { %v505_v12 = vpop.permute.xlu1 %504  ;;  %v503_v13 = vpop.permute.xlu0 %502 }
  0x91   :  { %521 = vst.msk [vmem:[#allocation2 + $0x98] sm:$0xf] %vm410_vm7, %v505_v12  ;;  %520 = vst.msk [vmem:[#allocation2 + $0x90] sm:$0xf] %vm410_vm7, %v503_v13  ;;  %1274 = vmatpush1.bf16.msra.mxu1 %v4033_v11  ;;  %v3447_v12 = vld [vmem:[%s6068_s0 + $0x44] sm:$0xf] }
  0x92   :  { %718 = vst.msk [vmem:[#allocation2 + $0x98] sm:$0xff] %vm4749_vm8, %v706_v15  ;;  %717 = vst.msk [vmem:[#allocation2 + $0x90] sm:$0xff] %vm4749_vm8, %v705_v16  ;;  %147 = vrot.lane.b32.xlu1 %v3443_v9, %s4301_s14  ;;  %145 = vrot.lane.b32.xlu0 %v3442_v10, %s4301_s14  ;;  %v1266_v9 = vsel %vm998_vm1, %v4059_v2, 0  ;;  %v3446_v13 = vld [vmem:[%s6068_s0 + $0x40] sm:$0xf] }
  0x93   :  { %1275 = vmatprep.subr.bf16.mxu1 %v4038_v14 }
  0x94   :  { %v217_v20 = vpop.permute.xlu1 %216  ;;  %v215_v21 = vpop.permute.xlu0 %214 }
  0x95   :  { %231 = vst.msk [vmem:[#allocation2 + $0xa8] sm:$0xf] %vm118_vm2, %v217_v20  ;;  %230 = vst.msk [vmem:[#allocation2 + $0xa0] sm:$0xf] %vm118_vm2, %v215_v21  ;;  %1276 = vmatpush1.bf16.msra.mxu1 %v4036_v19  ;;  %v3518_v19 = vld [vmem:[%s6068_s0 + $0x28] sm:$0xf] }
  0x96   :  { %600 = vrot.lane.b32.xlu1 %v3515_v17, %s4300_s13  ;;  %598 = vrot.lane.b32.xlu0 %v3514_v18, %s4300_s13  ;;  %v3519_v18 = vld [vmem:[%s6068_s0 + $0x2c] sm:$0xf] }
  0x97   :  { %1277 = vmatprep.subr.bf16.mxu1 %v4041_v22  ;;  %v3471_v22 = vld [vmem:[%s6068_s0 + $0x60] sm:$0xf] }
  0x98   :  { %v694_v28 = vpop.permute.xlu1 %693  ;;  %v692_v29 = vpop.permute.xlu0 %691 }
  0x99   :  { %v4876_v31 = vld [vmem:[#allocation2 + $0x94] ss:$8 sps:$4 sm:$0xff]   ;;  %v4880_v32 = vld [vmem:[#allocation2 + $0x90] ss:$8 sps:$4 sm:$0xff]   ;;  %1278 = vmatpush1.bf16.msra.mxu1 %v4039_v27  ;;  %v702_v39 = vrot.slane %v694_v28, 4  ;;  %v701_v40 = vrot.slane %v692_v29, 4 }
  0x9a   :  { %293 = vrot.lane.b32.xlu1 %v3467_v25, %s4302_s23  ;;  %291 = vrot.lane.b32.xlu0 %v3466_v26, %s4302_s23 }
  0x9b   :  { %3580 = vmatprep.mubr.msk.bf16.mxu1 %vm961_vm9, %v4876_v31  ;;  %1279 = vmatprep.subr.bf16.mxu1 %v4044_v30  ;;  %v708_v48 = vsel %vm556_vm6, %v702_v39, %v694_v28  ;;  %v707_v49 = vsel %vm556_vm6, %v701_v40, %v692_v29  ;;  %v3495_v28 = vld [vmem:[%s6068_s0 + $0x10] sm:$0xf]  ;;  %v3494_v29 = vld [vmem:[%s6068_s0 + $0xc] sm:$0xf] }
  0x9c   :  { %v363_v36 = vpop.permute.xlu1 %362  ;;  %v361_v37 = vpop.permute.xlu0 %360  ;;  %1128 = vmatmul.mubr.bf16.gmra.mrb[4].mxu1 %v4880_v32 }
  0x9d   :  { %377 = vst.msk [vmem:[#allocation2 + $0xa8] sm:$0xf] %vm264_vm3, %v363_v36  ;;  %376 = vst.msk [vmem:[#allocation2 + $0xa0] sm:$0xf] %vm264_vm3, %v361_v37  ;;  %1280 = vmatpush1.bf16.msra.mxu1 %v4042_v35 }
  0x9e   :  { %439 = vrot.lane.b32.xlu1 %v3491_v33, %s4303_s28  ;;  %437 = vrot.lane.b32.xlu0 %v3490_v34, %s4303_s28 }
  0x9f   :  { %1281 = vmatprep.subr.bf16.mxu1 %v4050_v38 }
  0xa0   :  { %v509_v44 = vpop.permute.xlu1 %508  ;;  %v507_v45 = vpop.permute.xlu0 %506 }
  0xa1   :  { %523 = vst.msk [vmem:[#allocation2 + $0xa8] sm:$0xf] %vm410_vm7, %v509_v44  ;;  %522 = vst.msk [vmem:[#allocation2 + $0xa0] sm:$0xf] %vm410_vm7, %v507_v45  ;;  %1282 = vmatpush1.bf16.msra.mxu1 %v4048_v43 }
  0xa2   :  { %720 = vst.msk [vmem:[#allocation2 + $0xa8] sm:$0xff] %vm4749_vm8, %v708_v48  ;;  %719 = vst.msk [vmem:[#allocation2 + $0xa0] sm:$0xff] %vm4749_vm8, %v707_v49  ;;  %175 = vrot.lane.b32.xlu1 %v3445_v41, %s4301_s14  ;;  %173 = vrot.lane.b32.xlu0 %v3444_v42, %s4301_s14 }
  0xa3   :  { %1283 = vmatprep.subr.bf16.mxu1 %v4053_v47 }
  0xa4   :  { %v221_v53 = vpop.permute.xlu1 %220  ;;  %v219_v54 = vpop.permute.xlu0 %218 }
  0xa5   :  { %233 = vst.msk [vmem:[#allocation2 + $0xb8] sm:$0xf] %vm118_vm2, %v221_v53  ;;  %232 = vst.msk [vmem:[#allocation2 + $0xb0] sm:$0xf] %vm118_vm2, %v219_v54  ;;  %1284 = vmatpush1.bf16.msra.mxu1 %v4051_v52 }
  0xa6   :  { %640 = vrot.lane.b32.xlu1 %v3517_v50, %s4300_s13  ;;  %638 = vrot.lane.b32.xlu0 %v3516_v51, %s4300_s13 }
  0xa7   :  { %1285 = vmatprep.subr.bf16.mxu1 %v4056_v55 }
  0xa8   :  { %v698_v61 = vpop.permute.xlu1 %697  ;;  %v696_v62 = vpop.permute.xlu0 %695 }
  0xa9   :  { %v4962_v3 = vld [vmem:[#allocation2 + $0xa4] ss:$8 sps:$4 sm:$0xff]   ;;  %v4966_v4 = vld [vmem:[#allocation2 + $0xa0] ss:$8 sps:$4 sm:$0xff]   ;;  %1286 = vmatpush1.bf16.msra.mxu1 %v4054_v60  ;;  %v704_v10 = vrot.slane %v698_v61, 4  ;;  %v703_v11 = vrot.slane %v696_v62, 4 }
  0xaa   :  { %321 = vrot.lane.b32.xlu1 %v3469_v58, %s4302_s23  ;;  %319 = vrot.lane.b32.xlu0 %v3468_v59, %s4302_s23 }
  0xab   :  { %3581 = vmatprep.mubr.msk.bf16.mxu1 %vm961_vm9, %v4962_v3  ;;  %3619 = vmatprep.subr.msk.bf16.mxu1 %vm998_vm1, %v4057_v1  ;;  %v710_v16 = vsel %vm556_vm6, %v704_v10, %v698_v61  ;;  %v709_v17 = vsel %vm556_vm6, %v703_v11, %v696_v62  ;;  %vm4306_vm1 = vmmov 0  }
  0xac   :  { %v367_v7 = vpop.permute.xlu1 %366  ;;  %v365_v8 = vpop.permute.xlu0 %364  ;;  %1138 = vmatmul.mubr.bf16.gmra.mrb[8].mxu1 %v4966_v4 }
  0xad   :  { %379 = vst.msk [vmem:[#allocation2 + $0xb8] sm:$0xf] %vm264_vm3, %v367_v7  ;;  %378 = vst.msk [vmem:[#allocation2 + $0xb0] sm:$0xf] %vm264_vm3, %v365_v8  ;;  %1288 = vmatpush1.bf16.msra.mxu1 %v1266_v9 }
  0xae   :  { %467 = vrot.lane.b32.xlu1 %v3493_v5, %s4303_s28  ;;  %465 = vrot.lane.b32.xlu0 %v3492_v6, %s4303_s28 }
  0xb0   :  { %v513_v14 = vpop.permute.xlu1 %512  ;;  %v511_v15 = vpop.permute.xlu0 %510 }
  0xb1   :  { %525 = vst.msk [vmem:[#allocation2 + $0xb8] sm:$0xf] %vm410_vm7, %v513_v14  ;;  %524 = vst.msk [vmem:[#allocation2 + $0xb0] sm:$0xf] %vm410_vm7, %v511_v15 }
  0xb2   :  { %722 = vst.msk [vmem:[#allocation2 + $0xb8] sm:$0xff] %vm4749_vm8, %v710_v16  ;;  %721 = vst.msk [vmem:[#allocation2 + $0xb0] sm:$0xff] %vm4749_vm8, %v709_v17  ;;  %179 = vrot.lane.b32.xlu1 %v3447_v12, %s4301_s14  ;;  %177 = vrot.lane.b32.xlu0 %v3446_v13, %s4301_s14 }
  0xb4   :  { %v103_v20 = vpop.permute.xlu1 %102  ;;  %v101_v21 = vpop.permute.xlu0 %100 }
  0xb5   :  { %120 = vst.msk [vmem:[#allocation2 + $0x8] sm:$0xf] %vm118_vm2, %v103_v20  ;;  %119 = vst.msk [vmem:[#allocation2] sm:$0xf] %vm118_vm2, %v101_v21 }
  0xb6   :  { %644 = vrot.lane.b32.xlu1 %v3519_v18, %s4300_s13  ;;  %642 = vrot.lane.b32.xlu0 %v3518_v19, %s4300_s13 }
  0xb8   :  { %v541_v24 = vpop.permute.xlu1 %540  ;;  %v539_v25 = vpop.permute.xlu0 %538 }
  0xb9   :  { %v5015_v26 = vld [vmem:[#allocation2 + $0xb4] ss:$8 sps:$4 sm:$0xff]   ;;  %v5019_v27 = vld [vmem:[#allocation2 + $0xb0] ss:$8 sps:$4 sm:$0xff]   ;;  %v551_v34 = vrot.slane %v541_v24, 4  ;;  %v550_v35 = vrot.slane %v539_v25, 4 }
  0xba   :  { %325 = vrot.lane.b32.xlu1 %v3471_v22, %s4302_s23  ;;  %323 = vrot.lane.b32.xlu0 %v3470_v23, %s4302_s23 }
  0xbb   :  { %3582 = vmatprep.mubr.msk.bf16.mxu1 %vm961_vm9, %v5015_v26  ;;  %v558_v38 = vsel %vm556_vm6, %v551_v34, %v541_v24  ;;  %v557_v39 = vsel %vm556_vm6, %v550_v35, %v539_v25 }
  0xbc   :  { %v249_v30 = vpop.permute.xlu1 %248  ;;  %v247_v33 = vpop.permute.xlu0 %246  ;;  %1148 = vmatmul.mubr.bf16.gmra.mrb[12].mxu1 %v5019_v27 }
  0xbd   :  { %266 = vst.msk [vmem:[#allocation2 + $0x8] sm:$0xf] %vm264_vm3, %v249_v30  ;;  %265 = vst.msk [vmem:[#allocation2] sm:$0xf] %vm264_vm3, %v247_v33 }
  0xbe   :  { %471 = vrot.lane.b32.xlu1 %v3495_v28, %s4303_s28  ;;  %469 = vrot.lane.b32.xlu0 %v3494_v29, %s4303_s28 }
  0xc0   :  { %v395_v36 = vpop.permute.xlu1 %394  ;;  %v393_v37 = vpop.permute.xlu0 %392 }
  0xc1   :  { %412 = vst.msk [vmem:[#allocation2 + $0x8] sm:$0xf] %vm410_vm7, %v395_v36  ;;  %411 = vst.msk [vmem:[#allocation2] sm:$0xf] %vm410_vm7, %v393_v37 }
  0xc2   :  { %573 = vst.msk [vmem:[#allocation2 + $0x8] sm:$0xff] %vm4749_vm8, %v558_v38  ;;  %572 = vst.msk [vmem:[#allocation2] sm:$0xff] %vm4749_vm8, %v557_v39 }
  0xc4   :  { %v107_v40 = vpop.permute.xlu1 %106  ;;  %v105_v41 = vpop.permute.xlu0 %104 }
  0xc5   :  { %122 = vst.msk [vmem:[#allocation2 + $0x18] sm:$0xf] %vm118_vm2, %v107_v40  ;;  %121 = vst.msk [vmem:[#allocation2 + $0x10] sm:$0xf] %vm118_vm2, %v105_v41 }
  0xc8   :  { %v545_v42 = vpop.permute.xlu1 %544  ;;  %v543_v43 = vpop.permute.xlu0 %542 }
  0xc9   :  { %v4060_v44 = vld [vmem:[#allocation2] ss:$8 sps:$4 sm:$0xff]   ;;  %v4062_v45 = vld [vmem:[#allocation2 + $0x4] ss:$8 sps:$4 sm:$0xff]   ;;  %v553_v49 = vrot.slane %v545_v42, 4  ;;  %v552_v50 = vrot.slane %v543_v43, 4 }
  0xca   :  { %3571 = vmatprep.mubr.msk.bf16.mxu0 %vm961_vm9, %v4062_v45  ;;  %3620 = vmatprep.mubr.msk.bf16.mxu1 %vm961_vm9, %v4062_v45 }
  0xcb   :  { %1038 = vmatmul.mubr.bf16.vlgmr.msra.gmra.mrb[0].mxu0 %v4060_v44  ;;  %1304 = vmatmul.mubr.bf16.vlgmr.msra.gmra.mrb[16].mxu1 %v4060_v44  ;;  %v560_v53 = vsel %vm556_vm6, %v553_v49, %v545_v42  ;;  %v559_v54 = vsel %vm556_vm6, %v552_v50, %v543_v43 }
  0xcc   :  { %v253_v47 = vpop.permute.xlu1 %252  ;;  %v251_v48 = vpop.permute.xlu0 %250 }
  0xcd   :  { %268 = vst.msk [vmem:[#allocation2 + $0x18] sm:$0xf] %vm264_vm3, %v253_v47  ;;  %267 = vst.msk [vmem:[#allocation2 + $0x10] sm:$0xf] %vm264_vm3, %v251_v48 }
  0xd0   :  { %v399_v51 = vpop.permute.xlu1 %398  ;;  %v397_v52 = vpop.permute.xlu0 %396 }
  0xd1   :  { %414 = vst.msk [vmem:[#allocation2 + $0x18] sm:$0xf] %vm410_vm7, %v399_v51  ;;  %413 = vst.msk [vmem:[#allocation2 + $0x10] sm:$0xf] %vm410_vm7, %v397_v52 }
  0xd2   :  { %575 = vst.msk [vmem:[#allocation2 + $0x18] sm:$0xff] %vm4749_vm8, %v560_v53  ;;  %574 = vst.msk [vmem:[#allocation2 + $0x10] sm:$0xff] %vm4749_vm8, %v559_v54 }
  0xd4   :  { %v111_v55 = vpop.permute.xlu1 %110  ;;  %v109_v56 = vpop.permute.xlu0 %108 }
  0xd5   :  { %124 = vst.msk [vmem:[#allocation2 + $0x28] sm:$0xf] %vm118_vm2, %v111_v55  ;;  %123 = vst.msk [vmem:[#allocation2 + $0x20] sm:$0xf] %vm118_vm2, %v109_v56 }
  0xd8   :  { %v549_v57 = vpop.permute.xlu1 %548  ;;  %v547_v58 = vpop.permute.xlu0 %546 }
  0xd9   :  { %v4063_v59 = vld [vmem:[#allocation2 + $0x14] ss:$8 sps:$4 sm:$0xff]   ;;  %v4065_v60 = vld [vmem:[#allocation2 + $0x10] ss:$8 sps:$4 sm:$0xff]   ;;  %v555_v1 = vrot.slane %v549_v57, 4  ;;  %v554_v2 = vrot.slane %v547_v58, 4 }
  0xda   :  { %3572 = vmatprep.mubr.msk.bf16.mxu0 %vm961_vm9, %v4063_v59  ;;  %3621 = vmatprep.mubr.msk.bf16.mxu1 %vm961_vm9, %v4063_v59 }
  0xdb   :  { %1048 = vmatmul.mubr.bf16.gmra.mrb[4].mxu0 %v4065_v60  ;;  %1314 = vmatmul.mubr.bf16.gmra.mrb[20].mxu1 %v4065_v60  ;;  %v562_v7 = vsel %vm556_vm6, %v555_v1, %v549_v57  ;;  %v561_v8 = vsel %vm556_vm6, %v554_v2, %v547_v58 }
  0xdc   :  { %v257_v61 = vpop.permute.xlu1 %256  ;;  %v255_v62 = vpop.permute.xlu0 %254 }
  0xdd   :  { %270 = vst.msk [vmem:[#allocation2 + $0x28] sm:$0xf] %vm264_vm3, %v257_v61  ;;  %269 = vst.msk [vmem:[#allocation2 + $0x20] sm:$0xf] %vm264_vm3, %v255_v62 }
  0xe0   :  { %v403_v5 = vpop.permute.xlu1 %402  ;;  %v401_v6 = vpop.permute.xlu0 %400 }
  0xe1   :  { %416 = vst.msk [vmem:[#allocation2 + $0x28] sm:$0xf] %vm410_vm7, %v403_v5  ;;  %415 = vst.msk [vmem:[#allocation2 + $0x20] sm:$0xf] %vm410_vm7, %v401_v6 }
  0xe2   :  { %577 = vst.msk [vmem:[#allocation2 + $0x28] sm:$0xff] %vm4749_vm8, %v562_v7  ;;  %576 = vst.msk [vmem:[#allocation2 + $0x20] sm:$0xff] %vm4749_vm8, %v561_v8 }
  0xe4   :  { %v140_v9 = vpop.permute.xlu1 %139  ;;  %v138_v10 = vpop.permute.xlu0 %137 }
  0xe5   :  { %156 = vst.msk [vmem:[#allocation2 + $0x38] sm:$0xf] %vm118_vm2, %v140_v9  ;;  %155 = vst.msk [vmem:[#allocation2 + $0x30] sm:$0xf] %vm118_vm2, %v138_v10 }
  0xe8   :  { %v593_v11 = vpop.permute.xlu1 %592  ;;  %v591_v12 = vpop.permute.xlu0 %590 }
  0xe9   :  { %v4066_v13 = vld [vmem:[#allocation2 + $0x24] ss:$8 sps:$4 sm:$0xff]   ;;  %v4068_v14 = vld [vmem:[#allocation2 + $0x20] ss:$8 sps:$4 sm:$0xff]   ;;  %v603_v17 = vrot.slane %v593_v11, 4  ;;  %v602_v18 = vrot.slane %v591_v12, 4 }
  0xea   :  { %3573 = vmatprep.mubr.msk.bf16.mxu0 %vm961_vm9, %v4066_v13  ;;  %3622 = vmatprep.mubr.msk.bf16.mxu1 %vm961_vm9, %v4066_v13 }
  0xeb   :  { %1058 = vmatmul.mubr.bf16.gmra.mrb[8].mxu0 %v4068_v14  ;;  %1324 = vmatmul.mubr.bf16.gmra.mrb[24].mxu1 %v4068_v14  ;;  %v609_v21 = vsel %vm556_vm6, %v603_v17, %v593_v11  ;;  %v608_v22 = vsel %vm556_vm6, %v602_v18, %v591_v12 }
  0xec   :  { %v286_v15 = vpop.permute.xlu1 %285  ;;  %v284_v16 = vpop.permute.xlu0 %283 }
  0xed   :  { %302 = vst.msk [vmem:[#allocation2 + $0x38] sm:$0xf] %vm264_vm3, %v286_v15  ;;  %301 = vst.msk [vmem:[#allocation2 + $0x30] sm:$0xf] %vm264_vm3, %v284_v16 }
  0xf0   :  { %v432_v19 = vpop.permute.xlu1 %431  ;;  %v430_v20 = vpop.permute.xlu0 %429 }
  0xf1   :  { %448 = vst.msk [vmem:[#allocation2 + $0x38] sm:$0xf] %vm410_vm7, %v432_v19  ;;  %447 = vst.msk [vmem:[#allocation2 + $0x30] sm:$0xf] %vm410_vm7, %v430_v20 }
  0xf2   :  { %621 = vst.msk [vmem:[#allocation2 + $0x38] sm:$0xff] %vm4749_vm8, %v609_v21  ;;  %620 = vst.msk [vmem:[#allocation2 + $0x30] sm:$0xff] %vm4749_vm8, %v608_v22 }
  0xf4   :  { %v144_v23 = vpop.permute.xlu1 %143  ;;  %v142_v24 = vpop.permute.xlu0 %141 }
  0xf5   :  { %158 = vst.msk [vmem:[#allocation2 + $0x48] sm:$0xf] %vm118_vm2, %v144_v23  ;;  %157 = vst.msk [vmem:[#allocation2 + $0x40] sm:$0xf] %vm118_vm2, %v142_v24 }
  0xf8   :  { %v597_v25 = vpop.permute.xlu1 %596  ;;  %v595_v28 = vpop.permute.xlu0 %594 }
  0xf9   :  { %v4069_v29 = vld [vmem:[#allocation2 + $0x34] ss:$8 sps:$4 sm:$0xff]   ;;  %v4071_v30 = vld [vmem:[#allocation2 + $0x30] ss:$8 sps:$4 sm:$0xff]   ;;  %v605_v35 = vrot.slane %v597_v25, 4  ;;  %v604_v36 = vrot.slane %v595_v28, 4 }
  0xfa   :  { %3574 = vmatprep.mubr.msk.bf16.mxu0 %vm961_vm9, %v4069_v29  ;;  %3623 = vmatprep.mubr.msk.bf16.mxu1 %vm961_vm9, %v4069_v29 }
  0xfb   :  { %1068 = vmatmul.mubr.bf16.gmra.mrb[12].mxu0 %v4071_v30  ;;  %1334 = vmatmul.mubr.bf16.gmra.mrb[28].mxu1 %v4071_v30  ;;  %v611_v39 = vsel %vm556_vm6, %v605_v35, %v597_v25  ;;  %v610_v40 = vsel %vm556_vm6, %v604_v36, %v595_v28 }
  0xfc   :  { %v290_v33 = vpop.permute.xlu1 %289  ;;  %v288_v34 = vpop.permute.xlu0 %287 }
  0xfd   :  { %304 = vst.msk [vmem:[#allocation2 + $0x48] sm:$0xf] %vm264_vm3, %v290_v33  ;;  %303 = vst.msk [vmem:[#allocation2 + $0x40] sm:$0xf] %vm264_vm3, %v288_v34 }
 0x100   :  { %v436_v37 = vpop.permute.xlu1 %435  ;;  %v434_v38 = vpop.permute.xlu0 %433 }
 0x101   :  { %450 = vst.msk [vmem:[#allocation2 + $0x48] sm:$0xf] %vm410_vm7, %v436_v37  ;;  %449 = vst.msk [vmem:[#allocation2 + $0x40] sm:$0xf] %vm410_vm7, %v434_v38 }
 0x102   :  { %623 = vst.msk [vmem:[#allocation2 + $0x48] sm:$0xff] %vm4749_vm8, %v611_v39  ;;  %622 = vst.msk [vmem:[#allocation2 + $0x40] sm:$0xff] %vm4749_vm8, %v610_v40  ;;  %v4147_v39 = vld [vmem:[%s6070_s3 + $0xa0] ss:$8 sps:$4 sm:$0xff]  }
 0x104   :  { %v148_v41 = vpop.permute.xlu1 %147  ;;  %v146_v42 = vpop.permute.xlu0 %145 }
 0x105   :  { %160 = vst.msk [vmem:[#allocation2 + $0x58] sm:$0xf] %vm118_vm2, %v148_v41  ;;  %159 = vst.msk [vmem:[#allocation2 + $0x50] sm:$0xf] %vm118_vm2, %v146_v42 }
 0x108   :  { %v601_v43 = vpop.permute.xlu1 %600  ;;  %v599_v44 = vpop.permute.xlu0 %598 }
 0x109   :  { %v4072_v45 = vld [vmem:[#allocation2 + $0x44] ss:$8 sps:$4 sm:$0xff]   ;;  %v4074_v47 = vld [vmem:[#allocation2 + $0x40] ss:$8 sps:$4 sm:$0xff]   ;;  %v607_v50 = vrot.slane %v601_v43, 4  ;;  %v606_v51 = vrot.slane %v599_v44, 4 }
 0x10a   :  { %3575 = vmatprep.mubr.msk.bf16.mxu0 %vm961_vm9, %v4072_v45  ;;  %3624 = vmatprep.mubr.msk.bf16.mxu1 %vm961_vm9, %v4072_v45  ;;  %v4140_v45 = vld [vmem:[%s6070_s3 + $0x194] ss:$8 sps:$4 sm:$0xff]  }
 0x10b   :  { %1078 = vmatmul.mubr.bf16.gmra.mrb[16].mxu0 %v4074_v47  ;;  %1344 = vmatmul.mubr.bf16.gmra.mrb[32].mxu1 %v4074_v47  ;;  %v613_v54 = vsel %vm556_vm6, %v607_v50, %v601_v43  ;;  %v612_v55 = vsel %vm556_vm6, %v606_v51, %v599_v44 }
 0x10c   :  { %v294_v48 = vpop.permute.xlu1 %293  ;;  %v292_v49 = vpop.permute.xlu0 %291 }
 0x10d   :  { %306 = vst.msk [vmem:[#allocation2 + $0x58] sm:$0xf] %vm264_vm3, %v294_v48  ;;  %305 = vst.msk [vmem:[#allocation2 + $0x50] sm:$0xf] %vm264_vm3, %v292_v49 }
 0x110   :  { %v440_v52 = vpop.permute.xlu1 %439  ;;  %v438_v53 = vpop.permute.xlu0 %437 }
 0x111   :  { %452 = vst.msk [vmem:[#allocation2 + $0x58] sm:$0xf] %vm410_vm7, %v440_v52  ;;  %451 = vst.msk [vmem:[#allocation2 + $0x50] sm:$0xf] %vm410_vm7, %v438_v53 }
 0x112   :  { %625 = vst.msk [vmem:[#allocation2 + $0x58] sm:$0xff] %vm4749_vm8, %v613_v54  ;;  %624 = vst.msk [vmem:[#allocation2 + $0x50] sm:$0xff] %vm4749_vm8, %v612_v55 }
 0x114   :  { %v176_v56 = vpop.permute.xlu1 %175  ;;  %v174_v57 = vpop.permute.xlu0 %173 }
 0x115   :  { %192 = vst.msk [vmem:[#allocation2 + $0x68] sm:$0xf] %vm118_vm2, %v176_v56  ;;  %191 = vst.msk [vmem:[#allocation2 + $0x60] sm:$0xf] %vm118_vm2, %v174_v57 }
 0x118   :  { %v641_v58 = vpop.permute.xlu1 %640  ;;  %v639_v59 = vpop.permute.xlu0 %638 }
 0x119   :  { %v4075_v60 = vld [vmem:[#allocation2 + $0x54] ss:$8 sps:$4 sm:$0xff]   ;;  %v4077_v61 = vld [vmem:[#allocation2 + $0x50] ss:$8 sps:$4 sm:$0xff]   ;;  %v651_v2 = vrot.slane %v641_v58, 4  ;;  %v650_v5 = vrot.slane %v639_v59, 4 }
 0x11a   :  { %3576 = vmatprep.mubr.msk.bf16.mxu0 %vm961_vm9, %v4075_v60  ;;  %3625 = vmatprep.mubr.msk.bf16.mxu1 %vm961_vm9, %v4075_v60 }
 0x11b   :  { %1088 = vmatmul.mubr.bf16.gmra.mrb[20].mxu0 %v4077_v61  ;;  %1354 = vmatmul.mubr.bf16.gmra.mrb[36].mxu1 %v4077_v61  ;;  %v657_v8 = vsel %vm556_vm6, %v651_v2, %v641_v58  ;;  %v656_v9 = vsel %vm556_vm6, %v650_v5, %v639_v59  ;;  %v4114_v2 = vld [vmem:[%s6070_s3 + $0x150] ss:$8 sps:$4 sm:$0xff]  }
 0x11c   :  { %v322_v62 = vpop.permute.xlu1 %321  ;;  %v320_v1 = vpop.permute.xlu0 %319  ;;  %v4129_v61 = vld [vmem:[%s6070_s3 + $0x70] ss:$8 sps:$4 sm:$0xff]  }
 0x11d   :  { %338 = vst.msk [vmem:[#allocation2 + $0x68] sm:$0xf] %vm264_vm3, %v322_v62  ;;  %337 = vst.msk [vmem:[#allocation2 + $0x60] sm:$0xf] %vm264_vm3, %v320_v1 }
 0x120   :  { %v468_v6 = vpop.permute.xlu1 %467  ;;  %v466_v7 = vpop.permute.xlu0 %465 }
 0x121   :  { %484 = vst.msk [vmem:[#allocation2 + $0x68] sm:$0xf] %vm410_vm7, %v468_v6  ;;  %483 = vst.msk [vmem:[#allocation2 + $0x60] sm:$0xf] %vm410_vm7, %v466_v7 }
 0x122   :  { %669 = vst.msk [vmem:[#allocation2 + $0x68] sm:$0xff] %vm4749_vm8, %v657_v8  ;;  %668 = vst.msk [vmem:[#allocation2 + $0x60] sm:$0xff] %vm4749_vm8, %v656_v9 }
 0x124   :  { %v180_v10 = vpop.permute.xlu1 %179  ;;  %v178_v11 = vpop.permute.xlu0 %177 }
 0x125   :  { %194 = vst.msk [vmem:[#allocation2 + $0x78] sm:$0xf] %vm118_vm2, %v180_v10  ;;  %193 = vst.msk [vmem:[#allocation2 + $0x70] sm:$0xf] %vm118_vm2, %v178_v11  ;;  %v4116_v10 = vld [vmem:[%s6070_s3 + $0x154] ss:$8 sps:$4 sm:$0xff]  }
 0x128   :  { %v645_v12 = vpop.permute.xlu1 %644  ;;  %v643_v13 = vpop.permute.xlu0 %642 }
 0x129   :  { %v4078_v14 = vld [vmem:[#allocation2 + $0x64] ss:$8 sps:$4 sm:$0xff]   ;;  %v4080_v15 = vld [vmem:[#allocation2 + $0x60] ss:$8 sps:$4 sm:$0xff]   ;;  %v653_v18 = vrot.slane %v645_v12, 4  ;;  %v652_v19 = vrot.slane %v643_v13, 4 }
 0x12a   :  { %3577 = vmatprep.mubr.msk.bf16.mxu0 %vm961_vm9, %v4078_v14  ;;  %3626 = vmatprep.mubr.msk.bf16.mxu1 %vm961_vm9, %v4078_v14 }
 0x12b   :  { %1098 = vmatmul.mubr.bf16.gmra.mrb[24].mxu0 %v4080_v15  ;;  %1364 = vmatmul.mubr.bf16.gmra.mrb[40].mxu1 %v4080_v15  ;;  %v659_v22 = vsel %vm556_vm6, %v653_v18, %v645_v12  ;;  %v658_v23 = vsel %vm556_vm6, %v652_v19, %v643_v13  ;;  %v4084_v13 = vld [vmem:[%s6070_s3 + $0x100] ss:$8 sps:$4 sm:$0xff]   ;;  %v4086_v15 = vld [vmem:[%s6070_s3 + $0x104] ss:$8 sps:$4 sm:$0xff]   ;;  %v4090_v18 = vld [vmem:[%s6070_s3 + $0x110] ss:$8 sps:$4 sm:$0xff]  }
 0x12c   :  { %v326_v16 = vpop.permute.xlu1 %325  ;;  %v324_v17 = vpop.permute.xlu0 %323  ;;  %2720 = vmatprep.subr.bf16.mxu0 %v4086_v15  ;;  %v4092_v19 = vld [vmem:[%s6070_s3 + $0x114] ss:$8 sps:$4 sm:$0xff]  }
 0x12d   :  { %340 = vst.msk [vmem:[#allocation2 + $0x78] sm:$0xf] %vm264_vm3, %v326_v16  ;;  %339 = vst.msk [vmem:[#allocation2 + $0x70] sm:$0xf] %vm264_vm3, %v324_v17  ;;  %v4087_v16 = vld [vmem:[%s6070_s3] ss:$8 sps:$4 sm:$0xff]   ;;  %2721 = vmatpush1.bf16.msra.mxu0 %v4084_v13 }
 0x12e   :  { %v4089_v17 = vld [vmem:[%s6070_s3 + $0x4] ss:$8 sps:$4 sm:$0xff]   ;;  %2722 = vmatprep.subr.bf16.mxu0 %v4092_v19  ;;  %v4104_v13 = vld [vmem:[%s6070_s3 + $0x134] ss:$8 sps:$4 sm:$0xff]  }
 0x12f   :  { %2647 = vmatprep.subr.bf16.mxu1 %v4089_v17  ;;  %v4107_v15 = vld [vmem:[%s6070_s3 + $0x34] ss:$8 sps:$4 sm:$0xff]   ;;  %v4105_v17 = vld [vmem:[%s6070_s3 + $0x30] ss:$8 sps:$4 sm:$0xff]  }
 0x130   :  { %v472_v20 = vpop.permute.xlu1 %471  ;;  %v470_v21 = vpop.permute.xlu0 %469  ;;  %2648 = vmatpush1.bf16.msra.mxu1 %v4087_v16  ;;  %v4102_v16 = vld [vmem:[%s6070_s3 + $0x130] ss:$8 sps:$4 sm:$0xff]  }
 0x131   :  { %486 = vst.msk [vmem:[#allocation2 + $0x78] sm:$0xf] %vm410_vm7, %v472_v20  ;;  %485 = vst.msk [vmem:[#allocation2 + $0x70] sm:$0xf] %vm410_vm7, %v470_v21  ;;  %v4093_v20 = vld [vmem:[%s6070_s3 + $0x10] ss:$8 sps:$4 sm:$0xff]   ;;  %2723 = vmatpush1.bf16.msra.mxu0 %v4090_v18 }
 0x132   :  { %671 = vst.msk [vmem:[#allocation2 + $0x78] sm:$0xff] %vm4749_vm8, %v659_v22  ;;  %670 = vst.msk [vmem:[#allocation2 + $0x70] sm:$0xff] %vm4749_vm8, %v658_v23  ;;  %v4095_v21 = vld [vmem:[%s6070_s3 + $0x14] ss:$8 sps:$4 sm:$0xff]   ;;  %v4098_v22 = vld [vmem:[%s6070_s3 + $0x124] ss:$8 sps:$4 sm:$0xff]  }
 0x133   :  { %2649 = vmatprep.subr.bf16.mxu1 %v4095_v21  ;;  %v4096_v23 = vld [vmem:[%s6070_s3 + $0x120] ss:$8 sps:$4 sm:$0xff]   ;;  %2724 = vmatprep.subr.bf16.mxu0 %v4098_v22 }
 0x134   :  { %2650 = vmatpush1.bf16.msra.mxu1 %v4093_v20  ;;  %v4110_v20 = vld [vmem:[%s6070_s3 + $0x144] ss:$8 sps:$4 sm:$0xff]  }
 0x135   :  { %2725 = vmatpush1.bf16.msra.mxu0 %v4096_v23 }
 0x136   :  { %2726 = vmatprep.subr.bf16.mxu0 %v4104_v13 }
 0x139   :  { %v4081_v24 = vld [vmem:[#allocation2 + $0x74] ss:$8 sps:$4 sm:$0xff]   ;;  %v4083_v25 = vld [vmem:[#allocation2 + $0x70] ss:$8 sps:$4 sm:$0xff]   ;;  %2727 = vmatpush1.bf16.msra.mxu0 %v4102_v16 }
 0x13a   :  { %3578 = vmatprep.mubr.msk.bf16.mxu0 %vm961_vm9, %v4081_v24  ;;  %3627 = vmatprep.mubr.msk.bf16.mxu1 %vm961_vm9, %v4081_v24  ;;  %v4101_v24 = vld [vmem:[%s6070_s3 + $0x24] ss:$8 sps:$4 sm:$0xff]   ;;  %v4119_v16 = vld [vmem:[%s6070_s3 + $0x54] ss:$8 sps:$4 sm:$0xff]  }
 0x13b   :  { %1108 = vmatmul.mubr.bf16.gmra.mrb[28].mxu0 %v4083_v25  ;;  %1374 = vmatmul.mubr.bf16.gmra.mrb[44].mxu1 %v4083_v25  ;;  %v4099_v25 = vld [vmem:[%s6070_s3 + $0x20] ss:$8 sps:$4 sm:$0xff]  }
 0x13c   :  { %3628 = vmatprep.mubr.msk.bf16.mxu1 %vm961_vm9, %v4797_v0  ;;  %2651 = vmatprep.subr.bf16.mxu1 %v4101_v24  ;;  %v4113_v24 = vld [vmem:[%s6070_s3 + $0x44] ss:$8 sps:$4 sm:$0xff]  }
 0x13d   :  { %2652 = vmatpush1.bf16.msra.mxu1 %v4099_v25  ;;  %2728 = vmatprep.subr.bf16.mxu0 %v4110_v20  ;;  %v4111_v25 = vld [vmem:[%s6070_s3 + $0x40] ss:$8 sps:$4 sm:$0xff]   ;;  %v4122_v20 = vld [vmem:[%s6070_s3 + $0x164] ss:$8 sps:$4 sm:$0xff]  }
 0x13e   :  { %2653 = vmatprep.subr.bf16.mxu1 %v4107_v15  ;;  %v4108_v15 = vld [vmem:[%s6070_s3 + $0x140] ss:$8 sps:$4 sm:$0xff]  }
 0x13f   :  { %2729 = vmatpush1.bf16.msra.mxu0 %v4108_v15  ;;  %v4120_v15 = vld [vmem:[%s6070_s3 + $0x160] ss:$8 sps:$4 sm:$0xff]  }
 0x140   :  { %2730 = vmatprep.subr.bf16.mxu0 %v4116_v10  ;;  %v4123_v10 = vld [vmem:[%s6070_s3 + $0x60] ss:$8 sps:$4 sm:$0xff]  }
 0x141   :  { %2654 = vmatpush1.bf16.msra.mxu1 %v4105_v17  ;;  %v4117_v17 = vld [vmem:[%s6070_s3 + $0x50] ss:$8 sps:$4 sm:$0xff]  }
 0x142   :  { %2655 = vmatprep.subr.bf16.mxu1 %v4113_v24  ;;  %v4125_v24 = vld [vmem:[%s6070_s3 + $0x64] ss:$8 sps:$4 sm:$0xff]  }
 0x143   :  { %1384 = vmatmul.mubr.bf16.gmra.mrb[48].mxu1 %v4793_v63  ;;  %2731 = vmatpush1.bf16.msra.mxu0 %v4114_v2  ;;  %v4126_v2 = vld [vmem:[%s6070_s3 + $0x170] ss:$8 sps:$4 sm:$0xff]  }
 0x144   :  { %3629 = vmatprep.mubr.msk.bf16.mxu1 %vm961_vm9, %v4876_v31  ;;  %2732 = vmatprep.subr.bf16.mxu0 %v4122_v20 }
 0x145   :  { %2656 = vmatpush1.bf16.msra.mxu1 %v4111_v25  ;;  %v4128_v25 = vld [vmem:[%s6070_s3 + $0x174] ss:$8 sps:$4 sm:$0xff]  }
 0x146   :  { %2657 = vmatprep.subr.bf16.mxu1 %v4119_v16  ;;  %v4131_v16 = vld [vmem:[%s6070_s3 + $0x74] ss:$8 sps:$4 sm:$0xff]  }
 0x147   :  { %2733 = vmatpush1.bf16.msra.mxu0 %v4120_v15 }
 0x148   :  { %2734 = vmatprep.subr.bf16.mxu0 %v4128_v25  ;;  %v4135_v25 = vld [vmem:[%s6070_s3 + $0x80] ss:$8 sps:$4 sm:$0xff]  }
 0x149   :  { %2658 = vmatpush1.bf16.msra.mxu1 %v4117_v17 }
 0x14a   :  { %2659 = vmatprep.subr.bf16.mxu1 %v4125_v24  ;;  %v4134_v24 = vld [vmem:[%s6070_s3 + $0x184] ss:$8 sps:$4 sm:$0xff]  }
 0x14b   :  { %1394 = vmatmul.mubr.bf16.gmra.mrb[52].mxu1 %v4880_v32  ;;  %2735 = vmatpush1.bf16.msra.mxu0 %v4126_v2  ;;  %v4138_v2 = vld [vmem:[%s6070_s3 + $0x190] ss:$8 sps:$4 sm:$0xff]  }
 0x14c   :  { %3630 = vmatprep.mubr.msk.bf16.mxu1 %vm961_vm9, %v4962_v3  ;;  %2736 = vmatprep.subr.bf16.mxu0 %v4134_v24  ;;  %v4149_v24 = vld [vmem:[%s6070_s3 + $0xa4] ss:$8 sps:$4 sm:$0xff]  }
 0x14d   :  { %2660 = vmatpush1.bf16.msra.mxu1 %v4123_v10  ;;  %v4137_v10 = vld [vmem:[%s6070_s3 + $0x84] ss:$8 sps:$4 sm:$0xff]  }
 0x14e   :  { %2661 = vmatprep.subr.bf16.mxu1 %v4131_v16  ;;  %v4132_v16 = vld [vmem:[%s6070_s3 + $0x180] ss:$8 sps:$4 sm:$0xff]  }
 0x14f   :  { %2737 = vmatpush1.bf16.msra.mxu0 %v4132_v16  ;;  %v4155_v16 = vld [vmem:[%s6070_s3 + $0xb4] ss:$8 sps:$4 sm:$0xff]  }
 0x150   :  { %2738 = vmatprep.subr.bf16.mxu0 %v4140_v45  ;;  %v4153_v45 = vld [vmem:[%s6070_s3 + $0xb0] ss:$8 sps:$4 sm:$0xff]  }
 0x151   :  { %2662 = vmatpush1.bf16.msra.mxu1 %v4129_v61  ;;  %v4146_v61 = vld [vmem:[%s6070_s3 + $0x1a4] ss:$8 sps:$4 sm:$0xff]  }
 0x152   :  { %2663 = vmatprep.subr.bf16.mxu1 %v4137_v10  ;;  %v4144_v10 = vld [vmem:[%s6070_s3 + $0x1a0] ss:$8 sps:$4 sm:$0xff]  }
 0x153   :  { %1404 = vmatmul.mubr.bf16.gmra.mrb[56].mxu1 %v4966_v4  ;;  %2739 = vmatpush1.bf16.msra.mxu0 %v4138_v2 }
 0x154   :  { %3631 = vmatprep.mubr.msk.bf16.mxu1 %vm961_vm9, %v5015_v26  ;;  %2740 = vmatprep.subr.bf16.mxu0 %v4146_v61 }
 0x155   :  { %2664 = vmatpush1.bf16.msra.mxu1 %v4135_v25  ;;  %v4158_v25 = vld [vmem:[%s6070_s3 + $0x1c4] ss:$8 sps:$4 sm:$0xff]  }
 0x157   :  { %2741 = vmatpush1.bf16.msra.mxu0 %v4144_v10 }
 0x15b   :  { %1414 = vmatmul.mubr.bf16.gmra.mrb[60].mxu1 %v5019_v27 }
 0x15f   :  { %v5154_v46 = vpop.f32.mrb[0].mxu1 }
 0x160   :  { %v5156_v0 = vpop.f32.mrb[1].mxu1 }
 0x161   :  { %v5158_v63 = vpop.f32.mrb[2].mxu1 }
 0x162   :  { %v5160_v28 = vpop.f32.mrb[3].mxu1 }
 0x16f   :  { %v5162_v31 = vpop.f32.mrb[4].mxu1 }
 0x170   :  { %v5164_v32 = vpop.f32.mrb[5].mxu1 }
 0x171   :  { %v5166_v3 = vpop.f32.mrb[6].mxu1 }
 0x172   :  { %v5168_v4 = vpop.f32.mrb[7].mxu1 }
 0x17f   :  { %v5170_v29 = vpop.f32.mrb[8].mxu1 }
 0x180   :  { %v5172_v26 = vpop.f32.mrb[9].mxu1 }
 0x181   :  { %v5174_v27 = vpop.f32.mrb[10].mxu1 }
 0x182   :  { %v5176_v30 = vpop.f32.mrb[11].mxu1 }
 0x183   :  { %6094 = vst [vmem:[#allocation4_spill] sm:$0xff] %v5176_v30 }
 0x18f   :  { %v5178_v33 = vpop.f32.mrb[12].mxu1 }
 0x190   :  { %6095 = vst [vmem:[#allocation5_spill] sm:$0xff] %v5178_v33  ;;  %v5180_v34 = vpop.f32.mrb[13].mxu1 }
 0x191   :  { %6096 = vst [vmem:[#allocation6_spill] sm:$0xff] %v5180_v34  ;;  %v5182_v35 = vpop.f32.mrb[14].mxu1  ;;  %v4152_v34 = vld [vmem:[%s6070_s3 + $0x1b4] ss:$8 sps:$4 sm:$0xff]  }
 0x192   :  { %6097 = vst [vmem:[#allocation7_spill] sm:$0xff] %v5182_v35  ;;  %v5184_v36 = vpop.f32.mrb[15].mxu1  ;;  %v4141_v35 = vld [vmem:[%s6070_s3 + $0x90] ss:$8 sps:$4 sm:$0xff]   ;;  %2742 = vmatprep.subr.bf16.mxu0 %v4152_v34 }
 0x193   :  { %6098 = vst [vmem:[#allocation8_spill] sm:$0xff] %v5184_v36  ;;  %v4143_v36 = vld [vmem:[%s6070_s3 + $0x94] ss:$8 sps:$4 sm:$0xff]  }
 0x194   :  { %2665 = vmatprep.subr.bf16.mxu1 %v4143_v36  ;;  %v4150_v36 = vld [vmem:[%s6070_s3 + $0x1b0] ss:$8 sps:$4 sm:$0xff]  }
 0x195   :  { %2666 = vmatpush1.bf16.msra.mxu1 %v4141_v35  ;;  %2743 = vmatpush1.bf16.msra.mxu0 %v4150_v36 }
 0x196   :  { %2667 = vmatprep.subr.bf16.mxu1 %v4149_v24  ;;  %2744 = vmatprep.subr.bf16.mxu0 %v4158_v25 }
 0x199   :  { %2668 = vmatpush1.bf16.msra.mxu1 %v4147_v39 }
 0x19a   :  { %2669 = vmatprep.subr.bf16.mxu1 %v4155_v16 }
 0x19d   :  { %2670 = vmatpush1.bf16.msra.mxu1 %v4153_v45 }
 0x19e   :  { %v5186_v37 = vpop.f32.mrb[0].mxu0  ;;  %v5188_v38 = vpop.f32.mrb[16].mxu1 }
 0x19f   :  { %v5192_v40 = vpop.f32.mrb[1].mxu0  ;;  %v5194_v41 = vpop.f32.mrb[17].mxu1 }
 0x1a0   :  { %v5198_v43 = vpop.f32.mrb[2].mxu0  ;;  %v5200_v44 = vpop.f32.mrb[18].mxu1 }
 0x1a1   :  { %v5204_v47 = vpop.f32.mrb[3].mxu0  ;;  %v5206_v48 = vpop.f32.mrb[19].mxu1 }
 0x1ae   :  { %v5210_v50 = vpop.f32.mrb[4].mxu0  ;;  %v5212_v51 = vpop.f32.mrb[20].mxu1 }
 0x1af   :  { %v5216_v53 = vpop.f32.mrb[5].mxu0  ;;  %v5218_v54 = vpop.f32.mrb[21].mxu1 }
 0x1b0   :  { %v5222_v56 = vpop.f32.mrb[6].mxu0  ;;  %v5224_v57 = vpop.f32.mrb[22].mxu1 }
 0x1b1   :  { %v5228_v59 = vpop.f32.mrb[7].mxu0  ;;  %v5230_v60 = vpop.f32.mrb[23].mxu1 }
 0x1be   :  { %v5234_v62 = vpop.f32.mrb[8].mxu0  ;;  %v5236_v1 = vpop.f32.mrb[24].mxu1 }
 0x1bf   :  { %v5240_v5 = vpop.f32.mrb[9].mxu0  ;;  %v5242_v6 = vpop.f32.mrb[25].mxu1 }
 0x1c0   :  { %v5246_v8 = vpop.f32.mrb[10].mxu0  ;;  %v5248_v9 = vpop.f32.mrb[26].mxu1 }
 0x1c1   :  { %v5252_v11 = vpop.f32.mrb[11].mxu0  ;;  %v5254_v12 = vpop.f32.mrb[27].mxu1 }
 0x1ce   :  { %v5306_v18 = vpop.f32.mrb[12].mxu0  ;;  %v5308_v19 = vpop.f32.mrb[28].mxu1 }
 0x1cf   :  { %v5315_v22 = vpop.f32.mrb[13].mxu0  ;;  %v5317_v23 = vpop.f32.mrb[29].mxu1 }
 0x1d0   :  { %v5324_v13 = vpop.f32.mrb[14].mxu0  ;;  %v5326_v14 = vpop.f32.mrb[30].mxu1 }
 0x1d1   :  { %v5330_v21 = vpop.f32.mrb[15].mxu0  ;;  %v5332_v7 = vpop.f32.mrb[31].mxu1 }
 0x1de   :  { %v5375_v17 = vpop.f32.mrb[16].mxu0  ;;  %v5377_v20 = vpop.f32.mrb[32].mxu1 }
 0x1df   :  { %v5387_v58 = vpop.f32.mrb[17].mxu0  ;;  %v5389_v55 = vpop.f32.mrb[33].mxu1 }
 0x1e0   :  { %6099 = vst [vmem:[#allocation9_spill] sm:$0xff] %v5387_v58  ;;  %6100 = vst [vmem:[#allocation10_spill] sm:$0xff] %v5389_v55  ;;  %v5396_v52 = vpop.f32.mrb[18].mxu0  ;;  %v5398_v49 = vpop.f32.mrb[34].mxu1 }
 0x1e1   :  { %6101 = vst [vmem:[#allocation11_spill] sm:$0xff] %v5396_v52  ;;  %6102 = vst [vmem:[#allocation12_spill] sm:$0xff] %v5398_v49  ;;  %v5402_v15 = vpop.f32.mrb[19].mxu0  ;;  %v5404_v42 = vpop.f32.mrb[35].mxu1 }
 0x1e2   :  { %6103 = vst [vmem:[#allocation13_spill] sm:$0xff] %v5402_v15  ;;  %6104 = vst [vmem:[#allocation14_spill] sm:$0xff] %v5404_v42  ;;  %v4156_v42 = vld [vmem:[%s6070_s3 + $0x1c0] ss:$8 sps:$4 sm:$0xff]  }
 0x1e3   :  { %2745 = vmatpush1.bf16.msra.mxu0 %v4156_v42 }
 0x1ee   :  { %v5453_v2 = vpop.f32.mrb[20].mxu0  ;;  %v5455_v33 = vpop.f32.mrb[36].mxu1 }
 0x1ef   :  { %6105 = vst [vmem:[#allocation15_spill] sm:$0xff] %v5453_v2  ;;  %6106 = vst [vmem:[#allocation16_spill] sm:$0xff] %v5455_v33  ;;  %v5459_v61 = vpop.f32.mrb[21].mxu0  ;;  %v5461_v24 = vpop.f32.mrb[37].mxu1  ;;  %v1498_v33 = vlaneseq }
 0x1f0   :  { %6107 = vst [vmem:[#allocation17_spill] sm:$0xff] %v5459_v61  ;;  %6108 = vst [vmem:[#allocation18_spill] sm:$0xff] %v5461_v24  ;;  %v5468_v15 = vpop.f32.mrb[22].mxu0  ;;  %v5470_v49 = vpop.f32.mrb[38].mxu1  ;;  %v1496_v61 = vld [vmem:[%s6071_s2] sm:$0x3] }
 0x1f1   :  { %6109 = vst [vmem:[#allocation19_spill] sm:$0xff] %v5468_v15  ;;  %6110 = vst [vmem:[#allocation20_spill] sm:$0xff] %v5470_v49  ;;  %v5474_v39 = vpop.f32.mrb[23].mxu0  ;;  %v5476_v35 = vpop.f32.mrb[39].mxu1  ;;  %v1499_v10 = vshrl.u32 %v1498_v33, 7  ;;  %v6113_v33 = vmax.f32 %v5186_v37, %v5188_v38  ;;  %v6116_v37 = vmax.f32 %v5204_v47, %v5206_v48 }
 0x1f2   :  { %6111 = vst [vmem:[#allocation21_spill] sm:$0xff] %v5474_v39  ;;  %6112 = vst [vmem:[#allocation22_spill] sm:$0xff] %v5476_v35 }
 0x1f3   :  { %v1500_v24 = vsub.s32 0, %v1499_v10  ;;  %v1504_v2 = vsub.s32 1, %v1499_v10  ;;  %v6114_v10 = vmax.f32 %v5192_v40, %v5194_v41 }
 0x1f5   :  { %v5483_v52 = vrot.slane %v1496_v61, %v1500_v24  ;;  %v5485_v16 = vrot.slane %v1496_v61, %v1504_v2 }
 0x1fe   :  { %v1099_v34 = vpop.f32.mrb[24].mxu0  ;;  %v1365_v49 = vpop.f32.mrb[40].mxu1 }
 0x1ff   :  { %v1448_v15 = vmax.f32 %v1099_v34, %v1365_v49  ;;  %v1101_v36 = vpop.f32.mrb[25].mxu0  ;;  %v1367_v30 = vpop.f32.mrb[41].mxu1 }
 0x200   :  { %v1449_v55 = vmax.f32 %v1101_v36, %v1367_v30  ;;  %v1103_v45 = vpop.f32.mrb[26].mxu0  ;;  %v1369_v25 = vpop.f32.mrb[42].mxu1  ;;  %v6115_v30 = vmax.f32 %v5198_v43, %v5200_v44 }
 0x201   :  { %v1472_v42 = vmax.f32 %v6113_v33, %v1448_v15  ;;  %v1450_v35 = vmax.f32 %v1103_v45, %v1369_v25  ;;  %v1105_v39 = vpop.f32.mrb[27].mxu0  ;;  %v1371_v58 = vpop.f32.mrb[43].mxu1 }
 0x202   :  { %v1473_v49 = vmax.f32 %v6114_v10, %v1449_v55  ;;  %v1451_v24 = vmax.f32 %v1105_v39, %v1371_v58 }
 0x203   :  { %v1508_v34 = vadd.f32 %v5483_v52, %v1472_v42  ;;  %v1474_v2 = vmax.f32 %v6115_v30, %v1450_v35 }
 0x204   :  { %v1509_v61 = vadd.f32 %v5485_v16, %v1473_v49  ;;  %v1475_v38 = vmax.f32 %v6116_v37, %v1451_v24  ;;  %v6119_v49 = vmax.f32 %v5210_v50, %v5212_v51  ;;  %v6122_v50 = vmax.f32 %v5228_v59, %v5230_v60 }
 0x205   :  { %v1532_v15 = vmax.f32 %v1508_v34, 0.0  ;;  %v1510_v36 = vadd.f32 %v5483_v52, %v1474_v2  ;;  %v6123_v59 = vmax.f32 %v5234_v62, %v5236_v1 }
 0x206   :  { %v1533_v40 = vmax.f32 %v1509_v61, 0.0  ;;  %v1511_v41 = vadd.f32 %v5485_v16, %v1475_v38  ;;  %v6120_v61 = vmax.f32 %v5216_v53, %v5218_v54 }
 0x207   :  { %v1534_v55 = vmax.f32 %v1510_v36, 0.0  ;;  %v6121_v36 = vmax.f32 %v5222_v56, %v5224_v57 }
 0x208   :  { %v3844_v43 = vpack.c.bf16 %v1533_v40, %v1532_v15  ;;  %v1535_v44 = vmax.f32 %v1511_v41, 0.0 }
 0x20a   :  { %v5507_v35 = vpack.c.bf16 %v1535_v44, %v1534_v55  ;;  %1631 = vst.msk [vmem:[#allocation3] sm:$0xff] %vm5503_vm12, %v3844_v43 }
 0x20c   :  { %1632 = vst.msk [vmem:[#allocation3 + $0x20] sm:$0xff] %vm5503_vm12, %v5507_v35  ;;  %1692 = vst.msk [vmem:[#allocation3 + $0xc] sm:$0xff] %vm5503_vm12, %v5507_v35 }
 0x20e   :  { %v1109_v47 = vpop.f32.mrb[28].mxu0  ;;  %v1375_v48 = vpop.f32.mrb[44].mxu1 }
 0x20f   :  { %v1452_v39 = vmax.f32 %v1109_v47, %v1375_v48  ;;  %v1111_v45 = vpop.f32.mrb[29].mxu0  ;;  %v1377_v25 = vpop.f32.mrb[45].mxu1 }
 0x210   :  { %v1453_v33 = vmax.f32 %v1111_v45, %v1377_v25  ;;  %v1113_v42 = vpop.f32.mrb[30].mxu0  ;;  %v1379_v10 = vpop.f32.mrb[46].mxu1 }
 0x211   :  { %v1476_v24 = vmax.f32 %v6119_v49, %v1452_v39  ;;  %v1454_v34 = vmax.f32 %v1113_v42, %v1379_v10  ;;  %v1115_v30 = vpop.f32.mrb[31].mxu0  ;;  %v1381_v2 = vpop.f32.mrb[47].mxu1  ;;  %v6125_v10 = vmax.f32 %v5246_v8, %v5248_v9  ;;  %v4161_v8 = vld [vmem:[%s6070_s3 + $0xc4] ss:$8 sps:$4 sm:$0xff]  }
 0x212   :  { %v1477_v37 = vmax.f32 %v6120_v61, %v1453_v33  ;;  %v1455_v38 = vmax.f32 %v1115_v30, %v1381_v2  ;;  %2671 = vmatprep.subr.bf16.mxu1 %v4161_v8 }
 0x213   :  { %v1512_v15 = vadd.f32 %v5483_v52, %v1476_v24  ;;  %v1478_v40 = vmax.f32 %v6121_v36, %v1454_v34  ;;  %v4159_v34 = vld [vmem:[%s6070_s3 + $0xc0] ss:$8 sps:$4 sm:$0xff]  }
 0x214   :  { %v1513_v41 = vadd.f32 %v5485_v16, %v1477_v37  ;;  %v1479_v51 = vmax.f32 %v6122_v50, %v1455_v38  ;;  %2672 = vmatpush1.bf16.msra.mxu1 %v4159_v34  ;;  %v4164_v38 = vld [vmem:[%s6070_s3 + $0x1d4] ss:$8 sps:$4 sm:$0xff]   ;;  %v4162_v50 = vld [vmem:[%s6070_s3 + $0x1d0] ss:$8 sps:$4 sm:$0xff]  }
 0x215   :  { %v1536_v55 = vmax.f32 %v1512_v15, 0.0  ;;  %v1514_v43 = vadd.f32 %v5483_v52, %v1478_v40  ;;  %2746 = vmatprep.subr.bf16.mxu0 %v4164_v38  ;;  %v4182_v38 = vld [vmem:[%s6070_s3 + $0x204] ss:$8 sps:$4 sm:$0xff]  }
 0x216   :  { %v1537_v44 = vmax.f32 %v1513_v41, 0.0  ;;  %v1515_v53 = vadd.f32 %v5485_v16, %v1479_v51  ;;  %v1385_v54 = vpop.f32.mrb[48].mxu1  ;;  %v6127_v51 = vmax.f32 %v5306_v18, %v5308_v19  ;;  %v6128_v18 = vmax.f32 %v5315_v22, %v5317_v23  ;;  %2747 = vmatpush1.bf16.msra.mxu0 %v4162_v50 }
 0x217   :  { %v1538_v47 = vmax.f32 %v1514_v43, 0.0  ;;  %v1456_v48 = vmax.f32 %v5154_v46, %v1385_v54  ;;  %v1387_v39 = vpop.f32.mrb[49].mxu1  ;;  %v4168_v54 = vld [vmem:[%s6070_s3 + $0x1e0] ss:$8 sps:$4 sm:$0xff]   ;;  %v6130_v22 = vmax.f32 %v5330_v21, %v5332_v7 }
 0x218   :  { %v5534_v45 = vpack.c.bf16 %v1537_v44, %v1536_v55  ;;  %v1539_v56 = vmax.f32 %v1515_v53, 0.0  ;;  %v1457_v57 = vmax.f32 %v5156_v0, %v1387_v39  ;;  %v1389_v25 = vpop.f32.mrb[50].mxu1  ;;  %v6124_v0 = vmax.f32 %v5240_v5, %v5242_v6 }
 0x219   :  { %v1480_v60 = vmax.f32 %v6123_v59, %v1456_v48  ;;  %v1458_v33 = vmax.f32 %v5158_v63, %v1389_v25  ;;  %v1391_v42 = vpop.f32.mrb[51].mxu1  ;;  %v6126_v5 = vmax.f32 %v5252_v11, %v5254_v12  ;;  %v6129_v39 = vmax.f32 %v5324_v13, %v5326_v14  ;;  %v4171_v13 = vld [vmem:[%s6070_s3 + $0xe0] ss:$8 sps:$4 sm:$0xff]  }
 0x21a   :  { %1718 = vst.msk [vmem:[#allocation3 + $0x18] sm:$0xff] %vm5503_vm12, %v5534_v45  ;;  %1633 = vst.msk [vmem:[#allocation3 + $0x40] sm:$0xff] %vm5503_vm12, %v5534_v45  ;;  %v5550_v46 = vpack.c.bf16 %v1539_v56, %v1538_v47  ;;  %v1481_v62 = vmax.f32 %v6124_v0, %v1457_v57  ;;  %v1459_v63 = vmax.f32 %v5160_v28, %v1391_v42  ;;  %v4170_v47 = vld [vmem:[%s6070_s3 + $0x1e4] ss:$8 sps:$4 sm:$0xff]   ;;  %v4176_v0 = vld [vmem:[%s6070_s3 + $0x1f4] ss:$8 sps:$4 sm:$0xff]  }
 0x21b   :  { %1693 = vst.msk [vmem:[#allocation3 + $0x2c] sm:$0xff] %vm5503_vm12, %v5534_v45  ;;  %v1516_v1 = vadd.f32 %v5483_v52, %v1480_v60  ;;  %v1482_v49 = vmax.f32 %v6125_v10, %v1458_v33  ;;  %2748 = vmatprep.subr.bf16.mxu0 %v4170_v47  ;;  %v4173_v57 = vld [vmem:[%s6070_s3 + $0xe4] ss:$8 sps:$4 sm:$0xff]  }
 0x21c   :  { %1719 = vst.msk [vmem:[#allocation3 + $0x38] sm:$0xff] %vm5503_vm12, %v5550_v46  ;;  %1634 = vst.msk [vmem:[#allocation3 + $0x60] sm:$0xff] %vm5503_vm12, %v5550_v46  ;;  %v1517_v28 = vadd.f32 %v5485_v16, %v1481_v62  ;;  %v1483_v6 = vmax.f32 %v6126_v5, %v1459_v63  ;;  %2749 = vmatpush1.bf16.msra.mxu0 %v4168_v54 }
 0x21d   :  { %1694 = vst.msk [vmem:[#allocation3 + $0x4c] sm:$0xff] %vm5503_vm12, %v5550_v46  ;;  %v1540_v9 = vmax.f32 %v1516_v1, 0.0  ;;  %v1518_v24 = vadd.f32 %v5483_v52, %v1482_v49  ;;  %v4174_v49 = vld [vmem:[%s6070_s3 + $0x1f0] ss:$8 sps:$4 sm:$0xff]   ;;  %2750 = vmatprep.subr.bf16.mxu0 %v4176_v0  ;;  %v6151_v0 = vld [vmem:[#allocation8_spill] sm:$0xff] }
 0x21e   :  { %v1541_v30 = vmax.f32 %v1517_v28, 0.0  ;;  %v1519_v2 = vadd.f32 %v5485_v16, %v1483_v6  ;;  %v1395_v61 = vpop.f32.mrb[52].mxu1  ;;  %v4179_v28 = vld [vmem:[%s6070_s3 + $0xf4] ss:$8 sps:$4 sm:$0xff]  }
 0x21f   :  { %v1542_v37 = vmax.f32 %v1518_v24, 0.0  ;;  %v1460_v11 = vmax.f32 %v5162_v31, %v1395_v61  ;;  %v1397_v12 = vpop.f32.mrb[53].mxu1  ;;  %v4167_v31 = vld [vmem:[%s6070_s3 + $0xd4] ss:$8 sps:$4 sm:$0xff]  }
 0x220   :  { %v5585_v15 = vpack.c.bf16 %v1541_v30, %v1540_v9  ;;  %v1543_v36 = vmax.f32 %v1519_v2, 0.0  ;;  %v1461_v40 = vmax.f32 %v5164_v32, %v1397_v12  ;;  %v1399_v41 = vpop.f32.mrb[54].mxu1  ;;  %v4165_v32 = vld [vmem:[%s6070_s3 + $0xd0] ss:$8 sps:$4 sm:$0xff]   ;;  %2673 = vmatprep.subr.bf16.mxu1 %v4167_v31  ;;  %v6132_v9 = vld [vmem:[#allocation9_spill] sm:$0xff]  ;;  %v6135_v2 = vld [vmem:[#allocation4_spill] sm:$0xff]  ;;  %2751 = vmatpush1.bf16.msra.mxu0 %v4174_v49 }
 0x221   :  { %v1484_v55 = vmax.f32 %v6127_v51, %v1460_v11  ;;  %v1462_v43 = vmax.f32 %v5166_v3, %v1399_v41  ;;  %v1401_v44 = vpop.f32.mrb[55].mxu1  ;;  %2674 = vmatpush1.bf16.msra.mxu1 %v4165_v32  ;;  %v6133_v24 = vld [vmem:[#allocation10_spill] sm:$0xff]  ;;  %2793 = vmatprep.subr.bf16.mxu0 %v4182_v38 }
 0x222   :  { %1720 = vst.msk [vmem:[#allocation3 + $0x58] sm:$0xff] %vm5503_vm12, %v5585_v15  ;;  %1695 = vst.msk [vmem:[#allocation3 + $0x6c] sm:$0xff] %vm5503_vm12, %v5585_v15  ;;  %v5607_v53 = vpack.c.bf16 %v1543_v36, %v1542_v37  ;;  %v1485_v3 = vmax.f32 %v6128_v18, %v1461_v40  ;;  %v1463_v19 = vmax.f32 %v5168_v4, %v1401_v44  ;;  %2675 = vmatprep.subr.bf16.mxu1 %v4173_v57  ;;  %v6137_v37 = vld [vmem:[#allocation12_spill] sm:$0xff]  ;;  %v6139_v40 = vld [vmem:[#allocation13_spill] sm:$0xff] }
 0x223   :  { %v1520_v48 = vadd.f32 %v5483_v52, %v1484_v55  ;;  %v1486_v56 = vmax.f32 %v6129_v39, %v1462_v43  ;;  %v6134_v34 = vmax.f32 %v6132_v9, %v6133_v24  ;;  %v6140_v41 = vld [vmem:[#allocation14_spill] sm:$0xff] }
 0x224   :  { %1721 = vst.msk [vmem:[#allocation3 + $0x78] sm:$0xff] %vm5503_vm12, %v5607_v53  ;;  %v1521_v4 = vadd.f32 %v5485_v16, %v1485_v3  ;;  %v1487_v23 = vmax.f32 %v6130_v22, %v1463_v19  ;;  %v6141_v50 = vmax.f32 %v6139_v40, %v6140_v41  ;;  %v6142_v3 = vld [vmem:[#allocation5_spill] sm:$0xff]  ;;  %v6143_v39 = vld [vmem:[#allocation6_spill] sm:$0xff]  ;;  %v6144_v22 = vld [vmem:[#allocation15_spill] sm:$0xff] }
 0x225   :  { %v1544_v25 = vmax.f32 %v1520_v48, 0.0  ;;  %v1522_v14 = vadd.f32 %v5483_v52, %v1486_v56  ;;  %2676 = vmatpush1.bf16.msra.mxu1 %v4171_v13 }
 0x226   :  { %v1545_v59 = vmax.f32 %v1521_v4, 0.0  ;;  %v1523_v60 = vadd.f32 %v5485_v16, %v1487_v23  ;;  %v1405_v33 = vpop.f32.mrb[56].mxu1  ;;  %2677 = vmatprep.subr.bf16.mxu1 %v4179_v28  ;;  %v6145_v23 = vld [vmem:[#allocation16_spill] sm:$0xff] }
 0x227   :  { %v1546_v7 = vmax.f32 %v1522_v14, 0.0  ;;  %v1464_v21 = vmax.f32 %v5170_v29, %v1405_v33  ;;  %v1407_v42 = vpop.f32.mrb[57].mxu1  ;;  %v6131_v29 = vmax.f32 %v5375_v17, %v5377_v20  ;;  %v6136_v20 = vld [vmem:[#allocation11_spill] sm:$0xff]  ;;  %v6146_v57 = vmax.f32 %v6144_v22, %v6145_v23  ;;  %v6148_v33 = vld [vmem:[#allocation17_spill] sm:$0xff] }
 0x228   :  { %v1547_v62 = vmax.f32 %v1523_v60, 0.0  ;;  %v1465_v63 = vmax.f32 %v5172_v26, %v1407_v42  ;;  %v1409_v1 = vpop.f32.mrb[58].mxu1  ;;  %v3850_v10 = vpack.c.bf16 %v1545_v59, %v1544_v25  ;;  %v4177_v26 = vld [vmem:[%s6070_s3 + $0xf0] ss:$8 sps:$4 sm:$0xff]   ;;  %v6138_v11 = vmax.f32 %v6136_v20, %v6137_v37 }
 0x229   :  { %v1488_v5 = vmax.f32 %v6131_v29, %v1464_v21  ;;  %v1466_v6 = vmax.f32 %v5174_v27, %v1409_v1  ;;  %v1411_v8 = vpop.f32.mrb[59].mxu1  ;;  %2678 = vmatpush1.bf16.msra.mxu1 %v4177_v26  ;;  %v6147_v14 = vld [vmem:[#allocation7_spill] sm:$0xff] }
 0x22a   :  { %v1489_v30 = vmax.f32 %v6134_v34, %v1465_v63  ;;  %v1467_v61 = vmax.f32 %v6135_v2, %v1411_v8  ;;  %1640 = vrot.lane.b32.xlu0 %v3850_v10, %s4304_s24  ;;  %1636 = vst.msk [vmem:[#allocation3 + $0x80] sm:$0xff] %vm5503_vm12, %v3850_v10  ;;  %v3851_v17 = vpack.c.bf16 %v1547_v62, %v1546_v7  ;;  %v6149_v7 = vld [vmem:[#allocation18_spill] sm:$0xff]  ;;  %v6152_v1 = vld [vmem:[#allocation19_spill] sm:$0xff]  ;;  %v6153_v10 = vld [vmem:[#allocation20_spill] sm:$0xff] }
 0x22b   :  { %v1524_v27 = vadd.f32 %v5483_v52, %v1488_v5  ;;  %v1490_v12 = vmax.f32 %v6138_v11, %v1466_v6  ;;  %v6150_v21 = vmax.f32 %v6148_v33, %v6149_v7  ;;  %v6154_v49 = vmax.f32 %v6152_v1, %v6153_v10  ;;  %v6155_v5 = vld [vmem:[#allocation21_spill] sm:$0xff]  ;;  %v6156_v6 = vld [vmem:[#allocation22_spill] sm:$0xff] }
 0x22c   :  { %v1525_v36 = vadd.f32 %v5485_v16, %v1489_v30  ;;  %v1491_v31 = vmax.f32 %v6141_v50, %v1467_v61  ;;  %1642 = vrot.lane.b32.xlu1 %v3851_v17, %s4304_s24  ;;  %1637 = vst.msk [vmem:[#allocation3 + $0xa0] sm:$0xff] %vm5503_vm12, %v3851_v17  ;;  %1696 = vst.msk [vmem:[#allocation3 + $0x8c] sm:$0xff] %vm5503_vm12, %v3851_v17  ;;  %v6157_v8 = vmax.f32 %v6155_v5, %v6156_v6  ;;  %v4183_v22 = vld [vmem:[%s6070_s3 + $0x210] ss:$8 sps:$4 sm:$0xff]  }
 0x22d   :  { %v1548_v51 = vmax.f32 %v1524_v27, 0.0  ;;  %v1526_v55 = vadd.f32 %v5483_v52, %v1490_v12 }
 0x22e   :  { %v1549_v43 = vmax.f32 %v1525_v36, 0.0  ;;  %v1527_v44 = vadd.f32 %v5485_v16, %v1491_v31  ;;  %v1415_v32 = vpop.f32.mrb[60].mxu1 }
 0x22f   :  { %v1550_v18 = vmax.f32 %v1526_v55, 0.0  ;;  %v1468_v19 = vmax.f32 %v6142_v3, %v1415_v32  ;;  %v1417_v54 = vpop.f32.mrb[61].mxu1  ;;  %v4180_v3 = vld [vmem:[%s6070_s3 + $0x200] ss:$8 sps:$4 sm:$0xff]  }
 0x230   :  { %v3852_v47 = vpack.c.bf16 %v1549_v43, %v1548_v51  ;;  %v1551_v48 = vmax.f32 %v1527_v44, 0.0  ;;  %v1469_v56 = vmax.f32 %v6143_v39, %v1417_v54  ;;  %v1419_v4 = vpop.f32.mrb[62].mxu1 }
 0x231   :  { %v1492_v25 = vmax.f32 %v6146_v57, %v1468_v19  ;;  %v1470_v13 = vmax.f32 %v6147_v14, %v1419_v4  ;;  %v1421_v59 = vpop.f32.mrb[63].mxu1 }
 0x232   :  { %1722 = vst.msk [vmem:[#allocation3 + $0x98] sm:$0xff] %vm5503_vm12, %v3852_v47  ;;  %1638 = vst.msk [vmem:[#allocation3 + $0xc0] sm:$0xff] %vm5503_vm12, %v3852_v47  ;;  %v3853_v60 = vpack.c.bf16 %v1551_v48, %v1550_v18  ;;  %v1493_v42 = vmax.f32 %v6150_v21, %v1469_v56  ;;  %v1471_v62 = vmax.f32 %v6151_v0, %v1421_v59  ;;  %1644 = vrot.lane.b32.xlu0 %v3852_v47, %s4304_s24 }
 0x233   :  { %1697 = vst.msk [vmem:[#allocation3 + $0xac] sm:$0xff] %vm5503_vm12, %v3852_v47  ;;  %v1528_v63 = vadd.f32 %v5483_v52, %v1492_v25  ;;  %v1494_v28 = vmax.f32 %v6154_v49, %v1470_v13  ;;  %v4185_v47 = vld [vmem:[%s6070_s3 + $0x214] ss:$8 sps:$4 sm:$0xff]   ;;  %v4188_v25 = vld [vmem:[%s6070_s3 + $0x224] ss:$8 sps:$4 sm:$0xff]  }
 0x234   :  { %1723 = vst.msk [vmem:[#allocation3 + $0xb8] sm:$0xff] %vm5503_vm12, %v3853_v60  ;;  %1639 = vst.msk [vmem:[#allocation3 + $0xe0] sm:$0xff] %vm5503_vm12, %v3853_v60  ;;  %v1529_v29 = vadd.f32 %v5485_v16, %v1493_v42  ;;  %v1495_v26 = vmax.f32 %v6157_v8, %v1471_v62  ;;  %1646 = vrot.lane.b32.xlu1 %v3853_v60, %s4304_s24 }
 0x235   :  { %1698 = vst.msk [vmem:[#allocation3 + $0xcc] sm:$0xff] %vm5503_vm12, %v3853_v60  ;;  %v1552_v9 = vmax.f32 %v1528_v63, 0.0  ;;  %v1530_v24 = vadd.f32 %v5483_v52, %v1494_v28  ;;  %v4186_v63 = vld [vmem:[%s6070_s3 + $0x220] ss:$8 sps:$4 sm:$0xff]  }
 0x236   :  { %v1553_v34 = vmax.f32 %v1529_v29, 0.0  ;;  %v1531_v30 = vadd.f32 %v5485_v16, %v1495_v26  ;;  %1668 = vrot.lane.b32.xlu0 %v5507_v35, %s4304_s24  ;;  %v4191_v29 = vld [vmem:[%s6070_s3 + $0x234] ss:$8 sps:$4 sm:$0xff]  }
 0x237   :  { %v1554_v2 = vmax.f32 %v1530_v24, 0.0 }
 0x238   :  { %v3854_v61 = vpack.c.bf16 %v1553_v34, %v1552_v9  ;;  %v1555_v17 = vmax.f32 %v1531_v30, 0.0  ;;  %1670 = vrot.lane.b32.xlu1 %v5534_v45, %s4304_s24  ;;  %v4189_v30 = vld [vmem:[%s6070_s3 + $0x230] ss:$8 sps:$4 sm:$0xff]  }
 0x23a   :  { %1724 = vst.msk [vmem:[#allocation3 + $0xd8] sm:$0xff] %vm5503_vm12, %v3854_v61  ;;  %1699 = vst.msk [vmem:[#allocation3 + $0xec] sm:$0xff] %vm5503_vm12, %v3854_v61  ;;  %v3855_v27 = vpack.c.bf16 %v1555_v17, %v1554_v2  ;;  %1672 = vrot.lane.b32.xlu0 %v5550_v46, %s4304_s24  ;;  %v4194_v2 = vld [vmem:[%s6070_s3 + $0x244] ss:$8 sps:$4 sm:$0xff]   ;;  %v4192_v17 = vld [vmem:[%s6070_s3 + $0x240] ss:$8 sps:$4 sm:$0xff]  }
 0x23c   :  { %1725 = vst.msk [vmem:[#allocation3 + $0xf8] sm:$0xff] %vm5503_vm12, %v3855_v27  ;;  %1674 = vrot.lane.b32.xlu1 %v5585_v15, %s4304_s24 }
 0x23e   :  { %1700 = vrot.lane.b32.xlu0 %v3854_v61, %s4304_s24 }
 0x240   :  { %1709 = vrot.lane.b32.xlu1 %v5607_v53, %s4304_s24 }
 0x29c   :  { %v1641_v52 = vpop.permute.xlu0 %1640 }
 0x29d   :  { %v1648_v35 = vrot.slane %v1641_v52, 4 }
 0x29e   :  { %v1643_v45 = vpop.permute.xlu1 %1642 }
 0x29f   :  { %v1653_v58 = vsel %vm1652_vm15, %v1648_v35, %v1641_v52  ;;  %v1649_v46 = vrot.slane %v1643_v45, 4 }
 0x2a0   :  { %1664 = vst.msk [vmem:[#allocation3 + $0x4] sm:$0xff] %vm5732_vm0, %v1653_v58 }
 0x2a1   :  { %v1654_v15 = vsel %vm1652_vm15, %v1649_v46, %v1643_v45  ;;  %v4197_v45 = vld [vmem:[%s6070_s3 + $0x254] ss:$8 sps:$4 sm:$0xff]  }
 0x2a2   :  { %1665 = vst.msk [vmem:[#allocation3 + $0x24] sm:$0xff] %vm5732_vm0, %v1654_v15  ;;  %1705 = vst.msk [vmem:[#allocation3 + $0x10] sm:$0xff] %vm5732_vm0, %v1654_v15 }
 0x2a4   :  { %v1645_v53 = vpop.permute.xlu0 %1644 }
 0x2a5   :  { %v1650_v20 = vrot.slane %v1645_v53, 4 }
 0x2a6   :  { %v1647_v37 = vpop.permute.xlu1 %1646 }
 0x2a7   :  { %v1655_v11 = vsel %vm1652_vm15, %v1650_v20, %v1645_v53  ;;  %v1651_v12 = vrot.slane %v1647_v37, 4  ;;  %v1726_v36 = vld [vmem:[#allocation3] sm:$0xff]  ;;  %v1727_v31 = vld [vmem:[#allocation3 + $0x8] sm:$0xff]  ;;  %v4195_v53 = vld [vmem:[%s6070_s3 + $0x250] ss:$8 sps:$4 sm:$0xff]  }
 0x2a8   :  { %1666 = vst.msk [vmem:[#allocation3 + $0x44] sm:$0xff] %vm5732_vm0, %v1655_v11  ;;  %1706 = vst.msk [vmem:[#allocation3 + $0x30] sm:$0xff] %vm5732_vm0, %v1655_v11  ;;  %v1669_v38 = vpop.permute.xlu0 %1668  ;;  %v4200_v20 = vld [vmem:[%s6070_s3 + $0x264] ss:$8 sps:$4 sm:$0xff]   ;;  %v4198_v11 = vld [vmem:[%s6070_s3 + $0x260] ss:$8 sps:$4 sm:$0xff]  }
 0x2a9   :  { %v1656_v40 = vsel %vm1652_vm15, %v1651_v12, %v1647_v37  ;;  %v1676_v41 = vrot.slane %v1669_v38, 4  ;;  %v1730_v50 = vld [vmem:[#allocation3 + $0x20] sm:$0xff]  ;;  %v1731_v51 = vld [vmem:[#allocation3 + $0x28] sm:$0xff] }
 0x2aa   :  { %1667 = vst.msk [vmem:[#allocation3 + $0x64] sm:$0xff] %vm5732_vm0, %v1656_v40  ;;  %1707 = vst.msk [vmem:[#allocation3 + $0x50] sm:$0xff] %vm5732_vm0, %v1656_v40  ;;  %v1671_v55 = vpop.permute.xlu1 %1670  ;;  %v3644_v43 = vcombine.low %v1726_v36, %v1730_v50  ;;  %v3645_v44 = vcombine.high %v1726_v36, %v1730_v50  ;;  %v3646_v32 = vcombine.low %v1727_v31, %v1731_v51  ;;  %v1728_v36 = vld [vmem:[#allocation3 + $0x10] sm:$0xff] }
 0x2ab   :  { %v3647_v18 = vcombine.high %v1727_v31, %v1731_v51  ;;  %v1680_v19 = vsel %vm1652_vm15, %v1676_v41, %v1669_v38  ;;  %v1677_v54 = vrot.slane %v1671_v55, 4  ;;  %v4203_v40 = vld [vmem:[%s6070_s3 + $0x274] ss:$8 sps:$4 sm:$0xff]   ;;  %v4201_v50 = vld [vmem:[%s6070_s3 + $0x270] ss:$8 sps:$4 sm:$0xff]  }
 0x2ac   :  { %1688 = vst.msk [vmem:[#allocation3 + $0x84] sm:$0xff] %vm5732_vm0, %v1680_v19  ;;  %2679 = vmatprep.mubr.bf16.mxu1 %v3645_v44  ;;  %v1673_v48 = vpop.permute.xlu0 %1672  ;;  %v4206_v31 = vld [vmem:[%s6070_s3 + $0x284] ss:$8 sps:$4 sm:$0xff]   ;;  %v4204_v51 = vld [vmem:[%s6070_s3 + $0x280] ss:$8 sps:$4 sm:$0xff]  }
 0x2ad   :  { %2752 = vmatprep.mubr.bf16.mxu0 %v3647_v18  ;;  %v1681_v39 = vsel %vm1652_vm15, %v1677_v54, %v1671_v55  ;;  %v1678_v56 = vrot.slane %v1673_v48, 4  ;;  %2680 = vmatmul.mubr.bf16.vlgmr.msra.gmra.mrb[64].mxu1 %v3644_v43  ;;  %v4209_v55 = vld [vmem:[%s6070_s3 + $0x294] ss:$8 sps:$4 sm:$0xff]   ;;  %v4207_v43 = vld [vmem:[%s6070_s3 + $0x290] ss:$8 sps:$4 sm:$0xff]  }
 0x2ae   :  { %2753 = vmatmul.mubr.bf16.vlgmr.msra.gmra.mrb[32].mxu0 %v3646_v32  ;;  %1689 = vst.msk [vmem:[#allocation3 + $0xa4] sm:$0xff] %vm5732_vm0, %v1681_v39  ;;  %1714 = vst.msk [vmem:[#allocation3 + $0x90] sm:$0xff] %vm5732_vm0, %v1681_v39  ;;  %v1675_v4 = vpop.permute.xlu1 %1674  ;;  %v4212_v44 = vld [vmem:[%s6070_s3 + $0x2a4] ss:$8 sps:$4 sm:$0xff]   ;;  %v4210_v32 = vld [vmem:[%s6070_s3 + $0x2a0] ss:$8 sps:$4 sm:$0xff]  }
 0x2af   :  { %2794 = vmatpush1.bf16.msra.mxu0 %v4180_v3  ;;  %v1682_v23 = vsel %vm1652_vm15, %v1678_v56, %v1673_v48  ;;  %v1679_v57 = vrot.slane %v1675_v4, 4  ;;  %v1734_v13 = vld [vmem:[#allocation3 + $0x40] sm:$0xff]  ;;  %v1735_v7 = vld [vmem:[#allocation3 + $0x48] sm:$0xff]  ;;  %v1732_v37 = vld [vmem:[#allocation3 + $0x30] sm:$0xff] }
 0x2b0   :  { %2795 = vmatprep.subr.bf16.mxu0 %v4185_v47  ;;  %1690 = vst.msk [vmem:[#allocation3 + $0xc4] sm:$0xff] %vm5732_vm0, %v1682_v23  ;;  %1715 = vst.msk [vmem:[#allocation3 + $0xb0] sm:$0xff] %vm5732_vm0, %v1682_v23  ;;  %v1701_v14 = vpop.permute.xlu0 %1700  ;;  %v3649_v41 = vcombine.high %v1728_v36, %v1732_v37  ;;  %v4215_v18 = vld [vmem:[%s6070_s3 + $0x2b4] ss:$8 sps:$4 sm:$0xff]   ;;  %v4213_v3 = vld [vmem:[%s6070_s3 + $0x2b0] ss:$8 sps:$4 sm:$0xff]  }
 0x2b1   :  { %v1683_v59 = vsel %vm1652_vm15, %v1679_v57, %v1675_v4  ;;  %v1702_v60 = vrot.slane %v1701_v14, 4  ;;  %v1738_v33 = vld [vmem:[#allocation3 + $0x60] sm:$0xff]  ;;  %v1739_v21 = vld [vmem:[#allocation3 + $0x68] sm:$0xff]  ;;  %v4221_v47 = vld [vmem:[%s6070_s3 + $0x2d4] ss:$8 sps:$4 sm:$0xff]  }
 0x2b2   :  { %1691 = vst.msk [vmem:[#allocation3 + $0xe4] sm:$0xff] %vm5732_vm0, %v1683_v59  ;;  %1716 = vst.msk [vmem:[#allocation3 + $0xd0] sm:$0xff] %vm5732_vm0, %v1683_v59  ;;  %v1710_v42 = vpop.permute.xlu1 %1709  ;;  %v3653_v0 = vcombine.high %v1734_v13, %v1738_v33  ;;  %v3655_v62 = vcombine.high %v1735_v7, %v1739_v21  ;;  %v3652_v1 = vcombine.low %v1734_v13, %v1738_v33  ;;  %v4218_v19 = vld [vmem:[%s6070_s3 + $0x2c4] ss:$8 sps:$4 sm:$0xff]   ;;  %v4216_v54 = vld [vmem:[%s6070_s3 + $0x2c0] ss:$8 sps:$4 sm:$0xff]  }
 0x2b3   :  { %2796 = vmatpush1.bf16.msra.mxu0 %v4183_v22  ;;  %v3654_v10 = vcombine.low %v1735_v7, %v1739_v21  ;;  %v1703_v49 = vsel %vm1652_vm15, %v1702_v60, %v1701_v14  ;;  %v1711_v28 = vrot.slane %v1710_v42, 4  ;;  %v1742_v5 = vld [vmem:[#allocation3 + $0x80] sm:$0xff]  ;;  %v1743_v26 = vld [vmem:[#allocation3 + $0x88] sm:$0xff]  ;;  %v4219_v48 = vld [vmem:[%s6070_s3 + $0x2d0] ss:$8 sps:$4 sm:$0xff]   ;;  %v3648_v14 = vcombine.low %v1728_v36, %v1732_v37 }
 0x2b4   :  { %2797 = vmatprep.subr.bf16.mxu0 %v4188_v25  ;;  %1708 = vst.msk [vmem:[#allocation3 + $0x70] sm:$0xff] %vm5732_vm0, %v1703_v49  ;;  %2689 = vmatprep.mubr.bf16.mxu1 %v3653_v0  ;;  %v4224_v39 = vld [vmem:[%s6070_s3 + $0x2e4] ss:$8 sps:$4 sm:$0xff]   ;;  %v4222_v56 = vld [vmem:[%s6070_s3 + $0x2e0] ss:$8 sps:$4 sm:$0xff]   ;;  %v1736_v13 = vld [vmem:[#allocation3 + $0x50] sm:$0xff] }
 0x2b5   :  { %2762 = vmatprep.mubr.bf16.mxu0 %v3655_v62  ;;  %v1712_v6 = vsel %vm1652_vm15, %v1711_v28, %v1710_v42  ;;  %2690 = vmatmul.mubr.bf16.gmra.mrb[68].mxu1 %v3652_v1  ;;  %v1746_v8 = vld [vmem:[#allocation3 + $0xa0] sm:$0xff]  ;;  %v1747_v9 = vld [vmem:[#allocation3 + $0xa8] sm:$0xff]  ;;  %v4227_v4 = vld [vmem:[%s6070_s3 + $0x2f4] ss:$8 sps:$4 sm:$0xff]  }
 0x2b6   :  { %2763 = vmatmul.mubr.bf16.gmra.mrb[36].mxu0 %v3654_v10  ;;  %1717 = vst.msk [vmem:[#allocation3 + $0xf0] sm:$0xff] %vm5732_vm0, %v1712_v6  ;;  %v3661_v24 = vcombine.high %v1742_v5, %v1746_v8  ;;  %v3663_v34 = vcombine.high %v1743_v26, %v1747_v9  ;;  %v3660_v52 = vcombine.low %v1742_v5, %v1746_v8  ;;  %v4225_v22 = vld [vmem:[%s6070_s3 + $0x2f0] ss:$8 sps:$4 sm:$0xff]   ;;  %v4230_v23 = vld [vmem:[%s6070_s3 + $0x304] ss:$8 sps:$4 sm:$0xff]  }
 0x2b7   :  { %2798 = vmatpush1.bf16.msra.mxu0 %v4186_v63  ;;  %v3662_v16 = vcombine.low %v1743_v26, %v1747_v9  ;;  %v1750_v35 = vld [vmem:[#allocation3 + $0xc0] sm:$0xff]  ;;  %v1751_v46 = vld [vmem:[#allocation3 + $0xc8] sm:$0xff]  ;;  %v4233_v59 = vld [vmem:[%s6070_s3 + $0x314] ss:$8 sps:$4 sm:$0xff]  }
 0x2b8   :  { %2799 = vmatprep.subr.bf16.mxu0 %v4191_v29  ;;  %2699 = vmatprep.mubr.bf16.mxu1 %v3661_v24  ;;  %v4228_v25 = vld [vmem:[%s6070_s3 + $0x300] ss:$8 sps:$4 sm:$0xff]   ;;  %v4231_v33 = vld [vmem:[%s6070_s3 + $0x310] ss:$8 sps:$4 sm:$0xff]   ;;  %v4236_v7 = vld [vmem:[%s6070_s3 + $0x324] ss:$8 sps:$4 sm:$0xff]  }
 0x2b9   :  { %2772 = vmatprep.mubr.bf16.mxu0 %v3663_v34  ;;  %v1754_v61 = vld [vmem:[#allocation3 + $0xe0] sm:$0xff]  ;;  %v1755_v27 = vld [vmem:[#allocation3 + $0xe8] sm:$0xff]  ;;  %v1748_v21 = vld [vmem:[#allocation3 + $0xb0] sm:$0xff] }
 0x2ba   :  { %v3669_v58 = vcombine.high %v1750_v35, %v1754_v61  ;;  %v3671_v15 = vcombine.high %v1751_v46, %v1755_v27  ;;  %v3668_v12 = vcombine.low %v1750_v35, %v1754_v61  ;;  %v3670_v38 = vcombine.low %v1751_v46, %v1755_v27  ;;  %v4234_v42 = vld [vmem:[%s6070_s3 + $0x320] ss:$8 sps:$4 sm:$0xff]   ;;  %v1744_v62 = vld [vmem:[#allocation3 + $0x90] sm:$0xff]  ;;  %v4242_v49 = vld [vmem:[%s6070_s3 + $0x344] ss:$8 sps:$4 sm:$0xff]  }
 0x2bb   :  { %2800 = vmatpush1.bf16.msra.mxu0 %v4189_v30  ;;  %v1740_v57 = vld [vmem:[#allocation3 + $0x70] sm:$0xff]  ;;  %v3665_v1 = vcombine.high %v1744_v62, %v1748_v21  ;;  %v4240_v29 = vld [vmem:[%s6070_s3 + $0x340] ss:$8 sps:$4 sm:$0xff]   ;;  %v3664_v5 = vcombine.low %v1744_v62, %v1748_v21  ;;  %v4248_v24 = vld [vmem:[%s6070_s3 + $0x364] ss:$8 sps:$4 sm:$0xff]  }
 0x2bc   :  { %2801 = vmatprep.subr.bf16.mxu0 %v4194_v2  ;;  %v3657_v60 = vcombine.high %v1736_v13, %v1740_v57  ;;  %v3656_v0 = vcombine.low %v1736_v13, %v1740_v57  ;;  %v4239_v63 = vld [vmem:[%s6070_s3 + $0x334] ss:$8 sps:$4 sm:$0xff]   ;;  %v4237_v10 = vld [vmem:[%s6070_s3 + $0x330] ss:$8 sps:$4 sm:$0xff]   ;;  %v4246_v30 = vld [vmem:[%s6070_s3 + $0x360] ss:$8 sps:$4 sm:$0xff]  }
 0x2bd   :  { %2700 = vmatmul.mubr.bf16.gmra.mrb[72].mxu1 %v3660_v52  ;;  %v1756_v28 = vld [vmem:[#allocation3 + $0xf0] sm:$0xff]  ;;  %v1733_v34 = vld [vmem:[#allocation3 + $0x38] sm:$0xff]  ;;  %v4252_v35 = vld [vmem:[%s6070_s3 + $0x380] ss:$8 sps:$4 sm:$0xff]  }
 0x2be   :  { %2773 = vmatmul.mubr.bf16.gmra.mrb[40].mxu0 %v3662_v16  ;;  %2709 = vmatprep.mubr.bf16.mxu1 %v3669_v58  ;;  %v1752_v6 = vld [vmem:[#allocation3 + $0xd0] sm:$0xff]  ;;  %v1729_v61 = vld [vmem:[#allocation3 + $0x18] sm:$0xff]  ;;  %v4254_v16 = vld [vmem:[%s6070_s3 + $0x384] ss:$8 sps:$4 sm:$0xff]  }
 0x2bf   :  { %2802 = vmatpush1.bf16.msra.mxu0 %v4192_v17  ;;  %2782 = vmatprep.mubr.bf16.mxu0 %v3671_v15  ;;  %v4245_v8 = vld [vmem:[%s6070_s3 + $0x354] ss:$8 sps:$4 sm:$0xff]   ;;  %v3673_v26 = vcombine.high %v1752_v6, %v1756_v28  ;;  %v4243_v9 = vld [vmem:[%s6070_s3 + $0x350] ss:$8 sps:$4 sm:$0xff]   ;;  %v3672_v2 = vcombine.low %v1752_v6, %v1756_v28  ;;  %v3651_v27 = vcombine.high %v1729_v61, %v1733_v34  ;;  %v4260_v46 = vld [vmem:[%s6070_s3 + $0x3a4] ss:$8 sps:$4 sm:$0xff]  }
 0x2c0   :  { %2803 = vmatprep.subr.bf16.mxu0 %v4197_v45  ;;  %v4251_v17 = vld [vmem:[%s6070_s3 + $0x374] ss:$8 sps:$4 sm:$0xff]   ;;  %v4249_v52 = vld [vmem:[%s6070_s3 + $0x370] ss:$8 sps:$4 sm:$0xff]   ;;  %v4258_v15 = vld [vmem:[%s6070_s3 + $0x3a0] ss:$8 sps:$4 sm:$0xff]  }
 0x2c1   :  { %v4257_v45 = vld [vmem:[%s6070_s3 + $0x394] ss:$8 sps:$4 sm:$0xff]   ;;  %v4255_v58 = vld [vmem:[%s6070_s3 + $0x390] ss:$8 sps:$4 sm:$0xff]   ;;  %v4283_v62 = vld [vmem:[%s6072_s5 + $0x28] sm:$0xff]  }
 0x2c2   :  { %v1741_v37 = vld [vmem:[#allocation3 + $0x78] sm:$0xff]  ;;  %v4276_v57 = vld [vmem:[%s6072_s5 + $0xd0] sm:$0xff]  }
 0x2c3   :  { %2804 = vmatpush1.bf16.msra.mxu0 %v4195_v53  ;;  %v4263_v53 = vld [vmem:[%s6070_s3 + $0x3b4] ss:$8 sps:$4 sm:$0xff]  }
 0x2c4   :  { %2805 = vmatprep.subr.bf16.mxu0 %v4200_v20  ;;  %v4261_v20 = vld [vmem:[%s6070_s3 + $0x3b0] ss:$8 sps:$4 sm:$0xff]  }
 0x2c5   :  { %2710 = vmatmul.mubr.bf16.gmra.mrb[76].mxu1 %v3668_v12  ;;  %v1737_v12 = vld [vmem:[#allocation3 + $0x58] sm:$0xff]  ;;  %v4278_v13 = vld [vmem:[%s6072_s5 + $0x90] sm:$0xff]  }
 0x2c6   :  { %2783 = vmatmul.mubr.bf16.gmra.mrb[44].mxu0 %v3670_v38  ;;  %v3659_v38 = vcombine.high %v1737_v12, %v1741_v37  ;;  %v1749_v36 = vld [vmem:[#allocation3 + $0xb8] sm:$0xff]  ;;  %v4287_v28 = vld [vmem:[%s6072_s5 + $0x30] sm:$0xff]  }
 0x2c7   :  { %2806 = vmatpush1.bf16.msra.mxu0 %v4198_v11  ;;  %2825 = vmatprep.mubr.bf16.mxu0 %v3649_v41  ;;  %v3650_v11 = vcombine.low %v1729_v61, %v1733_v34  ;;  %v1745_v41 = vld [vmem:[#allocation3 + $0x98] sm:$0xff]  ;;  %v4292_v34 = vld [vmem:[%s6072_s5 + $0xf0] sm:$0xff]  }
 0x2c8   :  { %2807 = vmatprep.subr.bf16.mxu0 %v4203_v40  ;;  %v3658_v40 = vcombine.low %v1737_v12, %v1741_v37  ;;  %v4280_v21 = vld [vmem:[%s6072_s5 + $0xd8] sm:$0xff]  }
 0x2cb   :  { %2808 = vmatpush1.bf16.msra.mxu0 %v4201_v50  ;;  %v3667_v50 = vcombine.high %v1745_v41, %v1749_v36 }
 0x2cc   :  { %2809 = vmatprep.subr.bf16.mxu0 %v4206_v31  ;;  %v1757_v31 = vld [vmem:[#allocation3 + $0xf8] sm:$0xff] }
 0x2cf   :  { %2810 = vmatpush1.bf16.msra.mxu0 %v4204_v51  ;;  %v3666_v51 = vcombine.low %v1745_v41, %v1749_v36 }
 0x2d0   :  { %2811 = vmatprep.subr.bf16.mxu0 %v4209_v55  ;;  %v1753_v55 = vld [vmem:[#allocation3 + $0xd8] sm:$0xff] }
 0x2d3   :  { %2812 = vmatpush1.bf16.msra.mxu0 %v4207_v43  ;;  %v3675_v43 = vcombine.high %v1753_v55, %v1757_v31 }
 0x2d4   :  { %2813 = vmatprep.subr.bf16.mxu0 %v4212_v44  ;;  %v3674_v44 = vcombine.low %v1753_v55, %v1757_v31 }
 0x2d7   :  { %2814 = vmatpush1.bf16.msra.mxu0 %v4210_v32  ;;  %v4264_v32 = vld [vmem:[%s6072_s5 + $0x40] sm:$0xff]  }
 0x2d8   :  { %2815 = vmatprep.subr.bf16.mxu0 %v4215_v18  ;;  %v4265_v18 = vld [vmem:[%s6072_s5] sm:$0xff]  }
 0x2db   :  { %2816 = vmatpush1.bf16.msra.mxu0 %v4213_v3  ;;  %v4266_v3 = vld [vmem:[%s6072_s5 + $0x48] sm:$0xff]  }
 0x2dc   :  { %2817 = vmatprep.subr.bf16.mxu0 %v4218_v19  ;;  %v4267_v19 = vld [vmem:[%s6072_s5 + $0x8] sm:$0xff]  }
 0x2df   :  { %2818 = vmatpush1.bf16.msra.mxu0 %v4216_v54  ;;  %v4268_v54 = vld [vmem:[%s6072_s5 + $0xc0] sm:$0xff]  }
 0x2e0   :  { %2819 = vmatprep.subr.bf16.mxu0 %v4221_v47  ;;  %v4269_v47 = vld [vmem:[%s6072_s5 + $0x50] sm:$0xff]   ;;  %3882 = vmatprep.subr.bf16.mxu1 %v4268_v54 }
 0x2e3   :  { %2820 = vmatpush1.bf16.msra.mxu0 %v4219_v48  ;;  %v4270_v48 = vld [vmem:[%s6072_s5 + $0x80] sm:$0xff]  }
 0x2e4   :  { %2821 = vmatprep.subr.bf16.mxu0 %v4224_v39  ;;  %v4271_v39 = vld [vmem:[%s6072_s5 + $0x10] sm:$0xff]   ;;  %3883 = vmatpush3.bf16.msra.mxu1 %v4270_v48 }
 0x2e7   :  { %2822 = vmatpush1.bf16.msra.mxu0 %v4222_v56  ;;  %v4272_v56 = vld [vmem:[%s6072_s5 + $0xc8] sm:$0xff]  }
 0x2e8   :  { %2823 = vmatprep.subr.bf16.mxu0 %v4227_v4  ;;  %v4273_v4 = vld [vmem:[%s6072_s5 + $0x58] sm:$0xff]   ;;  %3884 = vmatprep.subr.bf16.mxu1 %v4272_v56 }
 0x2eb   :  { %2824 = vmatpush1.bf16.msra.mxu0 %v4225_v22  ;;  %v4274_v22 = vld [vmem:[%s6072_s5 + $0x88] sm:$0xff]  }
 0x2ec   :  { %2866 = vmatprep.subr.bf16.mxu0 %v4230_v23  ;;  %v4275_v23 = vld [vmem:[%s6072_s5 + $0x18] sm:$0xff]   ;;  %3885 = vmatpush3.bf16.msra.mxu1 %v4274_v22 }
 0x2ed   :  { %3886 = vmatprep.subr.bf16.mxu1 %v4276_v57 }
 0x2ee   :  { %2826 = vmatmul.mubr.bf16.vlgmr.msra.gmra.mrb[32].mxu0 %v3648_v14 }
 0x2ef   :  { %2835 = vmatprep.mubr.bf16.mxu0 %v3657_v60  ;;  %2867 = vmatpush1.bf16.msra.mxu0 %v4228_v25  ;;  %v4277_v25 = vld [vmem:[%s6072_s5 + $0x60] sm:$0xff]  }
 0x2f0   :  { %2868 = vmatprep.subr.bf16.mxu0 %v4233_v59  ;;  %v4279_v59 = vld [vmem:[%s6072_s5 + $0x20] sm:$0xff]   ;;  %3887 = vmatpush3.bf16.msra.mxu1 %v4278_v13 }
 0x2f1   :  { %3888 = vmatprep.subr.bf16.mxu1 %v4280_v21 }
 0x2f3   :  { %2869 = vmatpush1.bf16.msra.mxu0 %v4231_v33 }
 0x2f4   :  { %2870 = vmatprep.subr.bf16.mxu0 %v4236_v7 }
 0x2f6   :  { %2836 = vmatmul.mubr.bf16.gmra.mrb[36].mxu0 %v3656_v0  ;;  %v4282_v0 = vld [vmem:[%s6072_s5 + $0x98] sm:$0xff]  }
 0x2f7   :  { %2845 = vmatprep.mubr.bf16.mxu0 %v3665_v1  ;;  %2871 = vmatpush1.bf16.msra.mxu0 %v4234_v42  ;;  %v4281_v42 = vld [vmem:[%s6072_s5 + $0x68] sm:$0xff]   ;;  %v4285_v1 = vld [vmem:[%s6072_s5 + $0x70] sm:$0xff]  }
 0x2f8   :  { %2872 = vmatprep.subr.bf16.mxu0 %v4239_v63  ;;  %3889 = vmatpush3.bf16.msra.mxu1 %v4282_v0  ;;  %v4284_v63 = vld [vmem:[%s6072_s5 + $0xe0] sm:$0xff]  }
 0x2f9   :  { %3890 = vmatprep.subr.bf16.mxu1 %v4284_v63 }
 0x2fb   :  { %2873 = vmatpush1.bf16.msra.mxu0 %v4237_v10 }
 0x2fc   :  { %2874 = vmatprep.subr.bf16.mxu0 %v4242_v49  ;;  %v4286_v49 = vld [vmem:[%s6072_s5 + $0xa0] sm:$0xff]  }
 0x2fd   :  { %3891 = vmatpush3.bf16.msra.mxu1 %v4286_v49 }
 0x2fe   :  { %2846 = vmatmul.mubr.bf16.gmra.mrb[40].mxu0 %v3664_v5 }
 0x2ff   :  { %2855 = vmatprep.mubr.bf16.mxu0 %v3673_v26  ;;  %2875 = vmatpush1.bf16.msra.mxu0 %v4240_v29  ;;  %v4289_v26 = vld [vmem:[%s6072_s5 + $0x78] sm:$0xff]  }
 0x300   :  { %2876 = vmatprep.subr.bf16.mxu0 %v4245_v8  ;;  %v4288_v8 = vld [vmem:[%s6072_s5 + $0xe8] sm:$0xff]  }
 0x301   :  { %3892 = vmatprep.subr.bf16.mxu1 %v4288_v8 }
 0x303   :  { %2877 = vmatpush1.bf16.msra.mxu0 %v4243_v9  ;;  %v4290_v9 = vld [vmem:[%s6072_s5 + $0xa8] sm:$0xff]  }
 0x304   :  { %2878 = vmatprep.subr.bf16.mxu0 %v4248_v24  ;;  %v4291_v24 = vld [vmem:[%s6072_s5 + $0x38] sm:$0xff]   ;;  %3893 = vmatpush3.bf16.msra.mxu1 %v4290_v9 }
 0x305   :  { %3894 = vmatprep.subr.bf16.mxu1 %v4292_v34 }
 0x306   :  { %2856 = vmatmul.mubr.bf16.gmra.mrb[44].mxu0 %v3672_v2  ;;  %v4293_v2 = vld [vmem:[%s6072_s5 + $0xb0] sm:$0xff]  }
 0x307   :  { %2879 = vmatpush1.bf16.msra.mxu0 %v4246_v30  ;;  %3796 = vmatprep.mubr.msk.bf16.mxu0 %vm1652_vm15, %v3651_v27 }
 0x308   :  { %2880 = vmatprep.subr.bf16.mxu0 %v4251_v17  ;;  %3895 = vmatpush3.bf16.msra.mxu1 %v4293_v2 }
 0x30b   :  { %2881 = vmatpush1.bf16.msra.mxu0 %v4249_v52  ;;  %v4294_v52 = vld [vmem:[%s6072_s5 + $0xf8] sm:$0xff]  }
 0x30c   :  { %2882 = vmatprep.subr.bf16.mxu0 %v4254_v16  ;;  %v4295_v16 = vld [vmem:[%s6072_s5 + $0xb8] sm:$0xff]   ;;  %3896 = vmatprep.subr.bf16.mxu1 %v4294_v52  ;;  %v4305_v52 = vmov 0.0  }
 0x30d   :  { %3897 = vmatpush3.bf16.msra.mxu1 %v4295_v16  ;;  %v4297_v16 = vld [vmem:[%s6074_s7 + $0x8] sm:$0xff]  }
 0x30e   :  { %3909 = vmatprep.subr.bf16.mxu1 %v4305_v52 }
 0x30f   :  { %2883 = vmatpush1.bf16.msra.mxu0 %v4252_v35 }
 0x310   :  { %2884 = vmatprep.subr.bf16.mxu0 %v4257_v45 }
 0x313   :  { %2885 = vmatpush1.bf16.msra.mxu0 %v4255_v58 }
 0x314   :  { %2886 = vmatprep.subr.bf16.mxu0 %v4260_v46 }
 0x317   :  { %2887 = vmatpush1.bf16.msra.mxu0 %v4258_v15 }
 0x318   :  { %2888 = vmatprep.subr.bf16.mxu0 %v4263_v53 }
 0x31b   :  { %2889 = vmatpush1.bf16.msra.mxu0 %v4261_v20 }
 0x31c   :  { %3860 = vmatprep.subr.bf16.mxu0 %v4264_v32 }
 0x31e   :  { %2899 = vmatmul.mubr.bf16.vlgmr.msra.gmra.mrb[32].mxu0 %v3650_v11 }
 0x31f   :  { %3797 = vmatprep.mubr.msk.bf16.mxu0 %vm1652_vm15, %v3659_v38  ;;  %3861 = vmatpush3.bf16.msra.mxu0 %v4265_v18 }
 0x320   :  { %3862 = vmatprep.subr.bf16.mxu0 %v4266_v3 }
 0x323   :  { %3863 = vmatpush3.bf16.msra.mxu0 %v4267_v19 }
 0x324   :  { %3864 = vmatprep.subr.bf16.mxu0 %v4269_v47 }
 0x326   :  { %2909 = vmatmul.mubr.bf16.gmra.mrb[36].mxu0 %v3658_v40 }
 0x327   :  { %3798 = vmatprep.mubr.msk.bf16.mxu0 %vm1652_vm15, %v3667_v50  ;;  %3865 = vmatpush3.bf16.msra.mxu0 %v4271_v39 }
 0x328   :  { %3866 = vmatprep.subr.bf16.mxu0 %v4273_v4 }
 0x32b   :  { %3867 = vmatpush3.bf16.msra.mxu0 %v4275_v23 }
 0x32c   :  { %3868 = vmatprep.subr.bf16.mxu0 %v4277_v25  ;;  %v3800_v25 = vld [vmem:[%s6073_s4] ss:$0 sm:$0xff] }
 0x32e   :  { %2919 = vmatmul.mubr.bf16.gmra.mrb[40].mxu0 %v3666_v51 }
 0x32f   :  { %3799 = vmatprep.mubr.msk.bf16.mxu0 %vm1652_vm15, %v3675_v43  ;;  %3869 = vmatpush3.bf16.msra.mxu0 %v4279_v59 }
 0x330   :  { %3870 = vmatprep.subr.bf16.mxu0 %v4281_v42 }
 0x333   :  { %3871 = vmatpush3.bf16.msra.mxu0 %v4283_v62 }
 0x334   :  { %3872 = vmatprep.subr.bf16.mxu0 %v4285_v1 }
 0x336   :  { %2929 = vmatmul.mubr.bf16.gmra.mrb[44].mxu0 %v3674_v44 }
 0x337   :  { %3873 = vmatpush3.bf16.msra.mxu0 %v4287_v28 }
 0x338   :  { %3874 = vmatprep.subr.bf16.mxu0 %v4289_v26 }
 0x33b   :  { %3875 = vmatpush3.bf16.msra.mxu0 %v4291_v24 }
 0x380   :  { %v2681_v14 = vpop.f32.mrb[64].mxu1 }
 0x381   :  { %v2683_v60 = vpop.f32.mrb[65].mxu1 }
 0x382   :  { %v2685_v33 = vpop.f32.mrb[66].mxu1 }
 0x383   :  { %v2687_v7 = vpop.f32.mrb[67].mxu1 }
 0x388   :  { %v2691_v10 = vpop.f32.mrb[68].mxu1 }
 0x389   :  { %v2693_v29 = vpop.f32.mrb[69].mxu1 }
 0x38a   :  { %v2695_v5 = vpop.f32.mrb[70].mxu1 }
 0x38b   :  { %v2697_v6 = vpop.f32.mrb[71].mxu1 }
 0x390   :  { %v2701_v30 = vpop.f32.mrb[72].mxu1 }
 0x391   :  { %v2703_v61 = vpop.f32.mrb[73].mxu1 }
 0x392   :  { %v2705_v17 = vpop.f32.mrb[74].mxu1 }
 0x393   :  { %v2707_v27 = vpop.f32.mrb[75].mxu1 }
 0x398   :  { %v2711_v35 = vpop.f32.mrb[76].mxu1 }
 0x399   :  { %v2713_v45 = vpop.f32.mrb[77].mxu1 }
 0x39a   :  { %v2715_v58 = vpop.f32.mrb[78].mxu1 }
 0x39b   :  { %v2717_v46 = vpop.f32.mrb[79].mxu1 }
 0x3f1   :  { %v2900_v15 = vpop.f32.mrb[32].mxu0 }
 0x3f2   :  { %v3939_v53 = vadd.f32 %v2900_v15, %v2681_v14  ;;  %v2902_v20 = vpop.f32.mrb[33].mxu0 }
 0x3f3   :  { %v3940_v37 = vadd.f32 %v2902_v20, %v2683_v60  ;;  %v2904_v11 = vpop.f32.mrb[34].mxu0 }
 0x3f4   :  { %v3941_v12 = vadd.f32 %v2904_v11, %v2685_v33  ;;  %v2906_v38 = vpop.f32.mrb[35].mxu0 }
 0x3f5   :  { %v2939_v36 = vmax.f32 %v3939_v53, %v3940_v37  ;;  %v3942_v40 = vadd.f32 %v2906_v38, %v2687_v7  ;;  %v3805_v37 = vld [vmem:[%s6075_s6] ss:$0 sm:$0xff] }
 0x3f7   :  { %v2940_v41 = vmax.f32 %v3941_v12, %v3942_v40 }
 0x3f9   :  { %v2910_v50 = vpop.f32.mrb[36].mxu0 }
 0x3fa   :  { %v3943_v31 = vadd.f32 %v2910_v50, %v2691_v10  ;;  %v2912_v51 = vpop.f32.mrb[37].mxu0 }
 0x3fb   :  { %v3944_v55 = vadd.f32 %v2912_v51, %v2693_v29  ;;  %v2914_v43 = vpop.f32.mrb[38].mxu0 }
 0x3fc   :  { %v3945_v44 = vadd.f32 %v2914_v43, %v2695_v5  ;;  %v2916_v32 = vpop.f32.mrb[39].mxu0 }
 0x3fd   :  { %v2941_v18 = vmax.f32 %v3943_v31, %v3944_v55  ;;  %v3946_v3 = vadd.f32 %v2916_v32, %v2697_v6  ;;  %v3838_v55 = vld [vmem:[%s6076_s8] ss:$0 sm:$0xff] }
 0x3ff   :  { %v2942_v19 = vmax.f32 %v3945_v44, %v3946_v3 }
 0x401   :  { %v2920_v54 = vpop.f32.mrb[40].mxu0 }
 0x402   :  { %v3947_v47 = vadd.f32 %v2920_v54, %v2701_v30  ;;  %v2922_v48 = vpop.f32.mrb[41].mxu0 }
 0x403   :  { %v3948_v39 = vadd.f32 %v2922_v48, %v2703_v61  ;;  %v2924_v56 = vpop.f32.mrb[42].mxu0 }
 0x404   :  { %v3949_v4 = vadd.f32 %v2924_v56, %v2705_v17  ;;  %v2926_v22 = vpop.f32.mrb[43].mxu0 }
 0x405   :  { %v2943_v23 = vmax.f32 %v3947_v47, %v3948_v39  ;;  %v3950_v57 = vadd.f32 %v2926_v22, %v2707_v27  ;;  %v4296_v27 = vld [vmem:[%s6074_s7] sm:$0xff]  }
 0x407   :  { %v2947_v14 = vmax.f32 %v2939_v36, %v2943_v23  ;;  %v2944_v13 = vmax.f32 %v3949_v4, %v3950_v57 }
 0x409   :  { %v2958_v59 = vadd.f32 %v3800_v25, %v2947_v14  ;;  %v2948_v60 = vmax.f32 %v2940_v41, %v2944_v13  ;;  %v2930_v33 = vpop.f32.mrb[44].mxu0 }
 0x40a   :  { %v3951_v7 = vadd.f32 %v2930_v33, %v2711_v35  ;;  %v2932_v21 = vpop.f32.mrb[45].mxu0  ;;  %v4298_v35 = vld [vmem:[%s6074_s7 + $0x10] sm:$0xff]  }
 0x40b   :  { %v3952_v42 = vadd.f32 %v2932_v21, %v2713_v45  ;;  %v2934_v0 = vpop.f32.mrb[46].mxu0  ;;  %v2959_v62 = vadd.f32 %v3800_v25, %v2948_v60  ;;  %v2962_v63 = vmax.f32 %v2958_v59, 0.0  ;;  %v4299_v45 = vld [vmem:[%s6074_s7 + $0x18] sm:$0xff]  }
 0x40c   :  { %v3953_v1 = vadd.f32 %v2934_v0, %v2715_v58  ;;  %v2936_v10 = vpop.f32.mrb[47].mxu0 }
 0x40d   :  { %v2945_v49 = vmax.f32 %v3951_v7, %v3952_v42  ;;  %v3954_v28 = vadd.f32 %v2936_v10, %v2717_v46  ;;  %v2963_v29 = vmax.f32 %v2959_v62, 0.0  ;;  %v3856_v26 = vpack.c.bf16 %v2962_v63, %v2962_v63 }
 0x40f   :  { %v2949_v5 = vmax.f32 %v2941_v18, %v2945_v49  ;;  %v2946_v6 = vmax.f32 %v3953_v1, %v3954_v28  ;;  %v3857_v8 = vpack.c.bf16 %v2963_v29, %v2963_v29 }
 0x411   :  { %v2960_v9 = vadd.f32 %v3800_v25, %v2949_v5  ;;  %v2950_v24 = vmax.f32 %v2942_v19, %v2946_v6  ;;  %3277 = vmatprep.mubr.bf16.mxu0 %v3857_v8 }
 0x412   :  { %3278 = vmatmul.mubr.bf16.vlgmr.msra.gmra.mrb[48].mxu0 %v3856_v26 }
 0x413   :  { %v2961_v34 = vadd.f32 %v3800_v25, %v2950_v24  ;;  %v2964_v30 = vmax.f32 %v2960_v9, 0.0 }
 0x415   :  { %v2965_v2 = vmax.f32 %v2961_v34, 0.0  ;;  %v3858_v17 = vpack.c.bf16 %v2964_v30, %v2964_v30 }
 0x417   :  { %v3859_v61 = vpack.c.bf16 %v2965_v2, %v2965_v2 }
 0x419   :  { %3317 = vmatprep.mubr.bf16.mxu1 %v3859_v61 }
 0x41a   :  { %3318 = vmatmul.mubr.bf16.vlgmr.msra.gmra.mrb[80].mxu1 %v3858_v17 }
 0x41b   :  { %3910 = vmatpush3.bf16.msra.mxu1 %v4296_v27  ;;  %3917 = vmatprep.mubr.msk.bf16.mxu1 %vm4306_vm1, %v4305_v52 }
 0x41c   :  { %3911 = vmatprep.subr.bf16.mxu1 %v4305_v52 }
 0x41f   :  { %3912 = vmatpush3.bf16.msra.mxu1 %v4297_v16 }
 0x420   :  { %3913 = vmatprep.subr.bf16.mxu1 %v4305_v52 }
 0x423   :  { %3914 = vmatpush3.bf16.msra.mxu1 %v4298_v35 }
 0x424   :  { %3915 = vmatprep.subr.bf16.mxu1 %v4305_v52 }
 0x427   :  { %3916 = vmatpush3.bf16.msra.mxu1 %v4299_v45 }
 0x4e5   :  { %v3876_v58 = vpop.f32.mrb[48].mxu0 }
 0x4e6   :  { %v3877_v46 = vpop.f32.mrb[49].mxu0 }
 0x4e7   :  { %v3878_v15 = vadd.f32 %v3877_v46, %v3876_v58  ;;  %v3879_v53 = vpop.f32.mrb[50].mxu0 }
 0x4e8   :  { %v3880_v20 = vpop.f32.mrb[51].mxu0 }
 0x4e9   :  { %v3280_v38 = vadd.f32 %v3878_v15, %v3805_v37 }
 0x4ed   :  { %v3898_v11 = vpop.f32.mrb[80].mxu1 }
 0x4ee   :  { %v3899_v12 = vpop.f32.mrb[81].mxu1 }
 0x4ef   :  { %v3900_v36 = vadd.f32 %v3899_v12, %v3898_v11  ;;  %v3901_v40 = vpop.f32.mrb[82].mxu1 }
 0x4f0   :  { %v3902_v41 = vpop.f32.mrb[83].mxu1 }
 0x4f1   :  { %v3320_v50 = vadd.f32 %v3900_v36, %v3280_v38 }
 0x4f3   :  { %v3325_v31 = vmax.f32 %v3320_v50, 0.0 }
 0x4f5   :  { %v3326_v51 = vpack.c.bf16 %v3325_v31, %v3325_v31 }
 0x4f7   :  { %3918 = vmatmul.mubr.msk.bf16.vlgmr.msra.gmra.mrb[84].mxu1 %vm1652_vm15, %v3326_v51 }
 0x5ca   :  { %v3403_v43 = vpop.f32.mrb[84].mxu1 }
 0x5cb   :  { %v3404_v44 = vadd.f32 %v3838_v55, %v3403_v43  ;;  %v3919_v32 = vpop.f32.mrb[85].mxu1 }
 0x5cc   :  { %v3406_v18 = vpop.f32.mrb[86].mxu1 }
 0x5cd   :  { %3409 = vst [vmem:[%s6077_s9] sm:$0xff] %v3404_v44  ;;  %v3920_v3 = vpop.f32.mrb[87].mxu1 }

</bundles_post_ra>
